<compile_context>
chip_gen: v5e
topology: v5e:2x2
jax: 0.10.0
libtpu: 0.0.40
codegen_flags: <defaults>
</compile_context>

<pallas_src>
import jax
import jax.numpy as jnp
from jax import lax
from jax.experimental import pallas as pl
from jax.experimental.pallas import tpu as pltpu  # noqa: F401  (TPU backend)


# ------------------------- in-kernel building blocks -------------------------

def _bidir_cell_update(gates, c_cat):
    """gates: (B, 8H) columns [i_f,i_r,f_f,f_r,g_f,g_r,o_f,o_r];  c_cat: (B, 2H)=[c_f|c_r]."""
    H2 = c_cat.shape[-1]
    i = jax.nn.sigmoid(gates[:, 0 * H2:1 * H2])
    f = jax.nn.sigmoid(gates[:, 1 * H2:2 * H2])
    g = jnp.tanh(gates[:, 2 * H2:3 * H2])
    o = jax.nn.sigmoid(gates[:, 3 * H2:4 * H2])
    c_new = f * c_cat + i * g
    h_new = o * jnp.tanh(c_new)
    return h_new, c_new


# ------------------------------ encoder kernel -------------------------------

def _enc_layer_body(x_ref, h0_ref, c0_ref, wx_ref, wh_ref, b_ref,
                    hseq_ref, hlast_ref, clast_ref):
    """One bidirectional LSTM layer over the full sequence, both directions fused.

    x_ref   : (S, B, Din)  time-major input (Din = 1 for layer 0, 2H for layers above)
    h0_ref  : (B, 2H)      [fwd | rev] initial hidden; c0_ref likewise
    wx_ref  : (2*Din, 8H)  rows = [x_fwd rows ; x_rev rows], gate-interleaved columns
    wh_ref  : (2H, 8H)     block-diagonal recurrent weight -> one dot serves both directions
    b_ref   : (1, 8H)
    hseq_ref: (S, B, 2H) output sequence, or None (skipped for the topmost layer)
    """
    S = x_ref.shape[0]
    Din = x_ref.shape[-1]
    H2 = h0_ref.shape[-1]
    H = H2 // 2
    wx = wx_ref[...]
    wh = wh_ref[...]
    b = b_ref[...]
    wx_f = wx[0:1, :]   # used for the Din == 1 (outer-product) fast path
    wx_r = wx[1:2, :]

    def step(t, carry):
        h_cat, c_cat = carry
        x_f = x_ref[t]                 # forward-direction input
        x_r = x_ref[S - 1 - t]         # reverse-direction input (in-kernel reversal)
        if Din == 1:
            xproj = x_f * wx_f + x_r * wx_r                       # (B,1)*(1,8H) broadcasts
        else:
            xcat = jnp.concatenate([x_f, x_r], axis=-1)           # (B, 2*Din)
            xproj = jnp.dot(xcat, wx, preferred_element_type=jnp.float32)
        gates = xproj + jnp.dot(h_cat, wh, preferred_element_type=jnp.float32) + b
        h_new, c_new = _bidir_cell_update(gates, c_cat)
        if hseq_ref is not None:
            hseq_ref[t, :, 0:H] = h_new[:, 0:H]                   # fwd output at time t
            hseq_ref[S - 1 - t, :, H:H2] = h_new[:, H:H2]         # rev output at time S-1-t
        return h_new, c_new

    h_cat, c_cat = lax.fori_loop(0, S, step, (h0_ref[...], c0_ref[...]), unroll=True)
    hlast_ref[...] = h_cat
    clast_ref[...] = c_cat


def _enc_kernel_with_seq(x_ref, h0_ref, c0_ref, wx_ref, wh_ref, b_ref,
                         hseq_ref, hlast_ref, clast_ref):
    _enc_layer_body(x_ref, h0_ref, c0_ref, wx_ref, wh_ref, b_ref,
                    hseq_ref, hlast_ref, clast_ref)


def _enc_kernel_no_seq(x_ref, h0_ref, c0_ref, wx_ref, wh_ref, b_ref,
                       hlast_ref, clast_ref):
    _enc_layer_body(x_ref, h0_ref, c0_ref, wx_ref, wh_ref, b_ref,
                    None, hlast_ref, clast_ref)


def encoder_layer(x_seq, h0_cat, c0_cat, wx, wh, b, *, emit_hseq):
    S, B, _ = x_seq.shape
    H2 = h0_cat.shape[-1]
    state_sd = jax.ShapeDtypeStruct((B, H2), jnp.float32)
    if emit_hseq:
        out_shape = (jax.ShapeDtypeStruct((S, B, H2), jnp.float32), state_sd, state_sd)
        kernel = _enc_kernel_with_seq
    else:
        out_shape = (state_sd, state_sd)
        kernel = _enc_kernel_no_seq
    return pl.pallas_call(kernel, out_shape=out_shape)(x_seq, h0_cat, c0_cat, wx, wh, b)


# ------------------------------ decoder kernel -------------------------------

def make_decoder_kernel(num_layers, dec_len, mask_idx, underscore_idx):
    """Builds the fully-fused greedy autoregressive decoder kernel."""

    def kernel(h0_ref, c0_ref, *args):
        n = num_layers
        wx = [args[3 * l + 0][...] for l in range(n)]
        wh = [args[3 * l + 1][...] for l in range(n)]
        bb = [args[3 * l + 2][...] for l in range(n)]
        lin_w = args[3 * n][...]
        lin_b = args[3 * n + 1][...]
        y_ref = args[3 * n + 2]

        B = h0_ref.shape[1]
        V = lin_w.shape[-1]

        iota_v = lax.broadcasted_iota(jnp.int32, (B, V), 1)
        keep3 = (iota_v == 3).astype(jnp.float32)   # F.one_hot(tensor([3]), V), as in torch

        hs0 = tuple(h0_ref[l] for l in range(n))
        cs0 = tuple(c0_ref[l] for l in range(n))
        x0 = jnp.full((B, 1), float(mask_idx), jnp.float32)   # phones.index('mask')
        flag0 = jnp.zeros((B, 1), jnp.bool_)

        def step(t, carry):
            hs, cs, x_scal, flag = carry
            x_in = x_scal                                         # (B, 1) for layer 0
            new_hs, new_cs = [], []
            for l in range(n):
                if l == 0:
                    xproj = x_in * wx[l]                          # (B,1)*(1,8H) broadcast
                else:
                    xproj = jnp.dot(x_in, wx[l], preferred_element_type=jnp.float32)
                gates = (xproj
                         + jnp.dot(hs[l], wh[l], preferred_element_type=jnp.float32)
                         + bb[l])
                h_new, c_new = _bidir_cell_update(gates, cs[l])
                new_hs.append(h_new)
                new_cs.append(c_new)
                x_in = h_new                                      # (B, 2H) feeds next layer
            logits = jnp.dot(x_in, lin_w, preferred_element_type=jnp.float32) + lin_b
            # greedy first-occurrence argmax (matches torch.argmax tie-breaking)
            m = jnp.max(logits, axis=-1, keepdims=True)
            idx = jnp.min(jnp.where(logits == m, iota_v, V), axis=-1, keepdims=True)
            # flag flips (and masks the SAME step's output) once '_' is emitted, as in torch;
            # next input is the raw (pre-mask) argmax index cast to float, as in torch
            flag_new = jnp.logical_or(flag, idx == underscore_idx)
            out_vec = jnp.where(flag_new, logits * keep3, logits)
            y_ref[t] = out_vec
            return tuple(new_hs), tuple(new_cs), idx.astype(jnp.float32), flag_new

        lax.fori_loop(0, dec_len, step, (hs0, cs0, x0, flag0), unroll=True)

    return kernel


def decoder_forward(h_stack, c_stack, dec_packed, lin_w, lin_b, dec_len,
                    mask_idx, underscore_idx):
    L, B, _ = h_stack.shape
    V = lin_w.shape[-1]
    flat = []
    for lp in dec_packed:
        flat += [lp["Wx"], lp["Wh"], lp["b"]]
    kernel = make_decoder_kernel(L, dec_len, mask_idx, underscore_idx)
    return pl.pallas_call(
        kernel,
        out_shape=jax.ShapeDtypeStruct((dec_len, B, V), jnp.float32),
    )(h_stack, c_stack, *flat, lin_w, lin_b)


# ---------------------- weight packing (once, outside jit) -------------------

def _interleave_gates(wf, wr):
    """(.., 4H) fwd / rev -> (.., 8H) with columns [i_f,i_r,f_f,f_r,g_f,g_r,o_f,o_r]."""
    H = wf.shape[-1] // 4
    cols = []
    for g in range(4):
        cols.append(wf[..., g * H:(g + 1) * H])
        cols.append(wr[..., g * H:(g + 1) * H])
    return jnp.concatenate(cols, axis=-1)


def _pack_enc_layer(p):
    zx = jnp.zeros_like(p["wih_f"])
    zh = jnp.zeros_like(p["whh_f"])
    wx = jnp.concatenate([_interleave_gates(p["wih_f"], zx),
                          _interleave_gates(zx, p["wih_r"])], axis=0)   # (2*Din, 8H)
    wh = jnp.concatenate([_interleave_gates(p["whh_f"], zh),
                          _interleave_gates(zh, p["whh_r"])], axis=0)   # (2H, 8H) block-diag
    b = _interleave_gates(p["b_f"], p["b_r"])                           # (1, 8H)
    return dict(Wx=wx, Wh=wh, b=b)


def _pack_dec_layer(p):
    zh = jnp.zeros_like(p["whh_f"])
    wx = _interleave_gates(p["wih_f"], p["wih_r"])                      # (Din, 8H) shared x
    wh = jnp.concatenate([_interleave_gates(p["whh_f"], zh),
                          _interleave_gates(zh, p["whh_r"])], axis=0)   # (2H, 8H) block-diag
    b = _interleave_gates(p["b_f"], p["b_r"])
    return dict(Wx=wx, Wh=wh, b=b)


def pack_params(params, num_layers):
    return dict(
        enc=[_pack_enc_layer(params["enc"][l]) for l in range(num_layers)],
        dec=[_pack_dec_layer(params["dec"][l]) for l in range(num_layers)],
        lin_w=params["lin_w"], lin_b=params["lin_b"],
    )


# ------------------------------- parameters ----------------------------------

def init_params(key, num_layers, hidden, vocab):
    keys = iter(jax.random.split(key, 256))
    k = 1.0 / float(hidden) ** 0.5

    def uni(shape):
        return jax.random.uniform(next(keys), shape, jnp.float32, -k, k)

    def lstm_stack():
        layers = []
        for l in range(num_layers):
            din = 1 if l == 0 else 2 * hidden
            layers.append(dict(
                wih_f=uni((din, 4 * hidden)), whh_f=uni((hidden, 4 * hidden)),
                b_f=uni((1, 4 * hidden)),     # = b_ih + b_hh combined
                wih_r=uni((din, 4 * hidden)), whh_r=uni((hidden, 4 * hidden)),
                b_r=uni((1, 4 * hidden)),
            ))
        return layers

    return dict(enc=lstm_stack(), dec=lstm_stack(),
                lin_w=uni((2 * hidden, vocab)), lin_b=uni((1, vocab)))


# ------------------------------ model forward --------------------------------

def phoneme_lang_model_v2(packed, x_ids, decoder_output_length, h0, c0,
                          num_layers, mask_idx, underscore_idx):
    # ---------- Encoder: bidirectional LSTM, one fused fwd+rev kernel per layer ----------
    B, S = x_ids.shape
    inp = jnp.transpose(x_ids.astype(jnp.float32))[..., None]           # (S, B, 1) time-major
    h_fin, c_fin = [], []
    for l in range(num_layers):
        lp = packed["enc"][l]
        h0_cat = jnp.concatenate([h0[2 * l], h0[2 * l + 1]], axis=-1)   # (B, 2H) [fwd|rev]
        c0_cat = jnp.concatenate([c0[2 * l], c0[2 * l + 1]], axis=-1)
        last = (l == num_layers - 1)
        if last:   # topmost layer's hidden sequence is unused -> don't emit it
            hF, cF = encoder_layer(inp, h0_cat, c0_cat, lp["Wx"], lp["Wh"], lp["b"],
                                   emit_hseq=False)
        else:
            hseq, hF, cF = encoder_layer(inp, h0_cat, c0_cat, lp["Wx"], lp["Wh"], lp["b"],
                                         emit_hseq=True)
            inp = hseq                                                  # (S, B, 2H) to next layer
        h_fin.append(hF)
        c_fin.append(cF)
    h_stack = jnp.stack(h_fin)                                          # (L, B, 2H)
    c_stack = jnp.stack(c_fin)

    # --- Decoder: whole greedy autoregressive loop (T steps, all layers) in ONE kernel ---
    y = decoder_forward(h_stack, c_stack, packed["dec"], packed["lin_w"], packed["lin_b"],
                        decoder_output_length, mask_idx, underscore_idx)
    return jnp.transpose(y, (1, 0, 2))                                  # (B, T, vocab)


# ----------------------------------- main -------------------------------------

if __name__ == "__main__":
    VOCAB = 16                               # len(phones) == vocab_size
    phones = ["p%d" % i for i in range(VOCAB)]
    phones[3] = "_"
    phones[4] = "mask"
    NUM_LAYERS = 1                           # opts.lstm_layer
    HIDDEN = 32                              # hidden_dim_encoder == hidden_dim_decoder
    B, S = 2, 8
    T = 6                                    # decoder_output_length

    key = jax.random.PRNGKey(0)
    kp, kx, kh, kc = jax.random.split(key, 4)
    params = init_params(kp, NUM_LAYERS, HIDDEN, VOCAB)
    packed = pack_params(params, NUM_LAYERS)            # packed once, outside jit
    x_ids = jax.random.randint(kx, (B, S), 0, VOCAB, dtype=jnp.int32)
    # Encoder.forward draws torch.randn(h0, c0) each call; reproduced with fixed jax keys.
    h0 = jax.random.normal(kh, (2 * NUM_LAYERS, B, HIDDEN), jnp.float32)
    c0 = jax.random.normal(kc, (2 * NUM_LAYERS, B, HIDDEN), jnp.float32)

    fwd = jax.jit(lambda p, x, h, c: phoneme_lang_model_v2(
        p, x, T, h, c, NUM_LAYERS, phones.index("mask"), phones.index("_")))
    out = jax.block_until_ready(fwd(packed, x_ids, h0, c0))
    assert out.shape == (B, T, VOCAB), out.shape
    assert out.dtype == jnp.float32
    # TODO(synk): nn.Embedding layers exist in Encoder/Decoder __init__ but are never used in
    # forward; omitted.  bf16 MXU operands (v6e/v7x micro-opt) skipped to keep exact f32 parity.
    print("KERNEL_OK")
</pallas_src>

<mosaic_0001>
module attributes {stable_mosaic.version = 11 : i64} {
  func.func @_enc_kernel_no_seq(%arg0: memref<8x2x1xf32, #tpu.memory_space<vmem>>, %arg1: memref<2x64xf32, #tpu.memory_space<vmem>>, %arg2: memref<2x64xf32, #tpu.memory_space<vmem>>, %arg3: memref<2x256xf32, #tpu.memory_space<vmem>>, %arg4: memref<64x256xf32, #tpu.memory_space<vmem>>, %arg5: memref<1x256xf32, #tpu.memory_space<vmem>>, %arg6: memref<2x64xf32, #tpu.memory_space<vmem>>, %arg7: memref<2x64xf32, #tpu.memory_space<vmem>>) attributes {dimension_semantics = [], scalar_prefetch = 0 : i64, scratch_operands = 0 : i64, tpu.core_type = #tpu.core_type<tc>} {
    %c0 = arith.constant 0 : index
    %c0_0 = arith.constant 0 : index
    %0 = vector.load %arg3[%c0, %c0_0] : memref<2x256xf32, #tpu.memory_space<vmem>>, vector<2x256xf32>
    %c0_1 = arith.constant 0 : index
    %c0_2 = arith.constant 0 : index
    %1 = vector.load %arg4[%c0_1, %c0_2] : memref<64x256xf32, #tpu.memory_space<vmem>>, vector<64x256xf32>
    %c0_3 = arith.constant 0 : index
    %c0_4 = arith.constant 0 : index
    %2 = vector.load %arg5[%c0_3, %c0_4] : memref<1x256xf32, #tpu.memory_space<vmem>>, vector<1x256xf32>
    %3 = vector.extract_strided_slice %0 {offsets = [0, 0], sizes = [1, 256], strides = [1, 1]} : vector<2x256xf32> to vector<1x256xf32>
    %4 = vector.extract_strided_slice %0 {offsets = [1, 0], sizes = [1, 256], strides = [1, 1]} : vector<2x256xf32> to vector<1x256xf32>
    %c0_5 = arith.constant 0 : index
    %c0_6 = arith.constant 0 : index
    %5 = vector.load %arg1[%c0_5, %c0_6] : memref<2x64xf32, #tpu.memory_space<vmem>>, vector<2x64xf32>
    %c0_7 = arith.constant 0 : index
    %c0_8 = arith.constant 0 : index
    %6 = vector.load %arg2[%c0_7, %c0_8] : memref<2x64xf32, #tpu.memory_space<vmem>>, vector<2x64xf32>
    %c0_i32 = arith.constant 0 : i32
    %7 = arith.index_cast %c0_i32 : i32 to index
    %c0_9 = arith.constant 0 : index
    %c0_10 = arith.constant 0 : index
    %8 = vector.load %arg0[%7, %c0_9, %c0_10] : memref<8x2x1xf32, #tpu.memory_space<vmem>>, vector<1x2x1xf32>
    %9 = vector.shape_cast %8 : vector<1x2x1xf32> to vector<2x1xf32>
    %c7_i32 = arith.constant 7 : i32
    %10 = arith.subi %c7_i32, %c0_i32 : i32
    %11 = arith.index_cast %10 : i32 to index
    %c0_11 = arith.constant 0 : index
    %c0_12 = arith.constant 0 : index
    %12 = vector.load %arg0[%11, %c0_11, %c0_12] : memref<8x2x1xf32, #tpu.memory_space<vmem>>, vector<1x2x1xf32>
    %13 = vector.shape_cast %12 : vector<1x2x1xf32> to vector<2x1xf32>
    %14 = vector.broadcast %9 : vector<2x1xf32> to vector<2x256xf32>
    %15 = vector.broadcast %3 : vector<1x256xf32> to vector<2x256xf32>
    %16 = arith.mulf %14, %15 : vector<2x256xf32>
    %17 = vector.broadcast %13 : vector<2x1xf32> to vector<2x256xf32>
    %18 = vector.broadcast %4 : vector<1x256xf32> to vector<2x256xf32>
    %19 = arith.mulf %17, %18 : vector<2x256xf32>
    %20 = arith.addf %16, %19 : vector<2x256xf32>
    %cst = arith.constant dense<0.000000e+00> : vector<2x256xf32>
    %21 = tpu.matmul %5, %1, %cst {dimension_numbers = #tpu.dot_dimension_numbers<[1], [0], [0], [1], [0, 0, 1, 1], [], []>} : vector<2x64xf32>, vector<64x256xf32>, vector<2x256xf32> -> vector<2x256xf32>
    %22 = arith.addf %20, %21 : vector<2x256xf32>
    %23 = vector.broadcast %2 : vector<1x256xf32> to vector<2x256xf32>
    %24 = arith.addf %22, %23 : vector<2x256xf32>
    %25 = vector.extract_strided_slice %24 {offsets = [0, 0], sizes = [2, 64], strides = [1, 1]} : vector<2x256xf32> to vector<2x64xf32>
    %26 = arith.negf %25 : vector<2x64xf32>
    %27 = math.exp %26 : vector<2x64xf32>
    %cst_13 = arith.constant 1.000000e+00 : f32
    %28 = vector.broadcast %cst_13 : f32 to vector<2x64xf32>
    %29 = arith.addf %28, %27 : vector<2x64xf32>
    %30 = arith.divf %28, %29 : vector<2x64xf32>
    %31 = vector.extract_strided_slice %24 {offsets = [0, 64], sizes = [2, 64], strides = [1, 1]} : vector<2x256xf32> to vector<2x64xf32>
    %32 = arith.negf %31 : vector<2x64xf32>
    %33 = math.exp %32 : vector<2x64xf32>
    %cst_14 = arith.constant 1.000000e+00 : f32
    %34 = vector.broadcast %cst_14 : f32 to vector<2x64xf32>
    %35 = arith.addf %34, %33 : vector<2x64xf32>
    %36 = arith.divf %34, %35 : vector<2x64xf32>
    %37 = vector.extract_strided_slice %24 {offsets = [0, 128], sizes = [2, 64], strides = [1, 1]} : vector<2x256xf32> to vector<2x64xf32>
    %38 = math.tanh %37 : vector<2x64xf32>
    %39 = vector.extract_strided_slice %24 {offsets = [0, 192], sizes = [2, 64], strides = [1, 1]} : vector<2x256xf32> to vector<2x64xf32>
    %40 = arith.negf %39 : vector<2x64xf32>
    %41 = math.exp %40 : vector<2x64xf32>
    %cst_15 = arith.constant 1.000000e+00 : f32
    %42 = vector.broadcast %cst_15 : f32 to vector<2x64xf32>
    %43 = arith.addf %42, %41 : vector<2x64xf32>
    %44 = arith.divf %42, %43 : vector<2x64xf32>
    %45 = arith.mulf %36, %6 : vector<2x64xf32>
    %46 = arith.mulf %30, %38 : vector<2x64xf32>
    %47 = arith.addf %45, %46 : vector<2x64xf32>
    %48 = math.tanh %47 : vector<2x64xf32>
    %49 = arith.mulf %44, %48 : vector<2x64xf32>
    %c1_i32 = arith.constant 1 : i32
    %50 = arith.index_cast %c1_i32 : i32 to index
    %c0_16 = arith.constant 0 : index
    %c0_17 = arith.constant 0 : index
    %51 = vector.load %arg0[%50, %c0_16, %c0_17] : memref<8x2x1xf32, #tpu.memory_space<vmem>>, vector<1x2x1xf32>
    %52 = vector.shape_cast %51 : vector<1x2x1xf32> to vector<2x1xf32>
    %c7_i32_18 = arith.constant 7 : i32
    %53 = arith.subi %c7_i32_18, %c1_i32 : i32
    %54 = arith.index_cast %53 : i32 to index
    %c0_19 = arith.constant 0 : index
    %c0_20 = arith.constant 0 : index
    %55 = vector.load %arg0[%54, %c0_19, %c0_20] : memref<8x2x1xf32, #tpu.memory_space<vmem>>, vector<1x2x1xf32>
    %56 = vector.shape_cast %55 : vector<1x2x1xf32> to vector<2x1xf32>
    %57 = vector.broadcast %52 : vector<2x1xf32> to vector<2x256xf32>
    %58 = vector.broadcast %3 : vector<1x256xf32> to vector<2x256xf32>
    %59 = arith.mulf %57, %58 : vector<2x256xf32>
    %60 = vector.broadcast %56 : vector<2x1xf32> to vector<2x256xf32>
    %61 = vector.broadcast %4 : vector<1x256xf32> to vector<2x256xf32>
    %62 = arith.mulf %60, %61 : vector<2x256xf32>
    %63 = arith.addf %59, %62 : vector<2x256xf32>
    %cst_21 = arith.constant dense<0.000000e+00> : vector<2x256xf32>
    %64 = tpu.matmul %49, %1, %cst_21 {dimension_numbers = #tpu.dot_dimension_numbers<[1], [0], [0], [1], [0, 0, 1, 1], [], []>} : vector<2x64xf32>, vector<64x256xf32>, vector<2x256xf32> -> vector<2x256xf32>
    %65 = arith.addf %63, %64 : vector<2x256xf32>
    %66 = vector.broadcast %2 : vector<1x256xf32> to vector<2x256xf32>
    %67 = arith.addf %65, %66 : vector<2x256xf32>
    %68 = vector.extract_strided_slice %67 {offsets = [0, 0], sizes = [2, 64], strides = [1, 1]} : vector<2x256xf32> to vector<2x64xf32>
    %69 = arith.negf %68 : vector<2x64xf32>
    %70 = math.exp %69 : vector<2x64xf32>
    %cst_22 = arith.constant 1.000000e+00 : f32
    %71 = vector.broadcast %cst_22 : f32 to vector<2x64xf32>
    %72 = arith.addf %71, %70 : vector<2x64xf32>
    %73 = arith.divf %71, %72 : vector<2x64xf32>
    %74 = vector.extract_strided_slice %67 {offsets = [0, 64], sizes = [2, 64], strides = [1, 1]} : vector<2x256xf32> to vector<2x64xf32>
    %75 = arith.negf %74 : vector<2x64xf32>
    %76 = math.exp %75 : vector<2x64xf32>
    %cst_23 = arith.constant 1.000000e+00 : f32
    %77 = vector.broadcast %cst_23 : f32 to vector<2x64xf32>
    %78 = arith.addf %77, %76 : vector<2x64xf32>
    %79 = arith.divf %77, %78 : vector<2x64xf32>
    %80 = vector.extract_strided_slice %67 {offsets = [0, 128], sizes = [2, 64], strides = [1, 1]} : vector<2x256xf32> to vector<2x64xf32>
    %81 = math.tanh %80 : vector<2x64xf32>
    %82 = vector.extract_strided_slice %67 {offsets = [0, 192], sizes = [2, 64], strides = [1, 1]} : vector<2x256xf32> to vector<2x64xf32>
    %83 = arith.negf %82 : vector<2x64xf32>
    %84 = math.exp %83 : vector<2x64xf32>
    %cst_24 = arith.constant 1.000000e+00 : f32
    %85 = vector.broadcast %cst_24 : f32 to vector<2x64xf32>
    %86 = arith.addf %85, %84 : vector<2x64xf32>
    %87 = arith.divf %85, %86 : vector<2x64xf32>
    %88 = arith.mulf %79, %47 : vector<2x64xf32>
    %89 = arith.mulf %73, %81 : vector<2x64xf32>
    %90 = arith.addf %88, %89 : vector<2x64xf32>
    %91 = math.tanh %90 : vector<2x64xf32>
    %92 = arith.mulf %87, %91 : vector<2x64xf32>
    %c2_i32 = arith.constant 2 : i32
    %93 = arith.index_cast %c2_i32 : i32 to index
    %c0_25 = arith.constant 0 : index
    %c0_26 = arith.constant 0 : index
    %94 = vector.load %arg0[%93, %c0_25, %c0_26] : memref<8x2x1xf32, #tpu.memory_space<vmem>>, vector<1x2x1xf32>
    %95 = vector.shape_cast %94 : vector<1x2x1xf32> to vector<2x1xf32>
    %c7_i32_27 = arith.constant 7 : i32
    %96 = arith.subi %c7_i32_27, %c2_i32 : i32
    %97 = arith.index_cast %96 : i32 to index
    %c0_28 = arith.constant 0 : index
    %c0_29 = arith.constant 0 : index
    %98 = vector.load %arg0[%97, %c0_28, %c0_29] : memref<8x2x1xf32, #tpu.memory_space<vmem>>, vector<1x2x1xf32>
    %99 = vector.shape_cast %98 : vector<1x2x1xf32> to vector<2x1xf32>
    %100 = vector.broadcast %95 : vector<2x1xf32> to vector<2x256xf32>
    %101 = vector.broadcast %3 : vector<1x256xf32> to vector<2x256xf32>
    %102 = arith.mulf %100, %101 : vector<2x256xf32>
    %103 = vector.broadcast %99 : vector<2x1xf32> to vector<2x256xf32>
    %104 = vector.broadcast %4 : vector<1x256xf32> to vector<2x256xf32>
    %105 = arith.mulf %103, %104 : vector<2x256xf32>
    %106 = arith.addf %102, %105 : vector<2x256xf32>
    %cst_30 = arith.constant dense<0.000000e+00> : vector<2x256xf32>
    %107 = tpu.matmul %92, %1, %cst_30 {dimension_numbers = #tpu.dot_dimension_numbers<[1], [0], [0], [1], [0, 0, 1, 1], [], []>} : vector<2x64xf32>, vector<64x256xf32>, vector<2x256xf32> -> vector<2x256xf32>
    %108 = arith.addf %106, %107 : vector<2x256xf32>
    %109 = vector.broadcast %2 : vector<1x256xf32> to vector<2x256xf32>
    %110 = arith.addf %108, %109 : vector<2x256xf32>
    %111 = vector.extract_strided_slice %110 {offsets = [0, 0], sizes = [2, 64], strides = [1, 1]} : vector<2x256xf32> to vector<2x64xf32>
    %112 = arith.negf %111 : vector<2x64xf32>
    %113 = math.exp %112 : vector<2x64xf32>
    %cst_31 = arith.constant 1.000000e+00 : f32
    %114 = vector.broadcast %cst_31 : f32 to vector<2x64xf32>
    %115 = arith.addf %114, %113 : vector<2x64xf32>
    %116 = arith.divf %114, %115 : vector<2x64xf32>
    %117 = vector.extract_strided_slice %110 {offsets = [0, 64], sizes = [2, 64], strides = [1, 1]} : vector<2x256xf32> to vector<2x64xf32>
    %118 = arith.negf %117 : vector<2x64xf32>
    %119 = math.exp %118 : vector<2x64xf32>
    %cst_32 = arith.constant 1.000000e+00 : f32
    %120 = vector.broadcast %cst_32 : f32 to vector<2x64xf32>
    %121 = arith.addf %120, %119 : vector<2x64xf32>
    %122 = arith.divf %120, %121 : vector<2x64xf32>
    %123 = vector.extract_strided_slice %110 {offsets = [0, 128], sizes = [2, 64], strides = [1, 1]} : vector<2x256xf32> to vector<2x64xf32>
    %124 = math.tanh %123 : vector<2x64xf32>
    %125 = vector.extract_strided_slice %110 {offsets = [0, 192], sizes = [2, 64], strides = [1, 1]} : vector<2x256xf32> to vector<2x64xf32>
    %126 = arith.negf %125 : vector<2x64xf32>
    %127 = math.exp %126 : vector<2x64xf32>
    %cst_33 = arith.constant 1.000000e+00 : f32
    %128 = vector.broadcast %cst_33 : f32 to vector<2x64xf32>
    %129 = arith.addf %128, %127 : vector<2x64xf32>
    %130 = arith.divf %128, %129 : vector<2x64xf32>
    %131 = arith.mulf %122, %90 : vector<2x64xf32>
    %132 = arith.mulf %116, %124 : vector<2x64xf32>
    %133 = arith.addf %131, %132 : vector<2x64xf32>
    %134 = math.tanh %133 : vector<2x64xf32>
    %135 = arith.mulf %130, %134 : vector<2x64xf32>
    %c3_i32 = arith.constant 3 : i32
    %136 = arith.index_cast %c3_i32 : i32 to index
    %c0_34 = arith.constant 0 : index
    %c0_35 = arith.constant 0 : index
    %137 = vector.load %arg0[%136, %c0_34, %c0_35] : memref<8x2x1xf32, #tpu.memory_space<vmem>>, vector<1x2x1xf32>
    %138 = vector.shape_cast %137 : vector<1x2x1xf32> to vector<2x1xf32>
    %c7_i32_36 = arith.constant 7 : i32
    %139 = arith.subi %c7_i32_36, %c3_i32 : i32
    %140 = arith.index_cast %139 : i32 to index
    %c0_37 = arith.constant 0 : index
    %c0_38 = arith.constant 0 : index
    %141 = vector.load %arg0[%140, %c0_37, %c0_38] : memref<8x2x1xf32, #tpu.memory_space<vmem>>, vector<1x2x1xf32>
    %142 = vector.shape_cast %141 : vector<1x2x1xf32> to vector<2x1xf32>
    %143 = vector.broadcast %138 : vector<2x1xf32> to vector<2x256xf32>
    %144 = vector.broadcast %3 : vector<1x256xf32> to vector<2x256xf32>
    %145 = arith.mulf %143, %144 : vector<2x256xf32>
    %146 = vector.broadcast %142 : vector<2x1xf32> to vector<2x256xf32>
    %147 = vector.broadcast %4 : vector<1x256xf32> to vector<2x256xf32>
    %148 = arith.mulf %146, %147 : vector<2x256xf32>
    %149 = arith.addf %145, %148 : vector<2x256xf32>
    %cst_39 = arith.constant dense<0.000000e+00> : vector<2x256xf32>
    %150 = tpu.matmul %135, %1, %cst_39 {dimension_numbers = #tpu.dot_dimension_numbers<[1], [0], [0], [1], [0, 0, 1, 1], [], []>} : vector<2x64xf32>, vector<64x256xf32>, vector<2x256xf32> -> vector<2x256xf32>
    %151 = arith.addf %149, %150 : vector<2x256xf32>
    %152 = vector.broadcast %2 : vector<1x256xf32> to vector<2x256xf32>
    %153 = arith.addf %151, %152 : vector<2x256xf32>
    %154 = vector.extract_strided_slice %153 {offsets = [0, 0], sizes = [2, 64], strides = [1, 1]} : vector<2x256xf32> to vector<2x64xf32>
    %155 = arith.negf %154 : vector<2x64xf32>
    %156 = math.exp %155 : vector<2x64xf32>
    %cst_40 = arith.constant 1.000000e+00 : f32
    %157 = vector.broadcast %cst_40 : f32 to vector<2x64xf32>
    %158 = arith.addf %157, %156 : vector<2x64xf32>
    %159 = arith.divf %157, %158 : vector<2x64xf32>
    %160 = vector.extract_strided_slice %153 {offsets = [0, 64], sizes = [2, 64], strides = [1, 1]} : vector<2x256xf32> to vector<2x64xf32>
    %161 = arith.negf %160 : vector<2x64xf32>
    %162 = math.exp %161 : vector<2x64xf32>
    %cst_41 = arith.constant 1.000000e+00 : f32
    %163 = vector.broadcast %cst_41 : f32 to vector<2x64xf32>
    %164 = arith.addf %163, %162 : vector<2x64xf32>
    %165 = arith.divf %163, %164 : vector<2x64xf32>
    %166 = vector.extract_strided_slice %153 {offsets = [0, 128], sizes = [2, 64], strides = [1, 1]} : vector<2x256xf32> to vector<2x64xf32>
    %167 = math.tanh %166 : vector<2x64xf32>
    %168 = vector.extract_strided_slice %153 {offsets = [0, 192], sizes = [2, 64], strides = [1, 1]} : vector<2x256xf32> to vector<2x64xf32>
    %169 = arith.negf %168 : vector<2x64xf32>
    %170 = math.exp %169 : vector<2x64xf32>
    %cst_42 = arith.constant 1.000000e+00 : f32
    %171 = vector.broadcast %cst_42 : f32 to vector<2x64xf32>
    %172 = arith.addf %171, %170 : vector<2x64xf32>
    %173 = arith.divf %171, %172 : vector<2x64xf32>
    %174 = arith.mulf %165, %133 : vector<2x64xf32>
    %175 = arith.mulf %159, %167 : vector<2x64xf32>
    %176 = arith.addf %174, %175 : vector<2x64xf32>
    %177 = math.tanh %176 : vector<2x64xf32>
    %178 = arith.mulf %173, %177 : vector<2x64xf32>
    %c4_i32 = arith.constant 4 : i32
    %179 = arith.index_cast %c4_i32 : i32 to index
    %c0_43 = arith.constant 0 : index
    %c0_44 = arith.constant 0 : index
    %180 = vector.load %arg0[%179, %c0_43, %c0_44] : memref<8x2x1xf32, #tpu.memory_space<vmem>>, vector<1x2x1xf32>
    %181 = vector.shape_cast %180 : vector<1x2x1xf32> to vector<2x1xf32>
    %c7_i32_45 = arith.constant 7 : i32
    %182 = arith.subi %c7_i32_45, %c4_i32 : i32
    %183 = arith.index_cast %182 : i32 to index
    %c0_46 = arith.constant 0 : index
    %c0_47 = arith.constant 0 : index
    %184 = vector.load %arg0[%183, %c0_46, %c0_47] : memref<8x2x1xf32, #tpu.memory_space<vmem>>, vector<1x2x1xf32>
    %185 = vector.shape_cast %184 : vector<1x2x1xf32> to vector<2x1xf32>
    %186 = vector.broadcast %181 : vector<2x1xf32> to vector<2x256xf32>
    %187 = vector.broadcast %3 : vector<1x256xf32> to vector<2x256xf32>
    %188 = arith.mulf %186, %187 : vector<2x256xf32>
    %189 = vector.broadcast %185 : vector<2x1xf32> to vector<2x256xf32>
    %190 = vector.broadcast %4 : vector<1x256xf32> to vector<2x256xf32>
    %191 = arith.mulf %189, %190 : vector<2x256xf32>
    %192 = arith.addf %188, %191 : vector<2x256xf32>
    %cst_48 = arith.constant dense<0.000000e+00> : vector<2x256xf32>
    %193 = tpu.matmul %178, %1, %cst_48 {dimension_numbers = #tpu.dot_dimension_numbers<[1], [0], [0], [1], [0, 0, 1, 1], [], []>} : vector<2x64xf32>, vector<64x256xf32>, vector<2x256xf32> -> vector<2x256xf32>
    %194 = arith.addf %192, %193 : vector<2x256xf32>
    %195 = vector.broadcast %2 : vector<1x256xf32> to vector<2x256xf32>
    %196 = arith.addf %194, %195 : vector<2x256xf32>
    %197 = vector.extract_strided_slice %196 {offsets = [0, 0], sizes = [2, 64], strides = [1, 1]} : vector<2x256xf32> to vector<2x64xf32>
    %198 = arith.negf %197 : vector<2x64xf32>
    %199 = math.exp %198 : vector<2x64xf32>
    %cst_49 = arith.constant 1.000000e+00 : f32
    %200 = vector.broadcast %cst_49 : f32 to vector<2x64xf32>
    %201 = arith.addf %200, %199 : vector<2x64xf32>
    %202 = arith.divf %200, %201 : vector<2x64xf32>
    %203 = vector.extract_strided_slice %196 {offsets = [0, 64], sizes = [2, 64], strides = [1, 1]} : vector<2x256xf32> to vector<2x64xf32>
    %204 = arith.negf %203 : vector<2x64xf32>
    %205 = math.exp %204 : vector<2x64xf32>
    %cst_50 = arith.constant 1.000000e+00 : f32
    %206 = vector.broadcast %cst_50 : f32 to vector<2x64xf32>
    %207 = arith.addf %206, %205 : vector<2x64xf32>
    %208 = arith.divf %206, %207 : vector<2x64xf32>
    %209 = vector.extract_strided_slice %196 {offsets = [0, 128], sizes = [2, 64], strides = [1, 1]} : vector<2x256xf32> to vector<2x64xf32>
    %210 = math.tanh %209 : vector<2x64xf32>
    %211 = vector.extract_strided_slice %196 {offsets = [0, 192], sizes = [2, 64], strides = [1, 1]} : vector<2x256xf32> to vector<2x64xf32>
    %212 = arith.negf %211 : vector<2x64xf32>
    %213 = math.exp %212 : vector<2x64xf32>
    %cst_51 = arith.constant 1.000000e+00 : f32
    %214 = vector.broadcast %cst_51 : f32 to vector<2x64xf32>
    %215 = arith.addf %214, %213 : vector<2x64xf32>
    %216 = arith.divf %214, %215 : vector<2x64xf32>
    %217 = arith.mulf %208, %176 : vector<2x64xf32>
    %218 = arith.mulf %202, %210 : vector<2x64xf32>
    %219 = arith.addf %217, %218 : vector<2x64xf32>
    %220 = math.tanh %219 : vector<2x64xf32>
    %221 = arith.mulf %216, %220 : vector<2x64xf32>
    %c5_i32 = arith.constant 5 : i32
    %222 = arith.index_cast %c5_i32 : i32 to index
    %c0_52 = arith.constant 0 : index
    %c0_53 = arith.constant 0 : index
    %223 = vector.load %arg0[%222, %c0_52, %c0_53] : memref<8x2x1xf32, #tpu.memory_space<vmem>>, vector<1x2x1xf32>
    %224 = vector.shape_cast %223 : vector<1x2x1xf32> to vector<2x1xf32>
    %c7_i32_54 = arith.constant 7 : i32
    %225 = arith.subi %c7_i32_54, %c5_i32 : i32
    %226 = arith.index_cast %225 : i32 to index
    %c0_55 = arith.constant 0 : index
    %c0_56 = arith.constant 0 : index
    %227 = vector.load %arg0[%226, %c0_55, %c0_56] : memref<8x2x1xf32, #tpu.memory_space<vmem>>, vector<1x2x1xf32>
    %228 = vector.shape_cast %227 : vector<1x2x1xf32> to vector<2x1xf32>
    %229 = vector.broadcast %224 : vector<2x1xf32> to vector<2x256xf32>
    %230 = vector.broadcast %3 : vector<1x256xf32> to vector<2x256xf32>
    %231 = arith.mulf %229, %230 : vector<2x256xf32>
    %232 = vector.broadcast %228 : vector<2x1xf32> to vector<2x256xf32>
    %233 = vector.broadcast %4 : vector<1x256xf32> to vector<2x256xf32>
    %234 = arith.mulf %232, %233 : vector<2x256xf32>
    %235 = arith.addf %231, %234 : vector<2x256xf32>
    %cst_57 = arith.constant dense<0.000000e+00> : vector<2x256xf32>
    %236 = tpu.matmul %221, %1, %cst_57 {dimension_numbers = #tpu.dot_dimension_numbers<[1], [0], [0], [1], [0, 0, 1, 1], [], []>} : vector<2x64xf32>, vector<64x256xf32>, vector<2x256xf32> -> vector<2x256xf32>
    %237 = arith.addf %235, %236 : vector<2x256xf32>
    %238 = vector.broadcast %2 : vector<1x256xf32> to vector<2x256xf32>
    %239 = arith.addf %237, %238 : vector<2x256xf32>
    %240 = vector.extract_strided_slice %239 {offsets = [0, 0], sizes = [2, 64], strides = [1, 1]} : vector<2x256xf32> to vector<2x64xf32>
    %241 = arith.negf %240 : vector<2x64xf32>
    %242 = math.exp %241 : vector<2x64xf32>
    %cst_58 = arith.constant 1.000000e+00 : f32
    %243 = vector.broadcast %cst_58 : f32 to vector<2x64xf32>
    %244 = arith.addf %243, %242 : vector<2x64xf32>
    %245 = arith.divf %243, %244 : vector<2x64xf32>
    %246 = vector.extract_strided_slice %239 {offsets = [0, 64], sizes = [2, 64], strides = [1, 1]} : vector<2x256xf32> to vector<2x64xf32>
    %247 = arith.negf %246 : vector<2x64xf32>
    %248 = math.exp %247 : vector<2x64xf32>
    %cst_59 = arith.constant 1.000000e+00 : f32
    %249 = vector.broadcast %cst_59 : f32 to vector<2x64xf32>
    %250 = arith.addf %249, %248 : vector<2x64xf32>
    %251 = arith.divf %249, %250 : vector<2x64xf32>
    %252 = vector.extract_strided_slice %239 {offsets = [0, 128], sizes = [2, 64], strides = [1, 1]} : vector<2x256xf32> to vector<2x64xf32>
    %253 = math.tanh %252 : vector<2x64xf32>
    %254 = vector.extract_strided_slice %239 {offsets = [0, 192], sizes = [2, 64], strides = [1, 1]} : vector<2x256xf32> to vector<2x64xf32>
    %255 = arith.negf %254 : vector<2x64xf32>
    %256 = math.exp %255 : vector<2x64xf32>
    %cst_60 = arith.constant 1.000000e+00 : f32
    %257 = vector.broadcast %cst_60 : f32 to vector<2x64xf32>
    %258 = arith.addf %257, %256 : vector<2x64xf32>
    %259 = arith.divf %257, %258 : vector<2x64xf32>
    %260 = arith.mulf %251, %219 : vector<2x64xf32>
    %261 = arith.mulf %245, %253 : vector<2x64xf32>
    %262 = arith.addf %260, %261 : vector<2x64xf32>
    %263 = math.tanh %262 : vector<2x64xf32>
    %264 = arith.mulf %259, %263 : vector<2x64xf32>
    %c6_i32 = arith.constant 6 : i32
    %265 = arith.index_cast %c6_i32 : i32 to index
    %c0_61 = arith.constant 0 : index
    %c0_62 = arith.constant 0 : index
    %266 = vector.load %arg0[%265, %c0_61, %c0_62] : memref<8x2x1xf32, #tpu.memory_space<vmem>>, vector<1x2x1xf32>
    %267 = vector.shape_cast %266 : vector<1x2x1xf32> to vector<2x1xf32>
    %c7_i32_63 = arith.constant 7 : i32
    %268 = arith.subi %c7_i32_63, %c6_i32 : i32
    %269 = arith.index_cast %268 : i32 to index
    %c0_64 = arith.constant 0 : index
    %c0_65 = arith.constant 0 : index
    %270 = vector.load %arg0[%269, %c0_64, %c0_65] : memref<8x2x1xf32, #tpu.memory_space<vmem>>, vector<1x2x1xf32>
    %271 = vector.shape_cast %270 : vector<1x2x1xf32> to vector<2x1xf32>
    %272 = vector.broadcast %267 : vector<2x1xf32> to vector<2x256xf32>
    %273 = vector.broadcast %3 : vector<1x256xf32> to vector<2x256xf32>
    %274 = arith.mulf %272, %273 : vector<2x256xf32>
    %275 = vector.broadcast %271 : vector<2x1xf32> to vector<2x256xf32>
    %276 = vector.broadcast %4 : vector<1x256xf32> to vector<2x256xf32>
    %277 = arith.mulf %275, %276 : vector<2x256xf32>
    %278 = arith.addf %274, %277 : vector<2x256xf32>
    %cst_66 = arith.constant dense<0.000000e+00> : vector<2x256xf32>
    %279 = tpu.matmul %264, %1, %cst_66 {dimension_numbers = #tpu.dot_dimension_numbers<[1], [0], [0], [1], [0, 0, 1, 1], [], []>} : vector<2x64xf32>, vector<64x256xf32>, vector<2x256xf32> -> vector<2x256xf32>
    %280 = arith.addf %278, %279 : vector<2x256xf32>
    %281 = vector.broadcast %2 : vector<1x256xf32> to vector<2x256xf32>
    %282 = arith.addf %280, %281 : vector<2x256xf32>
    %283 = vector.extract_strided_slice %282 {offsets = [0, 0], sizes = [2, 64], strides = [1, 1]} : vector<2x256xf32> to vector<2x64xf32>
    %284 = arith.negf %283 : vector<2x64xf32>
    %285 = math.exp %284 : vector<2x64xf32>
    %cst_67 = arith.constant 1.000000e+00 : f32
    %286 = vector.broadcast %cst_67 : f32 to vector<2x64xf32>
    %287 = arith.addf %286, %285 : vector<2x64xf32>
    %288 = arith.divf %286, %287 : vector<2x64xf32>
    %289 = vector.extract_strided_slice %282 {offsets = [0, 64], sizes = [2, 64], strides = [1, 1]} : vector<2x256xf32> to vector<2x64xf32>
    %290 = arith.negf %289 : vector<2x64xf32>
    %291 = math.exp %290 : vector<2x64xf32>
    %cst_68 = arith.constant 1.000000e+00 : f32
    %292 = vector.broadcast %cst_68 : f32 to vector<2x64xf32>
    %293 = arith.addf %292, %291 : vector<2x64xf32>
    %294 = arith.divf %292, %293 : vector<2x64xf32>
    %295 = vector.extract_strided_slice %282 {offsets = [0, 128], sizes = [2, 64], strides = [1, 1]} : vector<2x256xf32> to vector<2x64xf32>
    %296 = math.tanh %295 : vector<2x64xf32>
    %297 = vector.extract_strided_slice %282 {offsets = [0, 192], sizes = [2, 64], strides = [1, 1]} : vector<2x256xf32> to vector<2x64xf32>
    %298 = arith.negf %297 : vector<2x64xf32>
    %299 = math.exp %298 : vector<2x64xf32>
    %cst_69 = arith.constant 1.000000e+00 : f32
    %300 = vector.broadcast %cst_69 : f32 to vector<2x64xf32>
    %301 = arith.addf %300, %299 : vector<2x64xf32>
    %302 = arith.divf %300, %301 : vector<2x64xf32>
    %303 = arith.mulf %294, %262 : vector<2x64xf32>
    %304 = arith.mulf %288, %296 : vector<2x64xf32>
    %305 = arith.addf %303, %304 : vector<2x64xf32>
    %306 = math.tanh %305 : vector<2x64xf32>
    %307 = arith.mulf %302, %306 : vector<2x64xf32>
    %c7_i32_70 = arith.constant 7 : i32
    %308 = arith.index_cast %c7_i32_70 : i32 to index
    %c0_71 = arith.constant 0 : index
    %c0_72 = arith.constant 0 : index
    %309 = vector.load %arg0[%308, %c0_71, %c0_72] : memref<8x2x1xf32, #tpu.memory_space<vmem>>, vector<1x2x1xf32>
    %310 = vector.shape_cast %309 : vector<1x2x1xf32> to vector<2x1xf32>
    %c7_i32_73 = arith.constant 7 : i32
    %311 = arith.subi %c7_i32_73, %c7_i32_70 : i32
    %312 = arith.index_cast %311 : i32 to index
    %c0_74 = arith.constant 0 : index
    %c0_75 = arith.constant 0 : index
    %313 = vector.load %arg0[%312, %c0_74, %c0_75] : memref<8x2x1xf32, #tpu.memory_space<vmem>>, vector<1x2x1xf32>
    %314 = vector.shape_cast %313 : vector<1x2x1xf32> to vector<2x1xf32>
    %315 = vector.broadcast %310 : vector<2x1xf32> to vector<2x256xf32>
    %316 = vector.broadcast %3 : vector<1x256xf32> to vector<2x256xf32>
    %317 = arith.mulf %315, %316 : vector<2x256xf32>
    %318 = vector.broadcast %314 : vector<2x1xf32> to vector<2x256xf32>
    %319 = vector.broadcast %4 : vector<1x256xf32> to vector<2x256xf32>
    %320 = arith.mulf %318, %319 : vector<2x256xf32>
    %321 = arith.addf %317, %320 : vector<2x256xf32>
    %cst_76 = arith.constant dense<0.000000e+00> : vector<2x256xf32>
    %322 = tpu.matmul %307, %1, %cst_76 {dimension_numbers = #tpu.dot_dimension_numbers<[1], [0], [0], [1], [0, 0, 1, 1], [], []>} : vector<2x64xf32>, vector<64x256xf32>, vector<2x256xf32> -> vector<2x256xf32>
    %323 = arith.addf %321, %322 : vector<2x256xf32>
    %324 = vector.broadcast %2 : vector<1x256xf32> to vector<2x256xf32>
    %325 = arith.addf %323, %324 : vector<2x256xf32>
    %326 = vector.extract_strided_slice %325 {offsets = [0, 0], sizes = [2, 64], strides = [1, 1]} : vector<2x256xf32> to vector<2x64xf32>
    %327 = arith.negf %326 : vector<2x64xf32>
    %328 = math.exp %327 : vector<2x64xf32>
    %cst_77 = arith.constant 1.000000e+00 : f32
    %329 = vector.broadcast %cst_77 : f32 to vector<2x64xf32>
    %330 = arith.addf %329, %328 : vector<2x64xf32>
    %331 = arith.divf %329, %330 : vector<2x64xf32>
    %332 = vector.extract_strided_slice %325 {offsets = [0, 64], sizes = [2, 64], strides = [1, 1]} : vector<2x256xf32> to vector<2x64xf32>
    %333 = arith.negf %332 : vector<2x64xf32>
    %334 = math.exp %333 : vector<2x64xf32>
    %cst_78 = arith.constant 1.000000e+00 : f32
    %335 = vector.broadcast %cst_78 : f32 to vector<2x64xf32>
    %336 = arith.addf %335, %334 : vector<2x64xf32>
    %337 = arith.divf %335, %336 : vector<2x64xf32>
    %338 = vector.extract_strided_slice %325 {offsets = [0, 128], sizes = [2, 64], strides = [1, 1]} : vector<2x256xf32> to vector<2x64xf32>
    %339 = math.tanh %338 : vector<2x64xf32>
    %340 = vector.extract_strided_slice %325 {offsets = [0, 192], sizes = [2, 64], strides = [1, 1]} : vector<2x256xf32> to vector<2x64xf32>
    %341 = arith.negf %340 : vector<2x64xf32>
    %342 = math.exp %341 : vector<2x64xf32>
    %cst_79 = arith.constant 1.000000e+00 : f32
    %343 = vector.broadcast %cst_79 : f32 to vector<2x64xf32>
    %344 = arith.addf %343, %342 : vector<2x64xf32>
    %345 = arith.divf %343, %344 : vector<2x64xf32>
    %346 = arith.mulf %337, %305 : vector<2x64xf32>
    %347 = arith.mulf %331, %339 : vector<2x64xf32>
    %348 = arith.addf %346, %347 : vector<2x64xf32>
    %349 = math.tanh %348 : vector<2x64xf32>
    %350 = arith.mulf %345, %349 : vector<2x64xf32>
    %c8_i32 = arith.constant 8 : i32
    %c0_80 = arith.constant 0 : index
    %c0_81 = arith.constant 0 : index
    %351 = vector.load %arg6[%c0_80, %c0_81] : memref<2x64xf32, #tpu.memory_space<vmem>>, vector<2x64xf32>
    tpu.vector_store %arg6[%c0_80, %c0_81], %350 {strides = array<i32>} : memref<2x64xf32, #tpu.memory_space<vmem>>, vector<2x64xf32>,
    %c0_82 = arith.constant 0 : index
    %c0_83 = arith.constant 0 : index
    %352 = vector.load %arg7[%c0_82, %c0_83] : memref<2x64xf32, #tpu.memory_space<vmem>>, vector<2x64xf32>
    tpu.vector_store %arg7[%c0_82, %c0_83], %348 {strides = array<i32>} : memref<2x64xf32, #tpu.memory_space<vmem>>, vector<2x64xf32>,
    return
  }
}

module attributes {stable_mosaic.version = 11 : i64} {
  func.func @kernel(%arg0: memref<1x2x64xf32, #tpu.memory_space<vmem>>, %arg1: memref<1x2x64xf32, #tpu.memory_space<vmem>>, %arg2: memref<1x256xf32, #tpu.memory_space<vmem>>, %arg3: memref<64x256xf32, #tpu.memory_space<vmem>>, %arg4: memref<1x256xf32, #tpu.memory_space<vmem>>, %arg5: memref<64x16xf32, #tpu.memory_space<vmem>>, %arg6: memref<1x16xf32, #tpu.memory_space<vmem>>, %arg7: memref<6x2x16xf32, #tpu.memory_space<vmem>>) attributes {dimension_semantics = [], scalar_prefetch = 0 : i64, scratch_operands = 0 : i64, tpu.core_type = #tpu.core_type<tc>} {
    %c0 = arith.constant 0 : index
    %c0_0 = arith.constant 0 : index
    %0 = vector.load %arg2[%c0, %c0_0] : memref<1x256xf32, #tpu.memory_space<vmem>>, vector<1x256xf32>
    %c0_1 = arith.constant 0 : index
    %c0_2 = arith.constant 0 : index
    %1 = vector.load %arg3[%c0_1, %c0_2] : memref<64x256xf32, #tpu.memory_space<vmem>>, vector<64x256xf32>
    %c0_3 = arith.constant 0 : index
    %c0_4 = arith.constant 0 : index
    %2 = vector.load %arg4[%c0_3, %c0_4] : memref<1x256xf32, #tpu.memory_space<vmem>>, vector<1x256xf32>
    %c0_5 = arith.constant 0 : index
    %c0_6 = arith.constant 0 : index
    %3 = vector.load %arg5[%c0_5, %c0_6] : memref<64x16xf32, #tpu.memory_space<vmem>>, vector<64x16xf32>
    %c0_7 = arith.constant 0 : index
    %c0_8 = arith.constant 0 : index
    %4 = vector.load %arg6[%c0_7, %c0_8] : memref<1x16xf32, #tpu.memory_space<vmem>>, vector<1x16xf32>
    %5 = tpu.iota {dimensions = array<i32: 1>} : vector<2x16xi32>
    %c3_i32 = arith.constant 3 : i32
    %6 = vector.broadcast %c3_i32 : i32 to vector<2x16xi32>
    %7 = arith.cmpi eq, %5, %6 : vector<2x16xi32>
    %8 = arith.extui %7 : vector<2x16xi1> to vector<2x16xi32>
    %9 = arith.sitofp %8 : vector<2x16xi32> to vector<2x16xf32>
    %c0_9 = arith.constant 0 : index
    %c0_10 = arith.constant 0 : index
    %c0_11 = arith.constant 0 : index
    %10 = vector.load %arg0[%c0_9, %c0_10, %c0_11] : memref<1x2x64xf32, #tpu.memory_space<vmem>>, vector<1x2x64xf32>
    %11 = vector.shape_cast %10 : vector<1x2x64xf32> to vector<2x64xf32>
    %c0_12 = arith.constant 0 : index
    %c0_13 = arith.constant 0 : index
    %c0_14 = arith.constant 0 : index
    %12 = vector.load %arg1[%c0_12, %c0_13, %c0_14] : memref<1x2x64xf32, #tpu.memory_space<vmem>>, vector<1x2x64xf32>
    %13 = vector.shape_cast %12 : vector<1x2x64xf32> to vector<2x64xf32>
    %cst = arith.constant 4.000000e+00 : f32
    %14 = vector.broadcast %cst : f32 to vector<2x1xf32>
    %false = arith.constant false
    %15 = vector.broadcast %false : i1 to vector<2x1xi1>
    %c0_i32 = arith.constant 0 : i32
    %16 = vector.broadcast %14 : vector<2x1xf32> to vector<2x256xf32>
    %17 = vector.broadcast %0 : vector<1x256xf32> to vector<2x256xf32>
    %18 = arith.mulf %16, %17 : vector<2x256xf32>
    %cst_15 = arith.constant dense<0.000000e+00> : vector<2x256xf32>
    %19 = tpu.matmul %11, %1, %cst_15 {dimension_numbers = #tpu.dot_dimension_numbers<[1], [0], [0], [1], [0, 0, 1, 1], [], []>} : vector<2x64xf32>, vector<64x256xf32>, vector<2x256xf32> -> vector<2x256xf32>
    %20 = arith.addf %18, %19 : vector<2x256xf32>
    %21 = vector.broadcast %2 : vector<1x256xf32> to vector<2x256xf32>
    %22 = arith.addf %20, %21 : vector<2x256xf32>
    %23 = vector.extract_strided_slice %22 {offsets = [0, 0], sizes = [2, 64], strides = [1, 1]} : vector<2x256xf32> to vector<2x64xf32>
    %24 = arith.negf %23 : vector<2x64xf32>
    %25 = math.exp %24 : vector<2x64xf32>
    %cst_16 = arith.constant 1.000000e+00 : f32
    %26 = vector.broadcast %cst_16 : f32 to vector<2x64xf32>
    %27 = arith.addf %26, %25 : vector<2x64xf32>
    %28 = arith.divf %26, %27 : vector<2x64xf32>
    %29 = vector.extract_strided_slice %22 {offsets = [0, 64], sizes = [2, 64], strides = [1, 1]} : vector<2x256xf32> to vector<2x64xf32>
    %30 = arith.negf %29 : vector<2x64xf32>
    %31 = math.exp %30 : vector<2x64xf32>
    %cst_17 = arith.constant 1.000000e+00 : f32
    %32 = vector.broadcast %cst_17 : f32 to vector<2x64xf32>
    %33 = arith.addf %32, %31 : vector<2x64xf32>
    %34 = arith.divf %32, %33 : vector<2x64xf32>
    %35 = vector.extract_strided_slice %22 {offsets = [0, 128], sizes = [2, 64], strides = [1, 1]} : vector<2x256xf32> to vector<2x64xf32>
    %36 = math.tanh %35 : vector<2x64xf32>
    %37 = vector.extract_strided_slice %22 {offsets = [0, 192], sizes = [2, 64], strides = [1, 1]} : vector<2x256xf32> to vector<2x64xf32>
    %38 = arith.negf %37 : vector<2x64xf32>
    %39 = math.exp %38 : vector<2x64xf32>
    %cst_18 = arith.constant 1.000000e+00 : f32
    %40 = vector.broadcast %cst_18 : f32 to vector<2x64xf32>
    %41 = arith.addf %40, %39 : vector<2x64xf32>
    %42 = arith.divf %40, %41 : vector<2x64xf32>
    %43 = arith.mulf %34, %13 : vector<2x64xf32>
    %44 = arith.mulf %28, %36 : vector<2x64xf32>
    %45 = arith.addf %43, %44 : vector<2x64xf32>
    %46 = math.tanh %45 : vector<2x64xf32>
    %47 = arith.mulf %42, %46 : vector<2x64xf32>
    %cst_19 = arith.constant dense<0.000000e+00> : vector<2x16xf32>
    %48 = tpu.matmul %47, %3, %cst_19 {dimension_numbers = #tpu.dot_dimension_numbers<[1], [0], [0], [1], [0, 0, 1, 1], [], []>} : vector<2x64xf32>, vector<64x16xf32>, vector<2x16xf32> -> vector<2x16xf32>
    %49 = vector.broadcast %4 : vector<1x16xf32> to vector<2x16xf32>
    %50 = arith.addf %48, %49 : vector<2x16xf32>
    %cst_20 = arith.constant dense<0xFF800000> : vector<2xf32>
    %51 = vector.multi_reduction <maximumf>, %50, %cst_20 [1] : vector<2x16xf32> to vector<2xf32>
    %52 = vector.shape_cast %51 : vector<2xf32> to vector<2x1xf32>
    %53 = vector.broadcast %52 : vector<2x1xf32> to vector<2x16xf32>
    %54 = arith.cmpf oeq, %50, %53 : vector<2x16xf32>
    %c16_i32 = arith.constant 16 : i32
    %55 = vector.broadcast %c16_i32 : i32 to vector<2x16xi32>
    %56 = arith.select %54, %5, %55 : vector<2x16xi1>, vector<2x16xi32>
    %cst_21 = arith.constant dense<2147483647> : vector<2xi32>
    %57 = vector.multi_reduction <minsi>, %56, %cst_21 [1] : vector<2x16xi32> to vector<2xi32>
    %58 = vector.shape_cast %57 : vector<2xi32> to vector<2x1xi32>
    %c3_i32_22 = arith.constant 3 : i32
    %59 = vector.broadcast %c3_i32_22 : i32 to vector<2x1xi32>
    %60 = arith.cmpi eq, %58, %59 : vector<2x1xi32>
    %61 = arith.ori %15, %60 : vector<2x1xi1>
    %62 = arith.mulf %50, %9 : vector<2x16xf32>
    %63 = vector.shape_cast %61 : vector<2x1xi1> to vector<2x1xi1>
    %64 = vector.broadcast %63 : vector<2x1xi1> to vector<2x16xi1>
    %65 = arith.select %64, %62, %50 : vector<2x16xi1>, vector<2x16xf32>
    %66 = arith.index_cast %c0_i32 : i32 to index
    %c0_23 = arith.constant 0 : index
    %c0_24 = arith.constant 0 : index
    %67 = vector.load %arg7[%66, %c0_23, %c0_24] : memref<6x2x16xf32, #tpu.memory_space<vmem>>, vector<1x2x16xf32>
    %68 = vector.shape_cast %67 : vector<1x2x16xf32> to vector<2x16xf32>
    %69 = vector.shape_cast %65 : vector<2x16xf32> to vector<1x2x16xf32>
    tpu.vector_store %arg7[%66, %c0_23, %c0_24], %69 {strides = array<i32>} : memref<6x2x16xf32, #tpu.memory_space<vmem>>, vector<1x2x16xf32>,
    %70 = arith.sitofp %58 : vector<2x1xi32> to vector<2x1xf32>
    %c1_i32 = arith.constant 1 : i32
    %71 = vector.broadcast %70 : vector<2x1xf32> to vector<2x256xf32>
    %72 = vector.broadcast %0 : vector<1x256xf32> to vector<2x256xf32>
    %73 = arith.mulf %71, %72 : vector<2x256xf32>
    %cst_25 = arith.constant dense<0.000000e+00> : vector<2x256xf32>
    %74 = tpu.matmul %47, %1, %cst_25 {dimension_numbers = #tpu.dot_dimension_numbers<[1], [0], [0], [1], [0, 0, 1, 1], [], []>} : vector<2x64xf32>, vector<64x256xf32>, vector<2x256xf32> -> vector<2x256xf32>
    %75 = arith.addf %73, %74 : vector<2x256xf32>
    %76 = vector.broadcast %2 : vector<1x256xf32> to vector<2x256xf32>
    %77 = arith.addf %75, %76 : vector<2x256xf32>
    %78 = vector.extract_strided_slice %77 {offsets = [0, 0], sizes = [2, 64], strides = [1, 1]} : vector<2x256xf32> to vector<2x64xf32>
    %79 = arith.negf %78 : vector<2x64xf32>
    %80 = math.exp %79 : vector<2x64xf32>
    %cst_26 = arith.constant 1.000000e+00 : f32
    %81 = vector.broadcast %cst_26 : f32 to vector<2x64xf32>
    %82 = arith.addf %81, %80 : vector<2x64xf32>
    %83 = arith.divf %81, %82 : vector<2x64xf32>
    %84 = vector.extract_strided_slice %77 {offsets = [0, 64], sizes = [2, 64], strides = [1, 1]} : vector<2x256xf32> to vector<2x64xf32>
    %85 = arith.negf %84 : vector<2x64xf32>
    %86 = math.exp %85 : vector<2x64xf32>
    %cst_27 = arith.constant 1.000000e+00 : f32
    %87 = vector.broadcast %cst_27 : f32 to vector<2x64xf32>
    %88 = arith.addf %87, %86 : vector<2x64xf32>
    %89 = arith.divf %87, %88 : vector<2x64xf32>
    %90 = vector.extract_strided_slice %77 {offsets = [0, 128], sizes = [2, 64], strides = [1, 1]} : vector<2x256xf32> to vector<2x64xf32>
    %91 = math.tanh %90 : vector<2x64xf32>
    %92 = vector.extract_strided_slice %77 {offsets = [0, 192], sizes = [2, 64], strides = [1, 1]} : vector<2x256xf32> to vector<2x64xf32>
    %93 = arith.negf %92 : vector<2x64xf32>
    %94 = math.exp %93 : vector<2x64xf32>
    %cst_28 = arith.constant 1.000000e+00 : f32
    %95 = vector.broadcast %cst_28 : f32 to vector<2x64xf32>
    %96 = arith.addf %95, %94 : vector<2x64xf32>
    %97 = arith.divf %95, %96 : vector<2x64xf32>
    %98 = arith.mulf %89, %45 : vector<2x64xf32>
    %99 = arith.mulf %83, %91 : vector<2x64xf32>
    %100 = arith.addf %98, %99 : vector<2x64xf32>
    %101 = math.tanh %100 : vector<2x64xf32>
    %102 = arith.mulf %97, %101 : vector<2x64xf32>
    %cst_29 = arith.constant dense<0.000000e+00> : vector<2x16xf32>
    %103 = tpu.matmul %102, %3, %cst_29 {dimension_numbers = #tpu.dot_dimension_numbers<[1], [0], [0], [1], [0, 0, 1, 1], [], []>} : vector<2x64xf32>, vector<64x16xf32>, vector<2x16xf32> -> vector<2x16xf32>
    %104 = vector.broadcast %4 : vector<1x16xf32> to vector<2x16xf32>
    %105 = arith.addf %103, %104 : vector<2x16xf32>
    %cst_30 = arith.constant dense<0xFF800000> : vector<2xf32>
    %106 = vector.multi_reduction <maximumf>, %105, %cst_30 [1] : vector<2x16xf32> to vector<2xf32>
    %107 = vector.shape_cast %106 : vector<2xf32> to vector<2x1xf32>
    %108 = vector.broadcast %107 : vector<2x1xf32> to vector<2x16xf32>
    %109 = arith.cmpf oeq, %105, %108 : vector<2x16xf32>
    %c16_i32_31 = arith.constant 16 : i32
    %110 = vector.broadcast %c16_i32_31 : i32 to vector<2x16xi32>
    %111 = arith.select %109, %5, %110 : vector<2x16xi1>, vector<2x16xi32>
    %cst_32 = arith.constant dense<2147483647> : vector<2xi32>
    %112 = vector.multi_reduction <minsi>, %111, %cst_32 [1] : vector<2x16xi32> to vector<2xi32>
    %113 = vector.shape_cast %112 : vector<2xi32> to vector<2x1xi32>
    %c3_i32_33 = arith.constant 3 : i32
    %114 = vector.broadcast %c3_i32_33 : i32 to vector<2x1xi32>
    %115 = arith.cmpi eq, %113, %114 : vector<2x1xi32>
    %116 = arith.ori %61, %115 : vector<2x1xi1>
    %117 = arith.mulf %105, %9 : vector<2x16xf32>
    %118 = vector.shape_cast %116 : vector<2x1xi1> to vector<2x1xi1>
    %119 = vector.broadcast %118 : vector<2x1xi1> to vector<2x16xi1>
    %120 = arith.select %119, %117, %105 : vector<2x16xi1>, vector<2x16xf32>
    %121 = arith.index_cast %c1_i32 : i32 to index
    %c0_34 = arith.constant 0 : index
    %c0_35 = arith.constant 0 : index
    %122 = vector.load %arg7[%121, %c0_34, %c0_35] : memref<6x2x16xf32, #tpu.memory_space<vmem>>, vector<1x2x16xf32>
    %123 = vector.shape_cast %122 : vector<1x2x16xf32> to vector<2x16xf32>
    %124 = vector.shape_cast %120 : vector<2x16xf32> to vector<1x2x16xf32>
    tpu.vector_store %arg7[%121, %c0_34, %c0_35], %124 {strides = array<i32>} : memref<6x2x16xf32, #tpu.memory_space<vmem>>, vector<1x2x16xf32>,
    %125 = arith.sitofp %113 : vector<2x1xi32> to vector<2x1xf32>
    %c2_i32 = arith.constant 2 : i32
    %126 = vector.broadcast %125 : vector<2x1xf32> to vector<2x256xf32>
    %127 = vector.broadcast %0 : vector<1x256xf32> to vector<2x256xf32>
    %128 = arith.mulf %126, %127 : vector<2x256xf32>
    %cst_36 = arith.constant dense<0.000000e+00> : vector<2x256xf32>
    %129 = tpu.matmul %102, %1, %cst_36 {dimension_numbers = #tpu.dot_dimension_numbers<[1], [0], [0], [1], [0, 0, 1, 1], [], []>} : vector<2x64xf32>, vector<64x256xf32>, vector<2x256xf32> -> vector<2x256xf32>
    %130 = arith.addf %128, %129 : vector<2x256xf32>
    %131 = vector.broadcast %2 : vector<1x256xf32> to vector<2x256xf32>
    %132 = arith.addf %130, %131 : vector<2x256xf32>
    %133 = vector.extract_strided_slice %132 {offsets = [0, 0], sizes = [2, 64], strides = [1, 1]} : vector<2x256xf32> to vector<2x64xf32>
    %134 = arith.negf %133 : vector<2x64xf32>
    %135 = math.exp %134 : vector<2x64xf32>
    %cst_37 = arith.constant 1.000000e+00 : f32
    %136 = vector.broadcast %cst_37 : f32 to vector<2x64xf32>
    %137 = arith.addf %136, %135 : vector<2x64xf32>
    %138 = arith.divf %136, %137 : vector<2x64xf32>
    %139 = vector.extract_strided_slice %132 {offsets = [0, 64], sizes = [2, 64], strides = [1, 1]} : vector<2x256xf32> to vector<2x64xf32>
    %140 = arith.negf %139 : vector<2x64xf32>
    %141 = math.exp %140 : vector<2x64xf32>
    %cst_38 = arith.constant 1.000000e+00 : f32
    %142 = vector.broadcast %cst_38 : f32 to vector<2x64xf32>
    %143 = arith.addf %142, %141 : vector<2x64xf32>
    %144 = arith.divf %142, %143 : vector<2x64xf32>
    %145 = vector.extract_strided_slice %132 {offsets = [0, 128], sizes = [2, 64], strides = [1, 1]} : vector<2x256xf32> to vector<2x64xf32>
    %146 = math.tanh %145 : vector<2x64xf32>
    %147 = vector.extract_strided_slice %132 {offsets = [0, 192], sizes = [2, 64], strides = [1, 1]} : vector<2x256xf32> to vector<2x64xf32>
    %148 = arith.negf %147 : vector<2x64xf32>
    %149 = math.exp %148 : vector<2x64xf32>
    %cst_39 = arith.constant 1.000000e+00 : f32
    %150 = vector.broadcast %cst_39 : f32 to vector<2x64xf32>
    %151 = arith.addf %150, %149 : vector<2x64xf32>
    %152 = arith.divf %150, %151 : vector<2x64xf32>
    %153 = arith.mulf %144, %100 : vector<2x64xf32>
    %154 = arith.mulf %138, %146 : vector<2x64xf32>
    %155 = arith.addf %153, %154 : vector<2x64xf32>
    %156 = math.tanh %155 : vector<2x64xf32>
    %157 = arith.mulf %152, %156 : vector<2x64xf32>
    %cst_40 = arith.constant dense<0.000000e+00> : vector<2x16xf32>
    %158 = tpu.matmul %157, %3, %cst_40 {dimension_numbers = #tpu.dot_dimension_numbers<[1], [0], [0], [1], [0, 0, 1, 1], [], []>} : vector<2x64xf32>, vector<64x16xf32>, vector<2x16xf32> -> vector<2x16xf32>
    %159 = vector.broadcast %4 : vector<1x16xf32> to vector<2x16xf32>
    %160 = arith.addf %158, %159 : vector<2x16xf32>
    %cst_41 = arith.constant dense<0xFF800000> : vector<2xf32>
    %161 = vector.multi_reduction <maximumf>, %160, %cst_41 [1] : vector<2x16xf32> to vector<2xf32>
    %162 = vector.shape_cast %161 : vector<2xf32> to vector<2x1xf32>
    %163 = vector.broadcast %162 : vector<2x1xf32> to vector<2x16xf32>
    %164 = arith.cmpf oeq, %160, %163 : vector<2x16xf32>
    %c16_i32_42 = arith.constant 16 : i32
    %165 = vector.broadcast %c16_i32_42 : i32 to vector<2x16xi32>
    %166 = arith.select %164, %5, %165 : vector<2x16xi1>, vector<2x16xi32>
    %cst_43 = arith.constant dense<2147483647> : vector<2xi32>
    %167 = vector.multi_reduction <minsi>, %166, %cst_43 [1] : vector<2x16xi32> to vector<2xi32>
    %168 = vector.shape_cast %167 : vector<2xi32> to vector<2x1xi32>
    %c3_i32_44 = arith.constant 3 : i32
    %169 = vector.broadcast %c3_i32_44 : i32 to vector<2x1xi32>
    %170 = arith.cmpi eq, %168, %169 : vector<2x1xi32>
    %171 = arith.ori %116, %170 : vector<2x1xi1>
    %172 = arith.mulf %160, %9 : vector<2x16xf32>
    %173 = vector.shape_cast %171 : vector<2x1xi1> to vector<2x1xi1>
    %174 = vector.broadcast %173 : vector<2x1xi1> to vector<2x16xi1>
    %175 = arith.select %174, %172, %160 : vector<2x16xi1>, vector<2x16xf32>
    %176 = arith.index_cast %c2_i32 : i32 to index
    %c0_45 = arith.constant 0 : index
    %c0_46 = arith.constant 0 : index
    %177 = vector.load %arg7[%176, %c0_45, %c0_46] : memref<6x2x16xf32, #tpu.memory_space<vmem>>, vector<1x2x16xf32>
    %178 = vector.shape_cast %177 : vector<1x2x16xf32> to vector<2x16xf32>
    %179 = vector.shape_cast %175 : vector<2x16xf32> to vector<1x2x16xf32>
    tpu.vector_store %arg7[%176, %c0_45, %c0_46], %179 {strides = array<i32>} : memref<6x2x16xf32, #tpu.memory_space<vmem>>, vector<1x2x16xf32>,
    %180 = arith.sitofp %168 : vector<2x1xi32> to vector<2x1xf32>
    %c3_i32_47 = arith.constant 3 : i32
    %181 = vector.broadcast %180 : vector<2x1xf32> to vector<2x256xf32>
    %182 = vector.broadcast %0 : vector<1x256xf32> to vector<2x256xf32>
    %183 = arith.mulf %181, %182 : vector<2x256xf32>
    %cst_48 = arith.constant dense<0.000000e+00> : vector<2x256xf32>
    %184 = tpu.matmul %157, %1, %cst_48 {dimension_numbers = #tpu.dot_dimension_numbers<[1], [0], [0], [1], [0, 0, 1, 1], [], []>} : vector<2x64xf32>, vector<64x256xf32>, vector<2x256xf32> -> vector<2x256xf32>
    %185 = arith.addf %183, %184 : vector<2x256xf32>
    %186 = vector.broadcast %2 : vector<1x256xf32> to vector<2x256xf32>
    %187 = arith.addf %185, %186 : vector<2x256xf32>
    %188 = vector.extract_strided_slice %187 {offsets = [0, 0], sizes = [2, 64], strides = [1, 1]} : vector<2x256xf32> to vector<2x64xf32>
    %189 = arith.negf %188 : vector<2x64xf32>
    %190 = math.exp %189 : vector<2x64xf32>
    %cst_49 = arith.constant 1.000000e+00 : f32
    %191 = vector.broadcast %cst_49 : f32 to vector<2x64xf32>
    %192 = arith.addf %191, %190 : vector<2x64xf32>
    %193 = arith.divf %191, %192 : vector<2x64xf32>
    %194 = vector.extract_strided_slice %187 {offsets = [0, 64], sizes = [2, 64], strides = [1, 1]} : vector<2x256xf32> to vector<2x64xf32>
    %195 = arith.negf %194 : vector<2x64xf32>
    %196 = math.exp %195 : vector<2x64xf32>
    %cst_50 = arith.constant 1.000000e+00 : f32
    %197 = vector.broadcast %cst_50 : f32 to vector<2x64xf32>
    %198 = arith.addf %197, %196 : vector<2x64xf32>
    %199 = arith.divf %197, %198 : vector<2x64xf32>
    %200 = vector.extract_strided_slice %187 {offsets = [0, 128], sizes = [2, 64], strides = [1, 1]} : vector<2x256xf32> to vector<2x64xf32>
    %201 = math.tanh %200 : vector<2x64xf32>
    %202 = vector.extract_strided_slice %187 {offsets = [0, 192], sizes = [2, 64], strides = [1, 1]} : vector<2x256xf32> to vector<2x64xf32>
    %203 = arith.negf %202 : vector<2x64xf32>
    %204 = math.exp %203 : vector<2x64xf32>
    %cst_51 = arith.constant 1.000000e+00 : f32
    %205 = vector.broadcast %cst_51 : f32 to vector<2x64xf32>
    %206 = arith.addf %205, %204 : vector<2x64xf32>
    %207 = arith.divf %205, %206 : vector<2x64xf32>
    %208 = arith.mulf %199, %155 : vector<2x64xf32>
    %209 = arith.mulf %193, %201 : vector<2x64xf32>
    %210 = arith.addf %208, %209 : vector<2x64xf32>
    %211 = math.tanh %210 : vector<2x64xf32>
    %212 = arith.mulf %207, %211 : vector<2x64xf32>
    %cst_52 = arith.constant dense<0.000000e+00> : vector<2x16xf32>
    %213 = tpu.matmul %212, %3, %cst_52 {dimension_numbers = #tpu.dot_dimension_numbers<[1], [0], [0], [1], [0, 0, 1, 1], [], []>} : vector<2x64xf32>, vector<64x16xf32>, vector<2x16xf32> -> vector<2x16xf32>
    %214 = vector.broadcast %4 : vector<1x16xf32> to vector<2x16xf32>
    %215 = arith.addf %213, %214 : vector<2x16xf32>
    %cst_53 = arith.constant dense<0xFF800000> : vector<2xf32>
    %216 = vector.multi_reduction <maximumf>, %215, %cst_53 [1] : vector<2x16xf32> to vector<2xf32>
    %217 = vector.shape_cast %216 : vector<2xf32> to vector<2x1xf32>
    %218 = vector.broadcast %217 : vector<2x1xf32> to vector<2x16xf32>
    %219 = arith.cmpf oeq, %215, %218 : vector<2x16xf32>
    %c16_i32_54 = arith.constant 16 : i32
    %220 = vector.broadcast %c16_i32_54 : i32 to vector<2x16xi32>
    %221 = arith.select %219, %5, %220 : vector<2x16xi1>, vector<2x16xi32>
    %cst_55 = arith.constant dense<2147483647> : vector<2xi32>
    %222 = vector.multi_reduction <minsi>, %221, %cst_55 [1] : vector<2x16xi32> to vector<2xi32>
    %223 = vector.shape_cast %222 : vector<2xi32> to vector<2x1xi32>
    %c3_i32_56 = arith.constant 3 : i32
    %224 = vector.broadcast %c3_i32_56 : i32 to vector<2x1xi32>
    %225 = arith.cmpi eq, %223, %224 : vector<2x1xi32>
    %226 = arith.ori %171, %225 : vector<2x1xi1>
    %227 = arith.mulf %215, %9 : vector<2x16xf32>
    %228 = vector.shape_cast %226 : vector<2x1xi1> to vector<2x1xi1>
    %229 = vector.broadcast %228 : vector<2x1xi1> to vector<2x16xi1>
    %230 = arith.select %229, %227, %215 : vector<2x16xi1>, vector<2x16xf32>
    %231 = arith.index_cast %c3_i32_47 : i32 to index
    %c0_57 = arith.constant 0 : index
    %c0_58 = arith.constant 0 : index
    %232 = vector.load %arg7[%231, %c0_57, %c0_58] : memref<6x2x16xf32, #tpu.memory_space<vmem>>, vector<1x2x16xf32>
    %233 = vector.shape_cast %232 : vector<1x2x16xf32> to vector<2x16xf32>
    %234 = vector.shape_cast %230 : vector<2x16xf32> to vector<1x2x16xf32>
    tpu.vector_store %arg7[%231, %c0_57, %c0_58], %234 {strides = array<i32>} : memref<6x2x16xf32, #tpu.memory_space<vmem>>, vector<1x2x16xf32>,
    %235 = arith.sitofp %223 : vector<2x1xi32> to vector<2x1xf32>
    %c4_i32 = arith.constant 4 : i32
    %236 = vector.broadcast %235 : vector<2x1xf32> to vector<2x256xf32>
    %237 = vector.broadcast %0 : vector<1x256xf32> to vector<2x256xf32>
    %238 = arith.mulf %236, %237 : vector<2x256xf32>
    %cst_59 = arith.constant dense<0.000000e+00> : vector<2x256xf32>
    %239 = tpu.matmul %212, %1, %cst_59 {dimension_numbers = #tpu.dot_dimension_numbers<[1], [0], [0], [1], [0, 0, 1, 1], [], []>} : vector<2x64xf32>, vector<64x256xf32>, vector<2x256xf32> -> vector<2x256xf32>
    %240 = arith.addf %238, %239 : vector<2x256xf32>
    %241 = vector.broadcast %2 : vector<1x256xf32> to vector<2x256xf32>
    %242 = arith.addf %240, %241 : vector<2x256xf32>
    %243 = vector.extract_strided_slice %242 {offsets = [0, 0], sizes = [2, 64], strides = [1, 1]} : vector<2x256xf32> to vector<2x64xf32>
    %244 = arith.negf %243 : vector<2x64xf32>
    %245 = math.exp %244 : vector<2x64xf32>
    %cst_60 = arith.constant 1.000000e+00 : f32
    %246 = vector.broadcast %cst_60 : f32 to vector<2x64xf32>
    %247 = arith.addf %246, %245 : vector<2x64xf32>
    %248 = arith.divf %246, %247 : vector<2x64xf32>
    %249 = vector.extract_strided_slice %242 {offsets = [0, 64], sizes = [2, 64], strides = [1, 1]} : vector<2x256xf32> to vector<2x64xf32>
    %250 = arith.negf %249 : vector<2x64xf32>
    %251 = math.exp %250 : vector<2x64xf32>
    %cst_61 = arith.constant 1.000000e+00 : f32
    %252 = vector.broadcast %cst_61 : f32 to vector<2x64xf32>
    %253 = arith.addf %252, %251 : vector<2x64xf32>
    %254 = arith.divf %252, %253 : vector<2x64xf32>
    %255 = vector.extract_strided_slice %242 {offsets = [0, 128], sizes = [2, 64], strides = [1, 1]} : vector<2x256xf32> to vector<2x64xf32>
    %256 = math.tanh %255 : vector<2x64xf32>
    %257 = vector.extract_strided_slice %242 {offsets = [0, 192], sizes = [2, 64], strides = [1, 1]} : vector<2x256xf32> to vector<2x64xf32>
    %258 = arith.negf %257 : vector<2x64xf32>
    %259 = math.exp %258 : vector<2x64xf32>
    %cst_62 = arith.constant 1.000000e+00 : f32
    %260 = vector.broadcast %cst_62 : f32 to vector<2x64xf32>
    %261 = arith.addf %260, %259 : vector<2x64xf32>
    %262 = arith.divf %260, %261 : vector<2x64xf32>
    %263 = arith.mulf %254, %210 : vector<2x64xf32>
    %264 = arith.mulf %248, %256 : vector<2x64xf32>
    %265 = arith.addf %263, %264 : vector<2x64xf32>
    %266 = math.tanh %265 : vector<2x64xf32>
    %267 = arith.mulf %262, %266 : vector<2x64xf32>
    %cst_63 = arith.constant dense<0.000000e+00> : vector<2x16xf32>
    %268 = tpu.matmul %267, %3, %cst_63 {dimension_numbers = #tpu.dot_dimension_numbers<[1], [0], [0], [1], [0, 0, 1, 1], [], []>} : vector<2x64xf32>, vector<64x16xf32>, vector<2x16xf32> -> vector<2x16xf32>
    %269 = vector.broadcast %4 : vector<1x16xf32> to vector<2x16xf32>
    %270 = arith.addf %268, %269 : vector<2x16xf32>
    %cst_64 = arith.constant dense<0xFF800000> : vector<2xf32>
    %271 = vector.multi_reduction <maximumf>, %270, %cst_64 [1] : vector<2x16xf32> to vector<2xf32>
    %272 = vector.shape_cast %271 : vector<2xf32> to vector<2x1xf32>
    %273 = vector.broadcast %272 : vector<2x1xf32> to vector<2x16xf32>
    %274 = arith.cmpf oeq, %270, %273 : vector<2x16xf32>
    %c16_i32_65 = arith.constant 16 : i32
    %275 = vector.broadcast %c16_i32_65 : i32 to vector<2x16xi32>
    %276 = arith.select %274, %5, %275 : vector<2x16xi1>, vector<2x16xi32>
    %cst_66 = arith.constant dense<2147483647> : vector<2xi32>
    %277 = vector.multi_reduction <minsi>, %276, %cst_66 [1] : vector<2x16xi32> to vector<2xi32>
    %278 = vector.shape_cast %277 : vector<2xi32> to vector<2x1xi32>
    %c3_i32_67 = arith.constant 3 : i32
    %279 = vector.broadcast %c3_i32_67 : i32 to vector<2x1xi32>
    %280 = arith.cmpi eq, %278, %279 : vector<2x1xi32>
    %281 = arith.ori %226, %280 : vector<2x1xi1>
    %282 = arith.mulf %270, %9 : vector<2x16xf32>
    %283 = vector.shape_cast %281 : vector<2x1xi1> to vector<2x1xi1>
    %284 = vector.broadcast %283 : vector<2x1xi1> to vector<2x16xi1>
    %285 = arith.select %284, %282, %270 : vector<2x16xi1>, vector<2x16xf32>
    %286 = arith.index_cast %c4_i32 : i32 to index
    %c0_68 = arith.constant 0 : index
    %c0_69 = arith.constant 0 : index
    %287 = vector.load %arg7[%286, %c0_68, %c0_69] : memref<6x2x16xf32, #tpu.memory_space<vmem>>, vector<1x2x16xf32>
    %288 = vector.shape_cast %287 : vector<1x2x16xf32> to vector<2x16xf32>
    %289 = vector.shape_cast %285 : vector<2x16xf32> to vector<1x2x16xf32>
    tpu.vector_store %arg7[%286, %c0_68, %c0_69], %289 {strides = array<i32>} : memref<6x2x16xf32, #tpu.memory_space<vmem>>, vector<1x2x16xf32>,
    %290 = arith.sitofp %278 : vector<2x1xi32> to vector<2x1xf32>
    %c5_i32 = arith.constant 5 : i32
    %291 = vector.broadcast %290 : vector<2x1xf32> to vector<2x256xf32>
    %292 = vector.broadcast %0 : vector<1x256xf32> to vector<2x256xf32>
    %293 = arith.mulf %291, %292 : vector<2x256xf32>
    %cst_70 = arith.constant dense<0.000000e+00> : vector<2x256xf32>
    %294 = tpu.matmul %267, %1, %cst_70 {dimension_numbers = #tpu.dot_dimension_numbers<[1], [0], [0], [1], [0, 0, 1, 1], [], []>} : vector<2x64xf32>, vector<64x256xf32>, vector<2x256xf32> -> vector<2x256xf32>
    %295 = arith.addf %293, %294 : vector<2x256xf32>
    %296 = vector.broadcast %2 : vector<1x256xf32> to vector<2x256xf32>
    %297 = arith.addf %295, %296 : vector<2x256xf32>
    %298 = vector.extract_strided_slice %297 {offsets = [0, 0], sizes = [2, 64], strides = [1, 1]} : vector<2x256xf32> to vector<2x64xf32>
    %299 = arith.negf %298 : vector<2x64xf32>
    %300 = math.exp %299 : vector<2x64xf32>
    %cst_71 = arith.constant 1.000000e+00 : f32
    %301 = vector.broadcast %cst_71 : f32 to vector<2x64xf32>
    %302 = arith.addf %301, %300 : vector<2x64xf32>
    %303 = arith.divf %301, %302 : vector<2x64xf32>
    %304 = vector.extract_strided_slice %297 {offsets = [0, 64], sizes = [2, 64], strides = [1, 1]} : vector<2x256xf32> to vector<2x64xf32>
    %305 = arith.negf %304 : vector<2x64xf32>
    %306 = math.exp %305 : vector<2x64xf32>
    %cst_72 = arith.constant 1.000000e+00 : f32
    %307 = vector.broadcast %cst_72 : f32 to vector<2x64xf32>
    %308 = arith.addf %307, %306 : vector<2x64xf32>
    %309 = arith.divf %307, %308 : vector<2x64xf32>
    %310 = vector.extract_strided_slice %297 {offsets = [0, 128], sizes = [2, 64], strides = [1, 1]} : vector<2x256xf32> to vector<2x64xf32>
    %311 = math.tanh %310 : vector<2x64xf32>
    %312 = vector.extract_strided_slice %297 {offsets = [0, 192], sizes = [2, 64], strides = [1, 1]} : vector<2x256xf32> to vector<2x64xf32>
    %313 = arith.negf %312 : vector<2x64xf32>
    %314 = math.exp %313 : vector<2x64xf32>
    %cst_73 = arith.constant 1.000000e+00 : f32
    %315 = vector.broadcast %cst_73 : f32 to vector<2x64xf32>
    %316 = arith.addf %315, %314 : vector<2x64xf32>
    %317 = arith.divf %315, %316 : vector<2x64xf32>
    %318 = arith.mulf %309, %265 : vector<2x64xf32>
    %319 = arith.mulf %303, %311 : vector<2x64xf32>
    %320 = arith.addf %318, %319 : vector<2x64xf32>
    %321 = math.tanh %320 : vector<2x64xf32>
    %322 = arith.mulf %317, %321 : vector<2x64xf32>
    %cst_74 = arith.constant dense<0.000000e+00> : vector<2x16xf32>
    %323 = tpu.matmul %322, %3, %cst_74 {dimension_numbers = #tpu.dot_dimension_numbers<[1], [0], [0], [1], [0, 0, 1, 1], [], []>} : vector<2x64xf32>, vector<64x16xf32>, vector<2x16xf32> -> vector<2x16xf32>
    %324 = vector.broadcast %4 : vector<1x16xf32> to vector<2x16xf32>
    %325 = arith.addf %323, %324 : vector<2x16xf32>
    %cst_75 = arith.constant dense<0xFF800000> : vector<2xf32>
    %326 = vector.multi_reduction <maximumf>, %325, %cst_75 [1] : vector<2x16xf32> to vector<2xf32>
    %327 = vector.shape_cast %326 : vector<2xf32> to vector<2x1xf32>
    %328 = vector.broadcast %327 : vector<2x1xf32> to vector<2x16xf32>
    %329 = arith.cmpf oeq, %325, %328 : vector<2x16xf32>
    %c16_i32_76 = arith.constant 16 : i32
    %330 = vector.broadcast %c16_i32_76 : i32 to vector<2x16xi32>
    %331 = arith.select %329, %5, %330 : vector<2x16xi1>, vector<2x16xi32>
    %cst_77 = arith.constant dense<2147483647> : vector<2xi32>
    %332 = vector.multi_reduction <minsi>, %331, %cst_77 [1] : vector<2x16xi32> to vector<2xi32>
    %333 = vector.shape_cast %332 : vector<2xi32> to vector<2x1xi32>
    %c3_i32_78 = arith.constant 3 : i32
    %334 = vector.broadcast %c3_i32_78 : i32 to vector<2x1xi32>
    %335 = arith.cmpi eq, %333, %334 : vector<2x1xi32>
    %336 = arith.ori %281, %335 : vector<2x1xi1>
    %337 = arith.mulf %325, %9 : vector<2x16xf32>
    %338 = vector.shape_cast %336 : vector<2x1xi1> to vector<2x1xi1>
    %339 = vector.broadcast %338 : vector<2x1xi1> to vector<2x16xi1>
    %340 = arith.select %339, %337, %325 : vector<2x16xi1>, vector<2x16xf32>
    %341 = arith.index_cast %c5_i32 : i32 to index
    %c0_79 = arith.constant 0 : index
    %c0_80 = arith.constant 0 : index
    %342 = vector.load %arg7[%341, %c0_79, %c0_80] : memref<6x2x16xf32, #tpu.memory_space<vmem>>, vector<1x2x16xf32>
    %343 = vector.shape_cast %342 : vector<1x2x16xf32> to vector<2x16xf32>
    %344 = vector.shape_cast %340 : vector<2x16xf32> to vector<1x2x16xf32>
    tpu.vector_store %arg7[%341, %c0_79, %c0_80], %344 {strides = array<i32>} : memref<6x2x16xf32, #tpu.memory_space<vmem>>, vector<1x2x16xf32>,
    %345 = arith.sitofp %333 : vector<2x1xi32> to vector<2x1xf32>
    %c6_i32 = arith.constant 6 : i32
    return
  }
}

</mosaic_0001>

<bundles_post_ra>
// kernel: _lambda_.2
= control target key start
LH: loop header
LB: loop body
LE: loop exit
PB: predicated region body
PF: predicated region fallthrough
CT: control target
= control target key end

     0   :  { %13 = vsyncpa [#allocation3], 0  ;;  %s1150_s27 = smov [#allocation2]   ;;  %s1151_s29 = smov 256   ;;  %s1548_s0 = inlined_call_operand.vmem [shape: f32[8,2,1], index: 0, kind: input, shape index: {}]   ;;  %s1549_s1 = inlined_call_operand.vmem [shape: f32[2,64], index: 1, kind: input, shape index: {}]   ;;  %s1550_s2 = inlined_call_operand.vmem [shape: f32[2,64], index: 2, kind: input, shape index: {}]   ;;  %s1551_s3 = inlined_call_operand.vmem [shape: f32[2,256], index: 3, kind: input, shape index: {}]   ;;  %s1552_s4 = inlined_call_operand.hbm [shape: f32[64,256], index: 4, kind: input, shape index: {}]   ;;  %s1553_s5 = inlined_call_operand.vmem [shape: f32[1,256], index: 5, kind: input, shape index: {}]   ;;  %s1554_s6 = inlined_call_operand.vmem [shape: f32[2,64], index: 6, kind: output, shape index: {0}]   ;;  %s1555_s7 = inlined_call_operand.vmem [shape: f32[2,64], index: 7, kind: output, shape index: {1}]  }
   0x1   :  { %s26_s26 = sshll.u32 %s1552_s4, 4  ;;  %s28_s28 = sshll.u32 %s1150_s27, 4  ;;  %s27_s26 = int_to_ptr.hbm [resolvable:$true] %s26_s26  ;;  %s29_s28 = int_to_ptr.vmem [resolvable:$true] %s28_s28 }
   0x2   :  { %s1152_s30 = smov 16  }
   0x3   :  { %34 = dma.hbm_to_vmem [thread:$0]  %s27_s26, 2048, %s29_s28, [#allocation3], %s1151_s29, %s1151_s29, %s1152_s30  }
   0x4   :  { %1148 = dma.done.wait [#allocation3], 2048  }
   0x5   :  { %1149 = vsyncadd [#allocation3], 4294965248  ;;  %v1153_v0 = vmov 0   ;;  %v61_v1 = vld [vmem:[%s1548_s0] sm:$0x3]  ;;  %v1201_v2 = vld [vmem:[#allocation2 + $0x70] sm:$0xff] }
   0x6   :  { %1025 = vset.pattern.permute.xlu0 %v1153_v0  ;;  %1026 = vset.pattern.permute.xlu2 %v1153_v0  ;;  %v1203_v3 = vld [vmem:[#allocation2 + $0x78] sm:$0xff]  ;;  %v1206_v4 = vld [vmem:[#allocation2 + $0x60] sm:$0xff]  ;;  %v1208_v5 = vld [vmem:[#allocation2 + $0x68] sm:$0xff]  ;;  %s1154_s13 = smov 64   ;;  %vm93_vm0 = vcmask 523264  }
   0x7   :  { %1027 = vset.pattern.permute.xlu1 %v1153_v0  ;;  %66 = vperm.xlu0 %1025, %v61_v1   ;;  %v1211_v6 = vld [vmem:[#allocation2 + $0x50] sm:$0xff]  ;;  %v1215_v7 = vld [vmem:[#allocation2 + $0x58] sm:$0xff]  ;;  %v1219_v8 = vld [vmem:[#allocation2 + $0x40] sm:$0xff] }
   0x8   :  { %105 = vmatpush.msra.mxu0 %v1201_v2  ;;  %125 = vmatpush.msra.mxu1 %v1203_v3  ;;  %v1223_v9 = vld [vmem:[#allocation2 + $0x48] sm:$0xff]  ;;  %v1230_v11 = vld [vmem:[#allocation2 + $0x30] sm:$0xff]  ;;  %v1234_v12 = vld [vmem:[#allocation2 + $0x38] sm:$0xff] }
   0x9   :  { %231 = vmatpush.msra.mxu2 %v1201_v2  ;;  %251 = vmatpush.msra.mxu3 %v1203_v3  ;;  %v981_v10 = vld [vmem:[%s1548_s0 + $0xe] sm:$0x3]  ;;  %v60_v13 = vld [vmem:[%s1550_s2] sm:$0x3]  ;;  %v1248_v16 = vld [vmem:[#allocation2 + $0x10] sm:$0xff] }
   0xa   :  { %106 = vmatpush.msra.mxu0 %v1206_v4  ;;  %126 = vmatpush.msra.mxu1 %v1208_v5  ;;  %v1241_v14 = vld [vmem:[#allocation2 + $0x20] sm:$0xff]  ;;  %v1245_v15 = vld [vmem:[#allocation2 + $0x28] sm:$0xff]  ;;  %v1252_v17 = vld [vmem:[#allocation2 + $0x18] sm:$0xff] }
   0xb   :  { %232 = vmatpush.msra.mxu2 %v1206_v4  ;;  %252 = vmatpush.msra.mxu3 %v1208_v5  ;;  %v1256_v18 = vld [vmem:[#allocation2] sm:$0xff]  ;;  %v1260_v19 = vld [vmem:[#allocation2 + $0x8] sm:$0xff] }
   0xc   :  { %107 = vmatpush.msra.mxu0 %v1211_v6  ;;  %127 = vmatpush.msra.mxu1 %v1215_v7  ;;  %v59_v20 = vld [vmem:[%s1549_s1] sm:$0x3]  ;;  %v987_v21 = vld [vmem:[%s1548_s0 + $0xc] sm:$0x3]  ;;  %v992_v22 = vld [vmem:[%s1548_s0 + $0x4] sm:$0x3] }
   0xd   :  { %233 = vmatpush.msra.mxu2 %v1211_v6  ;;  %253 = vmatpush.msra.mxu3 %v1215_v7  ;;  %v41_v23 = vld [vmem:[%s1551_s3] sm:$0xf] }
   0xe   :  { %108 = vmatpush.msra.mxu0 %v1219_v8  ;;  %128 = vmatpush.msra.mxu1 %v1223_v9  ;;  %v83_v24 = vperm.slane %v41_v23, 1  ;;  %v84_v25 = vperm.slane %v41_v23, 3  ;;  %v70_v27 = vperm.slane %v41_v23, 0  ;;  %v71_v28 = vperm.slane %v41_v23, 2  ;;  %v58_v42 = vld [vmem:[%s1553_s5] sm:$0x3] }
   0xf   :  { %186 = vrot.lane.b32.xlu1 %v60_v13, %s1154_s13  ;;  %80 = vperm.xlu0 %1025, %v981_v10   ;;  %v1355_v44 = vperm.slane %v58_v42, 0  ;;  %v1360_v56 = vperm.slane %v58_v42, 1 }
  0x10   :  { %109 = vmatpush.msra.mxu0 %v1230_v11  ;;  %129 = vmatpush.msra.mxu1 %v1234_v12  ;;  %v1334_v29 = vperm.slane %v83_v24, 1  ;;  %v1336_v30 = vperm.slane %v84_v25, 1  ;;  %v1338_v31 = vperm.slane %v70_v27, 0  ;;  %v1340_v32 = vperm.slane %v71_v28, 0 }
  0x11   :  { %234 = vmatpush.msra.mxu2 %v1219_v8  ;;  %254 = vmatpush.msra.mxu3 %v1223_v9 }
  0x12   :  { %110 = vmatpush.msra.mxu0 %v1241_v14  ;;  %130 = vmatpush.msra.mxu1 %v1245_v15 }
  0x13   :  { %235 = vmatpush.msra.mxu2 %v1230_v11  ;;  %255 = vmatpush.msra.mxu3 %v1234_v12 }
  0x14   :  { %111 = vmatpush.msra.mxu0 %v1248_v16  ;;  %131 = vmatpush.msra.mxu1 %v1252_v17 }
  0x15   :  { %236 = vmatpush.msra.mxu2 %v1241_v14  ;;  %256 = vmatpush.msra.mxu3 %v1245_v15 }
  0x16   :  { %112 = vmatpush.msra.mxu0 %v1256_v18  ;;  %132 = vmatpush.msra.mxu1 %v1260_v19 }
  0x17   :  { %982 = vmatmul.msk.f32.vlgmr.msra.gmra.mxu0 %vm93_vm0, %v59_v20  ;;  %983 = vmatmul.msk.f32.vlgmr.msra.gmra.mxu1 %vm93_vm0, %v59_v20 }
  0x18   :  { %211 = vperm.xlu0 %1025, %v987_v21   ;;  %237 = vmatpush.msra.mxu2 %v1248_v16 }
  0x19   :  { %257 = vmatpush.msra.mxu3 %v1252_v17  ;;  %348 = vmatpush.msrb.mxu0 %v1201_v2 }
  0x1a   :  { %368 = vmatpush.msrb.mxu1 %v1203_v3  ;;  %238 = vmatpush.msra.mxu2 %v1256_v18 }
  0x1b   :  { %258 = vmatpush.msra.mxu3 %v1260_v19  ;;  %349 = vmatpush.msrb.mxu0 %v1206_v4 }
  0x1c   :  { %369 = vmatpush.msrb.mxu1 %v1208_v5  ;;  %465 = vmatpush.msrb.mxu2 %v1201_v2 }
  0x1d   :  { %485 = vmatpush.msrb.mxu3 %v1203_v3  ;;  %350 = vmatpush.msrb.mxu0 %v1211_v6 }
  0x1e   :  { %370 = vmatpush.msrb.mxu1 %v1215_v7  ;;  %466 = vmatpush.msrb.mxu2 %v1206_v4 }
  0x1f   :  { %486 = vmatpush.msrb.mxu3 %v1208_v5  ;;  %351 = vmatpush.msrb.mxu0 %v1219_v8 }
  0x20   :  { %321 = vperm.xlu0 %1025, %v992_v22   ;;  %371 = vmatpush.msrb.mxu1 %v1223_v9 }
  0x21   :  { %467 = vmatpush.msrb.mxu2 %v1211_v6  ;;  %352 = vmatpush.msrb.mxu0 %v1230_v11 }
  0x22   :  { %487 = vmatpush.msrb.mxu3 %v1215_v7  ;;  %372 = vmatpush.msrb.mxu1 %v1234_v12 }
  0x23   :  { %468 = vmatpush.msrb.mxu2 %v1219_v8  ;;  %353 = vmatpush.msrb.mxu0 %v1241_v14 }
  0x24   :  { %488 = vmatpush.msrb.mxu3 %v1223_v9  ;;  %373 = vmatpush.msrb.mxu1 %v1245_v15 }
  0x25   :  { %469 = vmatpush.msrb.mxu2 %v1230_v11  ;;  %354 = vmatpush.msrb.mxu0 %v1248_v16 }
  0x26   :  { %489 = vmatpush.msrb.mxu3 %v1234_v12  ;;  %374 = vmatpush.msrb.mxu1 %v1252_v17 }
  0x27   :  { %470 = vmatpush.msrb.mxu2 %v1241_v14  ;;  %355 = vmatpush.msrb.mxu0 %v1256_v18 }
  0x28   :  { %490 = vmatpush.msrb.mxu3 %v1245_v15  ;;  %375 = vmatpush.msrb.mxu1 %v1260_v19 }
  0x29   :  { %471 = vmatpush.msrb.mxu2 %v1248_v16  ;;  %568 = vmatpush.msra.mxu0 %v1201_v2 }
  0x2a   :  { %491 = vmatpush.msrb.mxu3 %v1252_v17  ;;  %588 = vmatpush.msra.mxu1 %v1203_v3 }
  0x2b   :  { %472 = vmatpush.msrb.mxu2 %v1256_v18  ;;  %569 = vmatpush.msra.mxu0 %v1206_v4 }
  0x2c   :  { %492 = vmatpush.msrb.mxu3 %v1260_v19  ;;  %589 = vmatpush.msra.mxu1 %v1208_v5 }
  0x2d   :  { %570 = vmatpush.msra.mxu0 %v1211_v6 }
  0x2e   :  { %590 = vmatpush.msra.mxu1 %v1215_v7 }
  0x2f   :  { %571 = vmatpush.msra.mxu0 %v1219_v8 }
  0x30   :  { %591 = vmatpush.msra.mxu1 %v1223_v9 }
  0x31   :  { %572 = vmatpush.msra.mxu0 %v1230_v11 }
  0x32   :  { %592 = vmatpush.msra.mxu1 %v1234_v12 }
  0x33   :  { %573 = vmatpush.msra.mxu0 %v1241_v14 }
  0x34   :  { %593 = vmatpush.msra.mxu1 %v1245_v15 }
  0x35   :  { %574 = vmatpush.msra.mxu0 %v1248_v16 }
  0x36   :  { %594 = vmatpush.msra.mxu1 %v1252_v17 }
  0x37   :  { %575 = vmatpush.msra.mxu0 %v1256_v18 }
  0x38   :  { %595 = vmatpush.msra.mxu1 %v1260_v19 }
  0x79   :  { %v67_v26 = vpop.permute.xlu0 %66 }
  0x7a   :  { %v860_v33 = vmul.f32 %v1334_v29, %v67_v26  ;;  %v861_v34 = vmul.f32 %v1336_v30, %v67_v26  ;;  %v76_v40 = vmul.f32 %v1338_v31, %v67_v26  ;;  %v77_v49 = vmul.f32 %v1340_v32, %v67_v26 }
  0x81   :  { %v81_v35 = vpop.permute.xlu0 %80  ;;  %v187_v27 = vpop.permute.xlu1 %186 }
  0x82   :  { %v858_v36 = vmul.f32 %v81_v35, %v1338_v31  ;;  %v859_v37 = vmul.f32 %v81_v35, %v1340_v32  ;;  %v89_v41 = vmul.f32 %v1334_v29, %v81_v35  ;;  %v90_v50 = vmul.f32 %v1336_v30, %v81_v35 }
  0x84   :  { %v1346_v38 = vadd.f32 %v860_v33, %v858_v36  ;;  %v1348_v39 = vadd.f32 %v861_v34, %v859_v37  ;;  %v91_v43 = vadd.f32 %v89_v41, %v76_v40  ;;  %v92_v54 = vadd.f32 %v90_v50, %v77_v49 }
  0x94   :  { %v114_v45 = vpop.f32.mrf.mxu0  ;;  %v134_v53 = vpop.f32.mrf.mxu1 }
  0x95   :  { %v137_v46 = vadd.f32 %v114_v45, %v91_v43  ;;  %v138_v55 = vadd.f32 %v134_v53, %v92_v54 }
  0x97   :  { %v144_v47 = vadd.f32 %v1355_v44, %v137_v46  ;;  %v145_v58 = vadd.f32 %v1360_v56, %v138_v55 }
  0x99   :  { %v984_v48 = vmul.f32 -1.442695, %v144_v47  ;;  %v985_v22 = vmul.f32 -1.442695, %v145_v58 }
  0x9b   :  { %1028 = vpow2.f32 %v984_v48  ;;  %v986_v48 = vld [vmem:[%s1548_s0 + $0x2] sm:$0x3] }
  0xa1   :  { %v1029_v51 = vpop.eup %1028 }
  0xa2   :  { %v149_v52 = vadd.f32 1.0, %v1029_v51  ;;  %v1391_v51 = vpop.permute.xlu0 %211 }
  0xa3   :  { %v214_v53 = vmul.f32 %v1391_v51, %v1334_v29 }
  0xa4   :  { %1030 = vrcp.f32 %v149_v52  ;;  %v161_v61 = vand.u32 2147483648, %v149_v52  ;;  %v159_v63 = vand.u32 2147483647, %v149_v52  ;;  %vm155_vm2 = vweird.f32 %v149_v52 }
  0xa5   :  { %1032 = vtanh.f32 %v145_v58 }
  0xa6   :  { %v162_v1 = vor.u32 1.1754944e-38, %v161_v61  ;;  %vm160_vm4 = vcmp.eq.f32.partialorder %v159_v63, 8.507059e+37  ;;  %1034 = vpow2.f32 %v985_v22  ;;  %v215_v63 = vmul.f32 %v1391_v51, %v1336_v30 }
  0xaa   :  { %v1031_v57 = vpop.eup %1030 }
  0xab   :  { %v151_v59 = vmul.f32 %v1031_v57, %v149_v52  ;;  %vm156_vm1 = vweird.f32 %v1031_v57  ;;  %v1033_v13 = vpop.eup %1032 }
  0xac   :  { %vm157_vm3 = vmor %vm155_vm2, %vm156_vm1  ;;  %v1035_v23 = vpop.eup %1034 }
  0xad   :  { %v152_v60 = vsub.f32 1.0, %v151_v59  ;;  %v169_v24 = vadd.f32 1.0, %v1035_v23 }
  0xaf   :  { %v153_v62 = vmul.f32 %v1031_v57, %v152_v60  ;;  %1036 = vrcp.f32 %v169_v24  ;;  %v181_v40 = vand.u32 2147483648, %v169_v24  ;;  %vm175_vm6 = vweird.f32 %v169_v24 }
  0xb0   :  { %v179_v41 = vand.u32 2147483647, %v169_v24 }
  0xb1   :  { %v154_v0 = vadd.f32 %v1031_v57, %v153_v62  ;;  %v182_v43 = vor.u32 1.1754944e-38, %v181_v40 }
  0xb2   :  { %vm180_vm8 = vcmp.eq.f32.partialorder %v179_v41, 8.507059e+37 }
  0xb3   :  { %v158_v10 = vsel %vm157_vm3, %v1031_v57, %v154_v0 }
  0xb4   :  { %v163_v20 = vsel %vm160_vm4, %v162_v1, %v158_v10 }
  0xb5   :  { %v190_v21 = vmul.f32 %v1033_v13, %v163_v20  ;;  %v1037_v25 = vpop.eup %1036  ;;  %v189_v34 = vmul.f32 %v187_v27, %v163_v20 }
  0xb6   :  { %v171_v26 = vmul.f32 %v1037_v25, %v169_v24  ;;  %vm176_vm5 = vweird.f32 %v1037_v25 }
  0xb7   :  { %192 = vrot.lane.b32.xlu1 %v190_v21, %s1154_s13  ;;  %vm177_vm7 = vmor %vm175_vm6, %vm176_vm5 }
  0xb8   :  { %v172_v28 = vsub.f32 1.0, %v171_v26 }
  0xba   :  { %v173_v33 = vmul.f32 %v1037_v25, %v172_v28 }
  0xbc   :  { %v174_v37 = vadd.f32 %v1037_v25, %v173_v33 }
  0xbe   :  { %v178_v42 = vsel %vm177_vm7, %v1037_v25, %v174_v37  ;;  %v993_v37 = vld [vmem:[%s1548_s0 + $0xa] sm:$0x3] }
  0xbf   :  { %v183_v46 = vsel %vm180_vm8, %v182_v43, %v178_v42 }
 0x129   :  { %v193_v35 = vpop.permute.xlu1 %192 }
 0x12a   :  { %v1364_v36 = vadd.f32 %v193_v35, %v189_v34 }
 0x12c   :  { %1038 = vtanh.f32 %v1364_v36 }
 0x132   :  { %v1039_v45 = vpop.eup %1038 }
 0x133   :  { %v197_v47 = vmul.f32 %v1039_v45, %v183_v46 }
 0x135   :  { %219 = vrot.lane.b32.xlu2 %v197_v47, %s1154_s13 }
 0x13d   :  { %204 = vperm.xlu2 %1026, %v986_v48  }
 0x18f   :  { %v220_v49 = vpop.permute.xlu2 %219 }
 0x190   :  { %988 = vmatmul.msk.f32.vlgmr.msra.gmra.mxu2 %vm93_vm0, %v220_v49  ;;  %989 = vmatmul.msk.f32.vlgmr.msra.gmra.mxu3 %vm93_vm0, %v220_v49 }
 0x191   :  { %671 = vmatpush.msra.mxu2 %v1201_v2  ;;  %691 = vmatpush.msra.mxu3 %v1203_v3 }
 0x193   :  { %672 = vmatpush.msra.mxu2 %v1206_v4  ;;  %692 = vmatpush.msra.mxu3 %v1208_v5 }
 0x195   :  { %673 = vmatpush.msra.mxu2 %v1211_v6  ;;  %693 = vmatpush.msra.mxu3 %v1215_v7 }
 0x197   :  { %674 = vmatpush.msra.mxu2 %v1219_v8  ;;  %694 = vmatpush.msra.mxu3 %v1223_v9  ;;  %v1389_v50 = vpop.permute.xlu2 %204 }
 0x198   :  { %v207_v52 = vmul.f32 %v1389_v50, %v1338_v31  ;;  %v208_v60 = vmul.f32 %v1389_v50, %v1340_v32 }
 0x199   :  { %675 = vmatpush.msra.mxu2 %v1230_v11  ;;  %695 = vmatpush.msra.mxu3 %v1234_v12 }
 0x19a   :  { %v216_v54 = vadd.f32 %v214_v53, %v207_v52  ;;  %v217_v1 = vadd.f32 %v215_v63, %v208_v60 }
 0x19b   :  { %676 = vmatpush.msra.mxu2 %v1241_v14  ;;  %696 = vmatpush.msra.mxu3 %v1245_v15 }
 0x19d   :  { %677 = vmatpush.msra.mxu2 %v1248_v16  ;;  %697 = vmatpush.msra.mxu3 %v1252_v17 }
 0x19f   :  { %678 = vmatpush.msra.mxu2 %v1256_v18  ;;  %698 = vmatpush.msra.mxu3 %v1260_v19 }
 0x213   :  { %v240_v55 = vpop.f32.mrf.mxu2  ;;  %v260_v0 = vpop.f32.mrf.mxu3 }
 0x214   :  { %v263_v57 = vadd.f32 %v240_v55, %v216_v54  ;;  %v264_v10 = vadd.f32 %v260_v0, %v217_v1  ;;  %v1435_v0 = vpop.permute.xlu0 %321 }
 0x216   :  { %v265_v58 = vadd.f32 %v263_v57, %v1355_v44  ;;  %v266_v20 = vadd.f32 %v264_v10, %v1360_v56  ;;  %v324_v10 = vmul.f32 %v1435_v0, %v1338_v31 }
 0x218   :  { %v990_v59 = vmul.f32 -1.442695, %v265_v58  ;;  %v991_v40 = vmul.f32 -1.442695, %v266_v20 }
 0x21a   :  { %1040 = vpow2.f32 %v990_v59 }
 0x220   :  { %v1041_v61 = vpop.eup %1040 }
 0x221   :  { %v270_v62 = vadd.f32 1.0, %v1041_v61 }
 0x223   :  { %1042 = vrcp.f32 %v270_v62  ;;  %v282_v23 = vand.u32 2147483648, %v270_v62  ;;  %v280_v25 = vand.u32 2147483647, %v270_v62  ;;  %vm276_vm10 = vweird.f32 %v270_v62 }
 0x224   :  { %1044 = vtanh.f32 %v266_v20 }
 0x225   :  { %v283_v27 = vor.u32 1.1754944e-38, %v282_v23  ;;  %vm281_vm12 = vcmp.eq.f32.partialorder %v280_v25, 8.507059e+37  ;;  %1046 = vpow2.f32 %v991_v40 }
 0x229   :  { %v1043_v13 = vpop.eup %1042 }
 0x22a   :  { %v272_v21 = vmul.f32 %v1043_v13, %v270_v62  ;;  %vm277_vm9 = vweird.f32 %v1043_v13  ;;  %v1045_v33 = vpop.eup %1044 }
 0x22b   :  { %vm278_vm11 = vmor %vm276_vm10, %vm277_vm9  ;;  %v1047_v41 = vpop.eup %1046 }
 0x22c   :  { %v273_v22 = vsub.f32 1.0, %v272_v21  ;;  %v290_v42 = vadd.f32 1.0, %v1047_v41 }
 0x22e   :  { %v274_v24 = vmul.f32 %v1043_v13, %v273_v22  ;;  %1048 = vrcp.f32 %v290_v42  ;;  %v302_v54 = vand.u32 2147483648, %v290_v42  ;;  %vm296_vm14 = vweird.f32 %v290_v42 }
 0x22f   :  { %v300_v55 = vand.u32 2147483647, %v290_v42 }
 0x230   :  { %v275_v26 = vadd.f32 %v1043_v13, %v274_v24  ;;  %v303_v58 = vor.u32 1.1754944e-38, %v302_v54 }
 0x231   :  { %vm301_vm1 = vcmp.eq.f32.partialorder %v300_v55, 8.507059e+37  ;;  %v999_v55 = vld [vmem:[%s1548_s0 + $0x8] sm:$0x3] }
 0x232   :  { %v279_v28 = vsel %vm278_vm11, %v1043_v13, %v275_v26 }
 0x233   :  { %v284_v34 = vsel %vm281_vm12, %v283_v27, %v279_v28  ;;  %v325_v27 = vmul.f32 %v1435_v0, %v1340_v32 }
 0x234   :  { %v307_v35 = vmul.f32 %v1045_v33, %v284_v34  ;;  %v1049_v43 = vpop.eup %1048  ;;  %v306_v48 = vmul.f32 %v284_v34, %v1364_v36  ;;  %v998_v36 = vld [vmem:[%s1548_s0 + $0x6] sm:$0x3] }
 0x235   :  { %v292_v45 = vmul.f32 %v1049_v43, %v290_v42  ;;  %vm297_vm13 = vweird.f32 %v1049_v43 }
 0x236   :  { %309 = vrot.lane.b32.xlu1 %v307_v35, %s1154_s13  ;;  %vm298_vm15 = vmor %vm296_vm14, %vm297_vm13 }
 0x237   :  { %v293_v46 = vsub.f32 1.0, %v292_v45 }
 0x239   :  { %v294_v47 = vmul.f32 %v1049_v43, %v293_v46 }
 0x23b   :  { %v295_v53 = vadd.f32 %v1049_v43, %v294_v47 }
 0x23d   :  { %v299_v57 = vsel %vm298_vm15, %v1049_v43, %v295_v53 }
 0x23e   :  { %328 = vperm.xlu1 %1027, %v993_v37   ;;  %v304_v60 = vsel %vm301_vm1, %v303_v58, %v299_v57 }
 0x246   :  { %438 = vperm.xlu1 %1027, %v998_v36  }
 0x2a8   :  { %v310_v49 = vpop.permute.xlu1 %309 }
 0x2a9   :  { %v1408_v52 = vadd.f32 %v310_v49, %v306_v48 }
 0x2ab   :  { %1050 = vtanh.f32 %v1408_v52 }
 0x2b0   :  { %v1433_v63 = vpop.permute.xlu1 %328 }
 0x2b1   :  { %v1051_v59 = vpop.eup %1050  ;;  %v331_v1 = vmul.f32 %v1433_v63, %v1334_v29  ;;  %v332_v24 = vmul.f32 %v1433_v63, %v1336_v30 }
 0x2b2   :  { %v314_v61 = vmul.f32 %v1051_v59, %v304_v60 }
 0x2b3   :  { %v333_v13 = vadd.f32 %v331_v1, %v324_v10  ;;  %v334_v33 = vadd.f32 %v332_v24, %v325_v27 }
 0x2b4   :  { %336 = vrot.lane.b32.xlu2 %v314_v61, %s1154_s13 }
 0x30e   :  { %v337_v62 = vpop.permute.xlu2 %336 }
 0x30f   :  { %994 = vmatmul.msk.f32.vlgmr.msrb.gmra.mxu0 %vm93_vm0, %v337_v62  ;;  %995 = vmatmul.msk.f32.vlgmr.msrb.gmra.mxu1 %vm93_vm0, %v337_v62 }
 0x310   :  { %774 = vmatpush.msrb.mxu0 %v1201_v2  ;;  %794 = vmatpush.msrb.mxu1 %v1203_v3 }
 0x312   :  { %775 = vmatpush.msrb.mxu0 %v1206_v4  ;;  %795 = vmatpush.msrb.mxu1 %v1208_v5 }
 0x314   :  { %776 = vmatpush.msrb.mxu0 %v1211_v6  ;;  %796 = vmatpush.msrb.mxu1 %v1215_v7 }
 0x316   :  { %777 = vmatpush.msrb.mxu0 %v1219_v8  ;;  %797 = vmatpush.msrb.mxu1 %v1223_v9 }
 0x318   :  { %778 = vmatpush.msrb.mxu0 %v1230_v11  ;;  %798 = vmatpush.msrb.mxu1 %v1234_v12 }
 0x31a   :  { %779 = vmatpush.msrb.mxu0 %v1241_v14  ;;  %799 = vmatpush.msrb.mxu1 %v1245_v15 }
 0x31c   :  { %780 = vmatpush.msrb.mxu0 %v1248_v16  ;;  %800 = vmatpush.msrb.mxu1 %v1252_v17 }
 0x31e   :  { %781 = vmatpush.msrb.mxu0 %v1256_v18  ;;  %801 = vmatpush.msrb.mxu1 %v1260_v19 }
 0x38c   :  { %v357_v20 = vpop.f32.mrf.mxu0  ;;  %v377_v28 = vpop.f32.mrf.mxu1 }
 0x38d   :  { %v380_v21 = vadd.f32 %v357_v20, %v333_v13  ;;  %v381_v34 = vadd.f32 %v377_v28, %v334_v33 }
 0x38f   :  { %v382_v22 = vadd.f32 %v380_v21, %v1355_v44  ;;  %v383_v37 = vadd.f32 %v381_v34, %v1360_v56 }
 0x391   :  { %v996_v23 = vmul.f32 -1.442695, %v382_v22  ;;  %v997_v57 = vmul.f32 -1.442695, %v383_v37 }
 0x393   :  { %1052 = vpow2.f32 %v996_v23 }
 0x399   :  { %v1053_v25 = vpop.eup %1052 }
 0x39a   :  { %v387_v26 = vadd.f32 1.0, %v1053_v25 }
 0x39c   :  { %1054 = vrcp.f32 %v387_v26  ;;  %v399_v42 = vand.u32 2147483648, %v387_v26  ;;  %v397_v45 = vand.u32 2147483647, %v387_v26  ;;  %vm393_vm3 = vweird.f32 %v387_v26 }
 0x39d   :  { %1056 = vtanh.f32 %v383_v37 }
 0x39e   :  { %v400_v47 = vor.u32 1.1754944e-38, %v399_v42  ;;  %vm398_vm5 = vcmp.eq.f32.partialorder %v397_v45, 8.507059e+37  ;;  %1058 = vpow2.f32 %v997_v57 }
 0x3a2   :  { %v1055_v35 = vpop.eup %1054 }
 0x3a3   :  { %v389_v40 = vmul.f32 %v1055_v35, %v387_v26  ;;  %vm394_vm2 = vweird.f32 %v1055_v35  ;;  %v1057_v49 = vpop.eup %1056 }
 0x3a4   :  { %vm395_vm4 = vmor %vm393_vm3, %vm394_vm2  ;;  %v1059_v58 = vpop.eup %1058 }
 0x3a5   :  { %v390_v41 = vsub.f32 1.0, %v389_v40  ;;  %v407_v59 = vadd.f32 1.0, %v1059_v58 }
 0x3a7   :  { %v391_v43 = vmul.f32 %v1055_v35, %v390_v41  ;;  %1060 = vrcp.f32 %v407_v59  ;;  %v419_v21 = vand.u32 2147483648, %v407_v59  ;;  %vm413_vm7 = vweird.f32 %v407_v59 }
 0x3a8   :  { %v417_v22 = vand.u32 2147483647, %v407_v59 }
 0x3a9   :  { %v392_v46 = vadd.f32 %v1055_v35, %v391_v43  ;;  %v420_v24 = vor.u32 1.1754944e-38, %v419_v21 }
 0x3aa   :  { %vm418_vm9 = vcmp.eq.f32.partialorder %v417_v22, 8.507059e+37 }
 0x3ab   :  { %v396_v48 = vsel %vm395_vm4, %v1055_v35, %v392_v46 }
 0x3ac   :  { %v401_v53 = vsel %vm398_vm5, %v400_v47, %v396_v48 }
 0x3ad   :  { %v424_v54 = vmul.f32 %v1057_v49, %v401_v53  ;;  %v1061_v60 = vpop.eup %1060  ;;  %v423_v1 = vmul.f32 %v401_v53, %v1408_v52 }
 0x3ae   :  { %v409_v61 = vmul.f32 %v1061_v60, %v407_v59  ;;  %vm414_vm6 = vweird.f32 %v1061_v60 }
 0x3af   :  { %426 = vrot.lane.b32.xlu2 %v424_v54, %s1154_s13  ;;  %vm415_vm8 = vmor %vm413_vm7, %vm414_vm6 }
 0x3b0   :  { %v410_v36 = vsub.f32 1.0, %v409_v61 }
 0x3b2   :  { %v411_v62 = vmul.f32 %v1061_v60, %v410_v36 }
 0x3b4   :  { %v412_v20 = vadd.f32 %v1061_v60, %v411_v62 }
 0x3b6   :  { %v416_v23 = vsel %vm415_vm8, %v1061_v60, %v412_v20 }
 0x3b7   :  { %445 = vperm.xlu2 %1026, %v999_v55   ;;  %v421_v26 = vsel %vm418_vm9, %v420_v24, %v416_v23 }
 0x409   :  { %v427_v10 = vpop.permute.xlu2 %426 }
 0x40a   :  { %v1452_v13 = vadd.f32 %v427_v10, %v423_v1 }
 0x40c   :  { %1062 = vtanh.f32 %v1452_v13 }
 0x412   :  { %v1063_v25 = vpop.eup %1062 }
 0x413   :  { %v431_v27 = vmul.f32 %v1063_v25, %v421_v26 }
 0x415   :  { %453 = vrot.lane.b32.xlu0 %v431_v27, %s1154_s13 }
 0x487   :  { %v454_v52 = vpop.permute.xlu0 %453 }
 0x488   :  { %1000 = vmatmul.msk.f32.vlgmr.msrb.gmra.mxu2 %vm93_vm0, %v454_v52  ;;  %1001 = vmatmul.msk.f32.vlgmr.msrb.gmra.mxu3 %vm93_vm0, %v454_v52 }
 0x489   :  { %877 = vmatpush.msrb.mxu2 %v1201_v2  ;;  %897 = vmatpush.msrb.mxu3 %v1203_v3  ;;  %v1474_v2 = vpop.permute.xlu2 %445  ;;  %v1476_v3 = vpop.permute.xlu1 %438 }
 0x48a   :  { %v551_v26 = vmul.f32 %v1476_v3, %v1334_v29 }
 0x48b   :  { %878 = vmatpush.msrb.mxu2 %v1206_v4  ;;  %898 = vmatpush.msrb.mxu3 %v1208_v5  ;;  %v448_v4 = vmul.f32 %v1474_v2, %v1334_v29  ;;  %v441_v5 = vmul.f32 %v1476_v3, %v1338_v31 }
 0x48d   :  { %879 = vmatpush.msrb.mxu2 %v1211_v6  ;;  %899 = vmatpush.msrb.mxu3 %v1215_v7  ;;  %v450_v6 = vadd.f32 %v448_v4, %v441_v5 }
 0x48f   :  { %880 = vmatpush.msrb.mxu2 %v1219_v8  ;;  %900 = vmatpush.msrb.mxu3 %v1223_v9 }
 0x491   :  { %881 = vmatpush.msrb.mxu2 %v1230_v11  ;;  %901 = vmatpush.msrb.mxu3 %v1234_v12  ;;  %v449_v12 = vmul.f32 %v1474_v2, %v1336_v30 }
 0x493   :  { %882 = vmatpush.msrb.mxu2 %v1241_v14  ;;  %902 = vmatpush.msrb.mxu3 %v1245_v15 }
 0x495   :  { %883 = vmatpush.msrb.mxu2 %v1248_v16  ;;  %903 = vmatpush.msrb.mxu3 %v1252_v17  ;;  %v442_v16 = vmul.f32 %v1476_v3, %v1340_v32 }
 0x497   :  { %884 = vmatpush.msrb.mxu2 %v1256_v18  ;;  %904 = vmatpush.msrb.mxu3 %v1260_v19  ;;  %v451_v18 = vadd.f32 %v449_v12, %v442_v16 }
 0x50b   :  { %v474_v7 = vpop.f32.mrf.mxu2  ;;  %v494_v17 = vpop.f32.mrf.mxu3 }
 0x50c   :  { %v497_v8 = vadd.f32 %v474_v7, %v450_v6  ;;  %v498_v19 = vadd.f32 %v494_v17, %v451_v18  ;;  %v550_v7 = vmul.f32 %v1474_v2, %v1340_v32 }
 0x50e   :  { %v499_v9 = vadd.f32 %v497_v8, %v1355_v44  ;;  %v500_v33 = vadd.f32 %v498_v19, %v1360_v56 }
 0x510   :  { %v1002_v11 = vmul.f32 -1.442695, %v499_v9  ;;  %v1003_v49 = vmul.f32 -1.442695, %v500_v33 }
 0x512   :  { %1064 = vpow2.f32 %v1002_v11  ;;  %v552_v11 = vmul.f32 %v1476_v3, %v1336_v30 }
 0x518   :  { %v1065_v14 = vpop.eup %1064 }
 0x519   :  { %v504_v15 = vadd.f32 1.0, %v1065_v14  ;;  %v554_v14 = vadd.f32 %v552_v11, %v550_v7 }
 0x51b   :  { %1066 = vrcp.f32 %v504_v15  ;;  %v516_v37 = vand.u32 2147483648, %v504_v15  ;;  %v514_v41 = vand.u32 2147483647, %v504_v15  ;;  %vm510_vm11 = vweird.f32 %v504_v15 }
 0x51c   :  { %1068 = vtanh.f32 %v500_v33 }
 0x51d   :  { %v517_v43 = vor.u32 1.1754944e-38, %v516_v37  ;;  %vm515_vm13 = vcmp.eq.f32.partialorder %v514_v41, 8.507059e+37  ;;  %1070 = vpow2.f32 %v1003_v49 }
 0x521   :  { %v1067_v28 = vpop.eup %1066 }
 0x522   :  { %v506_v34 = vmul.f32 %v1067_v28, %v504_v15  ;;  %vm511_vm10 = vweird.f32 %v1067_v28  ;;  %v1069_v46 = vpop.eup %1068 }
 0x523   :  { %vm512_vm12 = vmor %vm510_vm11, %vm511_vm10  ;;  %v1071_v53 = vpop.eup %1070 }
 0x524   :  { %v507_v35 = vsub.f32 1.0, %v506_v34  ;;  %v524_v54 = vadd.f32 1.0, %v1071_v53 }
 0x526   :  { %v508_v40 = vmul.f32 %v1067_v28, %v507_v35  ;;  %1072 = vrcp.f32 %v524_v54  ;;  %v536_v1 = vand.u32 2147483648, %v524_v54  ;;  %vm530_vm15 = vweird.f32 %v524_v54 }
 0x527   :  { %v534_v10 = vand.u32 2147483647, %v524_v54 }
 0x528   :  { %v509_v42 = vadd.f32 %v1067_v28, %v508_v40  ;;  %v537_v21 = vor.u32 1.1754944e-38, %v536_v1 }
 0x529   :  { %vm535_vm2 = vcmp.eq.f32.partialorder %v534_v10, 8.507059e+37 }
 0x52a   :  { %v513_v45 = vsel %vm512_vm12, %v1067_v28, %v509_v42 }
 0x52b   :  { %v518_v47 = vsel %vm515_vm13, %v517_v43, %v513_v45 }
 0x52c   :  { %v541_v48 = vmul.f32 %v1069_v46, %v518_v47  ;;  %v1073_v55 = vpop.eup %1072  ;;  %v540_v60 = vmul.f32 %v518_v47, %v1452_v13  ;;  %v549_v13 = vmul.f32 %v1474_v2, %v1338_v31 }
 0x52d   :  { %v526_v57 = vmul.f32 %v1073_v55, %v524_v54  ;;  %vm531_vm14 = vweird.f32 %v1073_v55 }
 0x52e   :  { %543 = vrot.lane.b32.xlu0 %v541_v48, %s1154_s13  ;;  %vm532_vm1 = vmor %vm530_vm15, %vm531_vm14  ;;  %v553_v27 = vadd.f32 %v551_v26, %v549_v13  ;;  %v653_v26 = vmul.f32 %v1433_v63, %v1340_v32 }
 0x52f   :  { %v527_v58 = vsub.f32 1.0, %v526_v57 }
 0x531   :  { %v528_v59 = vmul.f32 %v1073_v55, %v527_v58 }
 0x533   :  { %v529_v62 = vadd.f32 %v1073_v55, %v528_v59 }
 0x535   :  { %v533_v20 = vsel %vm532_vm1, %v1073_v55, %v529_v62 }
 0x536   :  { %v538_v23 = vsel %vm535_vm2, %v537_v21, %v533_v20  ;;  %v654_v21 = vmul.f32 %v1435_v0, %v1334_v29 }
 0x5a0   :  { %v544_v61 = vpop.permute.xlu0 %543 }
 0x5a1   :  { %v546_v36 = vadd.f32 %v544_v61, %v540_v60 }
 0x5a3   :  { %1074 = vtanh.f32 %v546_v36 }
 0x5a9   :  { %v1075_v22 = vpop.eup %1074 }
 0x5aa   :  { %v548_v24 = vmul.f32 %v1075_v22, %v538_v23 }
 0x5ac   :  { %556 = vrot.lane.b32.xlu1 %v548_v24, %s1154_s13 }
 0x61e   :  { %v557_v25 = vpop.permute.xlu1 %556 }
 0x61f   :  { %1004 = vmatmul.msk.f32.vlgmr.msra.gmra.mxu0 %vm93_vm0, %v557_v25  ;;  %1005 = vmatmul.msk.f32.vlgmr.msra.gmra.mxu1 %vm93_vm0, %v557_v25 }
 0x69c   :  { %v577_v52 = vpop.f32.mrf.mxu0  ;;  %v597_v12 = vpop.f32.mrf.mxu1 }
 0x69d   :  { %v600_v4 = vadd.f32 %v577_v52, %v553_v27  ;;  %v601_v15 = vadd.f32 %v597_v12, %v554_v14 }
 0x69f   :  { %v602_v5 = vadd.f32 %v600_v4, %v1355_v44  ;;  %v603_v17 = vadd.f32 %v601_v15, %v1360_v56  ;;  %v655_v4 = vmul.f32 %v1435_v0, %v1336_v30 }
 0x6a1   :  { %v1006_v6 = vmul.f32 -1.442695, %v602_v5  ;;  %v1007_v42 = vmul.f32 -1.442695, %v603_v17 }
 0x6a3   :  { %1076 = vpow2.f32 %v1006_v6  ;;  %v657_v6 = vadd.f32 %v655_v4, %v653_v26 }
 0x6a9   :  { %v1077_v8 = vpop.eup %1076 }
 0x6aa   :  { %v607_v9 = vadd.f32 1.0, %v1077_v8 }
 0x6ac   :  { %1078 = vrcp.f32 %v607_v9  ;;  %v619_v28 = vand.u32 2147483648, %v607_v9  ;;  %v617_v34 = vand.u32 2147483647, %v607_v9  ;;  %vm613_vm4 = vweird.f32 %v607_v9 }
 0x6ad   :  { %1080 = vtanh.f32 %v603_v17 }
 0x6ae   :  { %v620_v35 = vor.u32 1.1754944e-38, %v619_v28  ;;  %vm618_vm6 = vcmp.eq.f32.partialorder %v617_v34, 8.507059e+37  ;;  %1082 = vpow2.f32 %v1007_v42 }
 0x6b2   :  { %v1079_v16 = vpop.eup %1078 }
 0x6b3   :  { %v609_v18 = vmul.f32 %v1079_v16, %v607_v9  ;;  %vm614_vm3 = vweird.f32 %v1079_v16  ;;  %v1081_v3 = vpop.eup %1080 }
 0x6b4   :  { %vm615_vm5 = vmor %vm613_vm4, %vm614_vm3  ;;  %v1083_v43 = vpop.eup %1082 }
 0x6b5   :  { %v610_v19 = vsub.f32 1.0, %v609_v18  ;;  %v627_v45 = vadd.f32 1.0, %v1083_v43 }
 0x6b7   :  { %v611_v33 = vmul.f32 %v1079_v16, %v610_v19  ;;  %1084 = vrcp.f32 %v627_v45  ;;  %v639_v58 = vand.u32 2147483648, %v627_v45  ;;  %vm633_vm8 = vweird.f32 %v627_v45 }
 0x6b8   :  { %v637_v59 = vand.u32 2147483647, %v627_v45 }
 0x6b9   :  { %v612_v2 = vadd.f32 %v1079_v16, %v611_v33  ;;  %v640_v61 = vor.u32 1.1754944e-38, %v639_v58 }
 0x6ba   :  { %vm638_vm10 = vcmp.eq.f32.partialorder %v637_v59, 8.507059e+37  ;;  %v755_v59 = vmul.f32 %v1391_v51, %v1338_v31 }
 0x6bb   :  { %v616_v37 = vsel %vm615_vm5, %v1079_v16, %v612_v2 }
 0x6bc   :  { %v621_v40 = vsel %vm618_vm6, %v620_v35, %v616_v37 }
 0x6bd   :  { %v644_v41 = vmul.f32 %v1081_v3, %v621_v40  ;;  %v1085_v46 = vpop.eup %1084  ;;  %v643_v53 = vmul.f32 %v621_v40, %v546_v36  ;;  %v652_v36 = vmul.f32 %v1433_v63, %v1338_v31 }
 0x6be   :  { %v629_v47 = vmul.f32 %v1085_v46, %v627_v45  ;;  %vm634_vm7 = vweird.f32 %v1085_v46 }
 0x6bf   :  { %646 = vrot.lane.b32.xlu2 %v644_v41, %s1154_s13  ;;  %vm635_vm9 = vmor %vm633_vm8, %vm634_vm7  ;;  %v656_v22 = vadd.f32 %v654_v21, %v652_v36 }
 0x6c0   :  { %v630_v48 = vsub.f32 1.0, %v629_v47 }
 0x6c2   :  { %v631_v49 = vmul.f32 %v1085_v46, %v630_v48 }
 0x6c4   :  { %v632_v57 = vadd.f32 %v1085_v46, %v631_v49 }
 0x6c6   :  { %v636_v60 = vsel %vm635_vm9, %v1085_v46, %v632_v57 }
 0x6c7   :  { %v641_v1 = vsel %vm638_vm10, %v640_v61, %v636_v60 }
 0x719   :  { %v647_v54 = vpop.permute.xlu2 %646 }
 0x71a   :  { %v649_v55 = vadd.f32 %v647_v54, %v643_v53 }
 0x71c   :  { %1086 = vtanh.f32 %v649_v55 }
 0x722   :  { %v1087_v62 = vpop.eup %1086 }
 0x723   :  { %v651_v10 = vmul.f32 %v1087_v62, %v641_v1 }
 0x725   :  { %659 = vrot.lane.b32.xlu0 %v651_v10, %s1154_s13 }
 0x797   :  { %v660_v20 = vpop.permute.xlu0 %659 }
 0x798   :  { %1008 = vmatmul.msk.f32.vlgmr.msra.gmra.mxu2 %vm93_vm0, %v660_v20  ;;  %1009 = vmatmul.msk.f32.vlgmr.msra.gmra.mxu3 %vm93_vm0, %v660_v20  ;;  %v758_v20 = vmul.f32 %v1389_v50, %v1336_v30 }
 0x81b   :  { %v680_v23 = vpop.f32.mrf.mxu2  ;;  %v700_v5 = vpop.f32.mrf.mxu3 }
 0x81c   :  { %v703_v24 = vadd.f32 %v680_v23, %v656_v22  ;;  %v704_v7 = vadd.f32 %v700_v5, %v657_v6  ;;  %v756_v22 = vmul.f32 %v1391_v51, %v1340_v32 }
 0x81e   :  { %v705_v25 = vadd.f32 %v703_v24, %v1355_v44  ;;  %v706_v9 = vadd.f32 %v704_v7, %v1360_v56 }
 0x820   :  { %v1010_v13 = vmul.f32 -1.442695, %v705_v25  ;;  %v1011_v33 = vmul.f32 -1.442695, %v706_v9 }
 0x822   :  { %1088 = vpow2.f32 %v1010_v13 }
 0x828   :  { %v1089_v27 = vpop.eup %1088 }
 0x829   :  { %v710_v52 = vadd.f32 1.0, %v1089_v27 }
 0x82b   :  { %1090 = vrcp.f32 %v710_v52  ;;  %v722_v14 = vand.u32 2147483648, %v710_v52  ;;  %v720_v16 = vand.u32 2147483647, %v710_v52  ;;  %vm716_vm12 = vweird.f32 %v710_v52 }
 0x82c   :  { %1092 = vtanh.f32 %v706_v9 }
 0x82d   :  { %v723_v17 = vor.u32 1.1754944e-38, %v722_v14  ;;  %vm721_vm14 = vcmp.eq.f32.partialorder %v720_v16, 8.507059e+37  ;;  %1094 = vpow2.f32 %v1011_v33 }
 0x831   :  { %v1091_v8 = vpop.eup %1090 }
 0x832   :  { %v712_v11 = vmul.f32 %v1091_v8, %v710_v52  ;;  %vm717_vm11 = vweird.f32 %v1091_v8  ;;  %v1093_v0 = vpop.eup %1092 }
 0x833   :  { %vm718_vm13 = vmor %vm716_vm12, %vm717_vm11  ;;  %v1095_v34 = vpop.eup %1094 }
 0x834   :  { %v713_v12 = vsub.f32 1.0, %v712_v11  ;;  %v730_v2 = vadd.f32 1.0, %v1095_v34 }
 0x836   :  { %v714_v15 = vmul.f32 %v1091_v8, %v713_v12  ;;  %1096 = vrcp.f32 %v730_v2  ;;  %v742_v46 = vand.u32 2147483648, %v730_v2  ;;  %vm736_vm1 = vweird.f32 %v730_v2 }
 0x837   :  { %v740_v47 = vand.u32 2147483647, %v730_v2 }
 0x838   :  { %v715_v63 = vadd.f32 %v1091_v8, %v714_v15  ;;  %v743_v49 = vor.u32 1.1754944e-38, %v742_v46 }
 0x839   :  { %vm741_vm3 = vcmp.eq.f32.partialorder %v740_v47, 8.507059e+37 }
 0x83a   :  { %v719_v18 = vsel %vm718_vm13, %v1091_v8, %v715_v63 }
 0x83b   :  { %v724_v19 = vsel %vm721_vm14, %v723_v17, %v719_v18 }
 0x83c   :  { %v747_v28 = vmul.f32 %v1093_v0, %v724_v19  ;;  %v1097_v35 = vpop.eup %1096  ;;  %v746_v41 = vmul.f32 %v724_v19, %v649_v55  ;;  %v757_v55 = vmul.f32 %v1389_v50, %v1334_v29  ;;  %v760_v29 = vadd.f32 %v758_v20, %v756_v22 }
 0x83d   :  { %v732_v37 = vmul.f32 %v1097_v35, %v730_v2  ;;  %vm737_vm15 = vweird.f32 %v1097_v35 }
 0x83e   :  { %749 = vrot.lane.b32.xlu1 %v747_v28, %s1154_s13  ;;  %vm738_vm2 = vmor %vm736_vm1, %vm737_vm15  ;;  %v759_v60 = vadd.f32 %v757_v55, %v755_v59 }
 0x83f   :  { %v733_v3 = vsub.f32 1.0, %v732_v37 }
 0x841   :  { %v734_v40 = vmul.f32 %v1097_v35, %v733_v3 }
 0x843   :  { %v735_v45 = vadd.f32 %v1097_v35, %v734_v40 }
 0x845   :  { %v739_v48 = vsel %vm738_vm2, %v1097_v35, %v735_v45 }
 0x846   :  { %v744_v54 = vsel %vm741_vm3, %v743_v49, %v739_v48 }
 0x8b0   :  { %v750_v42 = vpop.permute.xlu1 %749 }
 0x8b1   :  { %v752_v43 = vadd.f32 %v750_v42, %v746_v41 }
 0x8b3   :  { %1098 = vtanh.f32 %v752_v43 }
 0x8b9   :  { %v1099_v53 = vpop.eup %1098 }
 0x8ba   :  { %v754_v57 = vmul.f32 %v1099_v53, %v744_v54 }
 0x8bc   :  { %762 = vrot.lane.b32.xlu2 %v754_v57, %s1154_s13 }
 0x916   :  { %v763_v58 = vpop.permute.xlu2 %762 }
 0x917   :  { %1012 = vmatmul.msk.f32.vlgmr.msrb.gmra.mxu0 %vm93_vm0, %v763_v58  ;;  %1013 = vmatmul.msk.f32.vlgmr.msrb.gmra.mxu1 %vm93_vm0, %v763_v58 }
 0x994   :  { %v783_v61 = vpop.f32.mrf.mxu0  ;;  %v803_v23 = vpop.f32.mrf.mxu1 }
 0x995   :  { %v806_v62 = vadd.f32 %v783_v61, %v759_v60  ;;  %v807_v24 = vadd.f32 %v803_v23, %v760_v29 }
 0x997   :  { %v808_v1 = vadd.f32 %v806_v62, %v1355_v44  ;;  %v809_v25 = vadd.f32 %v807_v24, %v1360_v56 }
 0x999   :  { %v1014_v10 = vmul.f32 -1.442695, %v808_v1  ;;  %v1015_v7 = vmul.f32 -1.442695, %v809_v25 }
 0x99b   :  { %1100 = vpow2.f32 %v1014_v10 }
 0x9a1   :  { %v1101_v36 = vpop.eup %1100 }
 0x9a2   :  { %v813_v21 = vadd.f32 1.0, %v1101_v36 }
 0x9a4   :  { %1102 = vrcp.f32 %v813_v21  ;;  %v825_v27 = vand.u32 2147483648, %v813_v21  ;;  %v823_v4 = vand.u32 2147483647, %v813_v21  ;;  %vm819_vm5 = vweird.f32 %v813_v21 }
 0x9a5   :  { %1104 = vtanh.f32 %v809_v25 }
 0x9a6   :  { %v826_v50 = vor.u32 1.1754944e-38, %v825_v27  ;;  %vm824_vm7 = vcmp.eq.f32.partialorder %v823_v4, 8.507059e+37  ;;  %1106 = vpow2.f32 %v1015_v7 }
 0x9aa   :  { %v1103_v31 = vpop.eup %1102 }
 0x9ab   :  { %v815_v13 = vmul.f32 %v1103_v31, %v813_v21  ;;  %vm820_vm4 = vweird.f32 %v1103_v31  ;;  %v1105_v32 = vpop.eup %1104 }
 0x9ac   :  { %vm821_vm6 = vmor %vm819_vm5, %vm820_vm4  ;;  %v1107_v8 = vpop.eup %1106  ;;  %vm965_vm4 = vcmask 517120  }
 0x9ad   :  { %v816_v26 = vsub.f32 1.0, %v815_v13  ;;  %v833_v9 = vadd.f32 1.0, %v1107_v8 }
 0x9af   :  { %v817_v52 = vmul.f32 %v1103_v31, %v816_v26  ;;  %1108 = vrcp.f32 %v833_v9  ;;  %v845_v0 = vand.u32 2147483648, %v833_v9  ;;  %vm839_vm9 = vweird.f32 %v833_v9 }
 0x9b0   :  { %v843_v19 = vand.u32 2147483647, %v833_v9 }
 0x9b1   :  { %v818_v30 = vadd.f32 %v1103_v31, %v817_v52  ;;  %v846_v33 = vor.u32 1.1754944e-38, %v845_v0 }
 0x9b2   :  { %vm844_vm11 = vcmp.eq.f32.partialorder %v843_v19, 8.507059e+37 }
 0x9b3   :  { %v822_v5 = vsel %vm821_vm6, %v1103_v31, %v818_v30 }
 0x9b4   :  { %v827_v51 = vsel %vm824_vm7, %v826_v50, %v822_v5 }
 0x9b5   :  { %v850_v6 = vmul.f32 %v1105_v32, %v827_v51  ;;  %v1109_v11 = vpop.eup %1108  ;;  %v849_v16 = vmul.f32 %v827_v51, %v752_v43 }
 0x9b6   :  { %v835_v12 = vmul.f32 %v1109_v11, %v833_v9  ;;  %vm840_vm8 = vweird.f32 %v1109_v11 }
 0x9b7   :  { %852 = vrot.lane.b32.xlu0 %v850_v6, %s1154_s13  ;;  %vm841_vm10 = vmor %vm839_vm9, %vm840_vm8 }
 0x9b8   :  { %v836_v14 = vsub.f32 1.0, %v835_v12 }
 0x9ba   :  { %v837_v15 = vmul.f32 %v1109_v11, %v836_v14 }
 0x9bc   :  { %v838_v18 = vadd.f32 %v1109_v11, %v837_v15 }
 0x9be   :  { %v842_v28 = vsel %vm841_vm10, %v1109_v11, %v838_v18 }
 0x9bf   :  { %v847_v2 = vsel %vm844_vm11, %v846_v33, %v842_v28 }
 0xa29   :  { %v853_v63 = vpop.permute.xlu0 %852 }
 0xa2a   :  { %v855_v17 = vadd.f32 %v853_v63, %v849_v16 }
 0xa2c   :  { %1110 = vtanh.f32 %v855_v17 }
 0xa32   :  { %v1111_v34 = vpop.eup %1110 }
 0xa33   :  { %v857_v35 = vmul.f32 %v1111_v34, %v847_v2 }
 0xa35   :  { %865 = vrot.lane.b32.xlu1 %v857_v35, %s1154_s13 }
 0xaa7   :  { %v866_v37 = vpop.permute.xlu1 %865 }
 0xaa8   :  { %1016 = vmatmul.msk.f32.vlgmr.msrb.gmra.mxu2 %vm93_vm0, %v866_v37  ;;  %1017 = vmatmul.msk.f32.vlgmr.msrb.gmra.mxu3 %vm93_vm0, %v866_v37 }
 0xb2b   :  { %v886_v3 = vpop.f32.mrf.mxu2  ;;  %v906_v46 = vpop.f32.mrf.mxu3 }
 0xb2c   :  { %v909_v40 = vadd.f32 %v886_v3, %v1346_v38  ;;  %v910_v47 = vadd.f32 %v906_v46, %v1348_v39 }
 0xb2e   :  { %v911_v41 = vadd.f32 %v909_v40, %v1355_v44  ;;  %v912_v49 = vadd.f32 %v910_v47, %v1360_v56 }
 0xb30   :  { %v1018_v42 = vmul.f32 -1.442695, %v911_v41  ;;  %v1019_v39 = vmul.f32 -1.442695, %v912_v49 }
 0xb32   :  { %1112 = vpow2.f32 %v1018_v42 }
 0xb38   :  { %v1113_v43 = vpop.eup %1112 }
 0xb39   :  { %v916_v45 = vadd.f32 1.0, %v1113_v43 }
 0xb3b   :  { %1114 = vrcp.f32 %v916_v45  ;;  %v928_v57 = vand.u32 2147483648, %v916_v45  ;;  %v926_v38 = vand.u32 2147483647, %v916_v45  ;;  %vm922_vm12 = vweird.f32 %v916_v45 }
 0xb3c   :  { %1116 = vtanh.f32 %v912_v49 }
 0xb3d   :  { %v929_v44 = vor.u32 1.1754944e-38, %v928_v57  ;;  %vm927_vm14 = vcmp.eq.f32.partialorder %v926_v38, 8.507059e+37  ;;  %1118 = vpow2.f32 %v1019_v39 }
 0xb41   :  { %v1115_v48 = vpop.eup %1114 }
 0xb42   :  { %v918_v53 = vmul.f32 %v1115_v48, %v916_v45  ;;  %vm923_vm0 = vweird.f32 %v1115_v48  ;;  %v1117_v60 = vpop.eup %1116 }
 0xb43   :  { %vm924_vm13 = vmor %vm922_vm12, %vm923_vm0  ;;  %v1119_v56 = vpop.eup %1118 }
 0xb44   :  { %v919_v54 = vsub.f32 1.0, %v918_v53  ;;  %v936_v1 = vadd.f32 1.0, %v1119_v56 }
 0xb46   :  { %v920_v58 = vmul.f32 %v1115_v48, %v919_v54  ;;  %1120 = vrcp.f32 %v936_v1  ;;  %v948_v31 = vand.u32 2147483648, %v936_v1  ;;  %vm942_vm1 = vweird.f32 %v936_v1 }
 0xb47   :  { %v946_v25 = vand.u32 2147483647, %v936_v1 }
 0xb48   :  { %v921_v55 = vadd.f32 %v1115_v48, %v920_v58  ;;  %v949_v26 = vor.u32 1.1754944e-38, %v948_v31 }
 0xb49   :  { %vm947_vm3 = vcmp.eq.f32.partialorder %v946_v25, 8.507059e+37 }
 0xb4a   :  { %v925_v59 = vsel %vm924_vm13, %v1115_v48, %v921_v55 }
 0xb4b   :  { %v930_v61 = vsel %vm927_vm14, %v929_v44, %v925_v59 }
 0xb4c   :  { %v953_v62 = vmul.f32 %v1117_v60, %v930_v61  ;;  %v1121_v10 = vpop.eup %1120  ;;  %v952_v22 = vmul.f32 %v930_v61, %v855_v17 }
 0xb4d   :  { %v938_v20 = vmul.f32 %v1121_v10, %v936_v1  ;;  %vm943_vm15 = vweird.f32 %v1121_v10 }
 0xb4e   :  { %955 = vrot.lane.b32.xlu2 %v953_v62, %s1154_s13  ;;  %vm944_vm2 = vmor %vm942_vm1, %vm943_vm15 }
 0xb4f   :  { %v939_v36 = vsub.f32 1.0, %v938_v20 }
 0xb51   :  { %v940_v21 = vmul.f32 %v1121_v10, %v939_v36 }
 0xb53   :  { %v941_v24 = vadd.f32 %v1121_v10, %v940_v21 }
 0xb55   :  { %v945_v13 = vsel %vm944_vm2, %v1121_v10, %v941_v24 }
 0xb56   :  { %v950_v52 = vsel %vm947_vm3, %v949_v26, %v945_v13 }
 0xba8   :  { %v956_v23 = vpop.permute.xlu2 %955 }
 0xba9   :  { %v958_v29 = vadd.f32 %v956_v23, %v952_v22 }
 0xbab   :  { %1122 = vtanh.f32 %v958_v29  ;;  %968 = vrot.lane.b32.xlu1 %v958_v29, %s1154_s13 }
 0xbb1   :  { %v1123_v27 = vpop.eup %1122 }
 0xbb2   :  { %v960_v4 = vmul.f32 %v1123_v27, %v950_v52 }
 0xbb4   :  { %962 = vrot.lane.b32.xlu0 %v960_v4, %s1154_s13 }
 0xc1d   :  { %v969_v30 = vpop.permute.xlu1 %968 }
 0xc1e   :  { %971 = vst.msk [vmem:[%s1555_s7] sm:$0x3] %vm965_vm4, %v969_v30 }
 0xc26   :  { %v963_v50 = vpop.permute.xlu0 %962 }
 0xc27   :  { %966 = vst.msk [vmem:[%s1554_s6] sm:$0x3] %vm965_vm4, %v963_v50 }
 0xc28   :  { %980 = vsyncpa [#allocation3], 1 }

// kernel: _lambda_.3
= control target key start
LH: loop header
LB: loop body
LE: loop exit
PB: predicated region body
PF: predicated region fallthrough
CT: control target
= control target key end

     0   :  { %12 = vsyncpa [#allocation3], 0  ;;  %s1622_s0 = inlined_call_operand.vmem [shape: f32[1,2,64], index: 0, kind: input, shape index: {}]   ;;  %s1623_s1 = inlined_call_operand.vmem [shape: f32[1,2,64], index: 1, kind: input, shape index: {}]   ;;  %s1624_s2 = inlined_call_operand.vmem [shape: f32[1,256], index: 2, kind: input, shape index: {}]   ;;  %s1625_s3 = inlined_call_operand.hbm [shape: f32[64,256], index: 3, kind: input, shape index: {}]   ;;  %s1626_s4 = inlined_call_operand.vmem [shape: f32[1,256], index: 4, kind: input, shape index: {}]   ;;  %s1627_s5 = inlined_call_operand.vmem [shape: f32[64,16], index: 5, kind: input, shape index: {}]   ;;  %s1628_s6 = inlined_call_operand.vmem [shape: f32[1,16], index: 6, kind: input, shape index: {}]   ;;  %s1629_s7 = inlined_call_operand.hbm [shape: f32[6,2,16], index: 7, kind: output, shape index: {}]  }
   0x1   :  { %13 = vsyncpa [#allocation4], 0  ;;  %s24_s26 = sshll.u32 %s1625_s3, 4  ;;  %s1168_s27 = smov [#allocation2]   ;;  %s25_s26 = int_to_ptr.hbm [resolvable:$true] %s24_s26 }
   0x2   :  { %s26_s28 = sshll.u32 %s1168_s27, 4  ;;  %s1169_s29 = smov 256   ;;  %s27_s28 = int_to_ptr.vmem [resolvable:$true] %s26_s28 }
   0x3   :  { %s1170_s30 = smov 16  }
   0x4   :  { %32 = dma.hbm_to_vmem [thread:$0]  %s25_s26, 2048, %s27_s28, [#allocation3], %s1169_s29, %s1169_s29, %s1170_s30  }
   0x5   :  { %1164 = dma.done.wait [#allocation3], 2048  }
   0x6   :  { %1165 = vsyncadd [#allocation3], 4294965248  ;;  %v1220_v0 = vld [vmem:[#allocation2 + $0x70] sm:$0xff]  ;;  %v1222_v1 = vld [vmem:[#allocation2 + $0x60] sm:$0xff]  ;;  %s1171_s9 = smov 64   ;;  %vm84_vm0 = vcmask 523264  }
   0x7   :  { %96 = vmatpush.msra.mxu0 %v1220_v0  ;;  %v1225_v2 = vld [vmem:[#allocation2 + $0x78] sm:$0xff]  ;;  %255 = vmatpush.msra.mxu3 %v1220_v0  ;;  %v1228_v3 = vld [vmem:[#allocation2 + $0x50] sm:$0xff]  ;;  %v1231_v4 = vld [vmem:[#allocation2 + $0x68] sm:$0xff]  ;;  %vm217_vm9 = vcmask 123904   ;;  %s990_s8 = sshll.u32 %s1629_s7, 4  ;;  %s991_s8 = int_to_ptr.hbm [resolvable:$true] %s990_s8 }
   0x8   :  { %116 = vmatpush.msra.mxu1 %v1225_v2  ;;  %v1234_v5 = vld [vmem:[#allocation2 + $0x58] sm:$0xff]  ;;  %v1237_v6 = vld [vmem:[#allocation2 + $0x40] sm:$0xff]  ;;  %v1241_v7 = vld [vmem:[#allocation2 + $0x48] sm:$0xff] }
   0x9   :  { %97 = vmatpush.msra.mxu0 %v1222_v1  ;;  %256 = vmatpush.msra.mxu3 %v1222_v1  ;;  %v76_v8 = vld [vmem:[%s1623_s1] sm:$0x3]  ;;  %v1247_v9 = vld [vmem:[#allocation2 + $0x30] sm:$0xff]  ;;  %v1252_v10 = vld [vmem:[#allocation2 + $0x38] sm:$0xff]  ;;  %s1176_s1 = smov 2  }
   0xa   :  { %117 = vmatpush.msra.mxu1 %v1231_v4  ;;  %177 = vrot.lane.b32.xlu0 %v76_v8, %s1171_s9  ;;  %v1255_v11 = vld [vmem:[#allocation2 + $0x20] sm:$0xff]  ;;  %v1259_v12 = vld [vmem:[#allocation2 + $0x28] sm:$0xff]  ;;  %v1262_v13 = vld [vmem:[#allocation2 + $0x10] sm:$0xff] }
   0xb   :  { %98 = vmatpush.msra.mxu0 %v1228_v3  ;;  %257 = vmatpush.msra.mxu3 %v1228_v3  ;;  %v1266_v14 = vld [vmem:[#allocation2 + $0x18] sm:$0xff]  ;;  %v1269_v15 = vld [vmem:[#allocation2] sm:$0xff]  ;;  %v1276_v17 = vld [vmem:[#allocation2 + $0x8] sm:$0xff] }
   0xc   :  { %118 = vmatpush.msra.mxu1 %v1234_v5  ;;  %v75_v16 = vld [vmem:[%s1622_s0] sm:$0x3]  ;;  %v1323_v50 = vld [vmem:[%s1627_s5 + $0x38] sm:$0xff]  ;;  %v1328_v51 = vld [vmem:[%s1627_s5 + $0x30] sm:$0xff] }
   0xd   :  { %99 = vmatpush.msra.mxu0 %v1237_v6  ;;  %258 = vmatpush.msra.mxu3 %v1237_v6  ;;  %v43_v18 = vld [vmem:[%s1624_s2] sm:$0x3]  ;;  %v1335_v52 = vld [vmem:[%s1627_s5 + $0x28] sm:$0xff]  ;;  %v1351_v54 = vld [vmem:[%s1627_s5 + $0x18] sm:$0xff] }
   0xe   :  { %119 = vmatpush.msra.mxu1 %v1241_v7  ;;  %v1304_v19 = vperm.slane %v43_v18, 0  ;;  %v60_v20 = vld [vmem:[%s1626_s4] sm:$0x3]  ;;  %v1313_v27 = vperm.slane %v43_v18, 1  ;;  %205 = vmatpush.msra.mxu2 %v1323_v50  ;;  %v1359_v56 = vld [vmem:[%s1627_s5 + $0x10] sm:$0xff]  ;;  %v1367_v58 = vld [vmem:[%s1627_s5 + $0x8] sm:$0xff] }
   0xf   :  { %100 = vmatpush.msra.mxu0 %v1247_v9  ;;  %259 = vmatpush.msra.mxu3 %v1247_v9  ;;  %v1310_v22 = vperm.slane %v60_v20, 0  ;;  %v1316_v33 = vperm.slane %v60_v20, 1  ;;  %v1343_v53 = vld [vmem:[%s1627_s5 + $0x20] sm:$0xff] }
  0x10   :  { %120 = vmatpush.msra.mxu1 %v1252_v10  ;;  %v82_v21 = vmul.f32 4.0, %v1304_v19  ;;  %v83_v30 = vmul.f32 4.0, %v1313_v27  ;;  %206 = vmatpush.msra.mxu2 %v1328_v51  ;;  %v1375_v60 = vld [vmem:[%s1627_s5] sm:$0xff] }
  0x11   :  { %101 = vmatpush.msra.mxu0 %v1255_v11  ;;  %260 = vmatpush.msra.mxu3 %v1255_v11 }
  0x12   :  { %121 = vmatpush.msra.mxu1 %v1259_v12  ;;  %207 = vmatpush.msra.mxu2 %v1335_v52 }
  0x13   :  { %102 = vmatpush.msra.mxu0 %v1262_v13  ;;  %261 = vmatpush.msra.mxu3 %v1262_v13 }
  0x14   :  { %122 = vmatpush.msra.mxu1 %v1266_v14  ;;  %208 = vmatpush.msra.mxu2 %v1343_v53 }
  0x15   :  { %103 = vmatpush.msra.mxu0 %v1269_v15  ;;  %262 = vmatpush.msra.mxu3 %v1269_v15 }
  0x16   :  { %1004 = vmatmul.msk.f32.vlgmr.msra.gmra.mxu0 %vm84_vm0, %v75_v16  ;;  %123 = vmatpush.msra.mxu1 %v1276_v17 }
  0x17   :  { %1005 = vmatmul.msk.f32.vlgmr.msra.gmra.mxu1 %vm84_vm0, %v75_v16  ;;  %275 = vmatpush.msrb.mxu0 %v1225_v2 }
  0x18   :  { %423 = vmatpush.msrb.mxu3 %v1225_v2  ;;  %352 = vmatpush.msrb.mxu1 %v1323_v50 }
  0x19   :  { %276 = vmatpush.msrb.mxu0 %v1231_v4  ;;  %209 = vmatpush.msra.mxu2 %v1351_v54 }
  0x1a   :  { %424 = vmatpush.msrb.mxu3 %v1231_v4  ;;  %353 = vmatpush.msrb.mxu1 %v1328_v51 }
  0x1b   :  { %277 = vmatpush.msrb.mxu0 %v1234_v5  ;;  %210 = vmatpush.msra.mxu2 %v1359_v56 }
  0x1c   :  { %425 = vmatpush.msrb.mxu3 %v1234_v5  ;;  %354 = vmatpush.msrb.mxu1 %v1335_v52 }
  0x1d   :  { %278 = vmatpush.msrb.mxu0 %v1241_v7  ;;  %211 = vmatpush.msra.mxu2 %v1367_v58 }
  0x1e   :  { %426 = vmatpush.msrb.mxu3 %v1241_v7  ;;  %355 = vmatpush.msrb.mxu1 %v1343_v53 }
  0x1f   :  { %279 = vmatpush.msrb.mxu0 %v1252_v10  ;;  %212 = vmatpush.msra.mxu2 %v1375_v60 }
  0x20   :  { %427 = vmatpush.msrb.mxu3 %v1252_v10  ;;  %356 = vmatpush.msrb.mxu1 %v1351_v54 }
  0x21   :  { %280 = vmatpush.msrb.mxu0 %v1259_v12  ;;  %403 = vmatpush.msrb.mxu2 %v1220_v0 }
  0x22   :  { %428 = vmatpush.msrb.mxu3 %v1259_v12  ;;  %357 = vmatpush.msrb.mxu1 %v1359_v56 }
  0x23   :  { %281 = vmatpush.msrb.mxu0 %v1266_v14  ;;  %404 = vmatpush.msrb.mxu2 %v1222_v1 }
  0x24   :  { %429 = vmatpush.msrb.mxu3 %v1266_v14  ;;  %358 = vmatpush.msrb.mxu1 %v1367_v58 }
  0x25   :  { %282 = vmatpush.msrb.mxu0 %v1276_v17  ;;  %405 = vmatpush.msrb.mxu2 %v1228_v3 }
  0x26   :  { %430 = vmatpush.msrb.mxu3 %v1276_v17  ;;  %359 = vmatpush.msrb.mxu1 %v1375_v60 }
  0x27   :  { %500 = vmatpush.msra.mxu0 %v1323_v50  ;;  %406 = vmatpush.msrb.mxu2 %v1237_v6 }
  0x28   :  { %551 = vmatpush.msra.mxu1 %v1220_v0 }
  0x29   :  { %501 = vmatpush.msra.mxu0 %v1328_v51  ;;  %407 = vmatpush.msrb.mxu2 %v1247_v9 }
  0x2a   :  { %552 = vmatpush.msra.mxu1 %v1222_v1 }
  0x2b   :  { %502 = vmatpush.msra.mxu0 %v1335_v52  ;;  %408 = vmatpush.msrb.mxu2 %v1255_v11 }
  0x2c   :  { %553 = vmatpush.msra.mxu1 %v1228_v3 }
  0x2d   :  { %503 = vmatpush.msra.mxu0 %v1343_v53  ;;  %409 = vmatpush.msrb.mxu2 %v1262_v13 }
  0x2e   :  { %554 = vmatpush.msra.mxu1 %v1237_v6 }
  0x2f   :  { %504 = vmatpush.msra.mxu0 %v1351_v54  ;;  %410 = vmatpush.msrb.mxu2 %v1269_v15 }
  0x30   :  { %555 = vmatpush.msra.mxu1 %v1247_v9 }
  0x31   :  { %505 = vmatpush.msra.mxu0 %v1359_v56 }
  0x32   :  { %556 = vmatpush.msra.mxu1 %v1255_v11 }
  0x33   :  { %506 = vmatpush.msra.mxu0 %v1367_v58 }
  0x34   :  { %557 = vmatpush.msra.mxu1 %v1262_v13 }
  0x35   :  { %507 = vmatpush.msra.mxu0 %v1375_v60 }
  0x36   :  { %558 = vmatpush.msra.mxu1 %v1269_v15 }
  0x7c   :  { %v178_v59 = vpop.permute.xlu0 %177 }
  0x93   :  { %v105_v23 = vpop.f32.mrf.mxu0 }
  0x94   :  { %v128_v24 = vadd.f32 %v105_v23, %v82_v21  ;;  %v125_v31 = vpop.f32.mrf.mxu1 }
  0x95   :  { %v129_v32 = vadd.f32 %v125_v31, %v83_v30  ;;  %v1434_v30 = vld [vmem:[%s1628_s6] ss:$0 sm:$0xff]  ;;  %s1174_s6 = smov [#allocation5]  }
  0x96   :  { %v135_v25 = vadd.f32 %v1310_v22, %v128_v24  ;;  %s988_s29 = sshll.u32 %s1174_s6, 4  ;;  %s989_s29 = int_to_ptr.vmem [resolvable:$true] %s988_s29 }
  0x97   :  { %v136_v35 = vadd.f32 %v1316_v33, %v129_v32 }
  0x98   :  { %v1006_v26 = vmul.f32 -1.442695, %v135_v25 }
  0x99   :  { %v1007_v47 = vmul.f32 -1.442695, %v136_v35 }
  0x9a   :  { %1044 = vpow2.f32 %v1006_v26 }
  0xa0   :  { %v1045_v28 = vpop.eup %1044 }
  0xa1   :  { %v140_v29 = vadd.f32 1.0, %v1045_v28 }
  0xa3   :  { %1046 = vrcp.f32 %v140_v29  ;;  %v152_v38 = vand.u32 2147483648, %v140_v29  ;;  %v150_v40 = vand.u32 2147483647, %v140_v29  ;;  %vm146_vm2 = vweird.f32 %v140_v29 }
  0xa4   :  { %1048 = vtanh.f32 %v136_v35  ;;  %v70_v35 = vlaneseq }
  0xa5   :  { %v153_v43 = vor.u32 1.1754944e-38, %v152_v38  ;;  %vm151_vm4 = vcmp.eq.f32.partialorder %v150_v40, 8.507059e+37  ;;  %1050 = vpow2.f32 %v1007_v47 }
  0xa9   :  { %v1047_v34 = vpop.eup %1046 }
  0xaa   :  { %v142_v36 = vmul.f32 %v1047_v34, %v140_v29  ;;  %vm147_vm1 = vweird.f32 %v1047_v34  ;;  %v1049_v42 = vpop.eup %1048 }
  0xab   :  { %vm148_vm3 = vmor %vm146_vm2, %vm147_vm1  ;;  %v1051_v48 = vpop.eup %1050 }
  0xac   :  { %v143_v37 = vsub.f32 1.0, %v142_v36  ;;  %v160_v49 = vadd.f32 1.0, %v1051_v48  ;;  %v1438_v36 = vand.u32 127, %v70_v35  ;;  %v1172_v48 = vmov 0.0  }
  0xae   :  { %v144_v39 = vmul.f32 %v1047_v34, %v143_v37  ;;  %1052 = vrcp.f32 %v160_v49  ;;  %vm166_vm5 = vweird.f32 %v160_v49  ;;  %v172_v18 = vand.u32 2147483648, %v160_v49 }
  0xaf   :  { %v170_v21 = vand.u32 2147483647, %v160_v49  ;;  %vm72_vm12 = vcmp.eq.s32.totalorder %v1438_v36, 3 }
  0xb0   :  { %v145_v41 = vadd.f32 %v1047_v34, %v144_v39  ;;  %v173_v23 = vor.u32 1.1754944e-38, %v172_v18 }
  0xb1   :  { %vm171_vm8 = vcmp.eq.f32.partialorder %v170_v21, 8.507059e+37 }
  0xb2   :  { %v149_v44 = vsel %vm148_vm3, %v1047_v34, %v145_v41 }
  0xb3   :  { %v154_v45 = vsel %vm151_vm4, %v153_v43, %v149_v44 }
  0xb4   :  { %v181_v46 = vmul.f32 %v1049_v42, %v154_v45  ;;  %v1053_v55 = vpop.eup %1052  ;;  %v180_v63 = vmul.f32 %v178_v59, %v154_v45 }
  0xb5   :  { %v162_v57 = vmul.f32 %v1053_v55, %v160_v49  ;;  %vm167_vm6 = vweird.f32 %v1053_v55  ;;  %v1443_v49 = vsel %vm72_vm12, 1.0, %v1172_v48 }
  0xb6   :  { %183 = vrot.lane.b32.xlu0 %v181_v46, %s1171_s9  ;;  %vm168_vm7 = vmor %vm166_vm5, %vm167_vm6 }
  0xb7   :  { %v163_v61 = vsub.f32 1.0, %v162_v57 }
  0xb9   :  { %v164_v62 = vmul.f32 %v1053_v55, %v163_v61 }
  0xbb   :  { %v165_v20 = vadd.f32 %v1053_v55, %v164_v62 }
  0xbd   :  { %v169_v24 = vsel %vm168_vm7, %v1053_v55, %v165_v20 }
  0xbe   :  { %v174_v26 = vsel %vm171_vm8, %v173_v23, %v169_v24 }
 0x128   :  { %v184_v8 = vpop.permute.xlu0 %183 }
 0x129   :  { %v1390_v16 = vadd.f32 %v184_v8, %v180_v63 }
 0x12b   :  { %1054 = vtanh.f32 %v1390_v16 }
 0x131   :  { %v1055_v25 = vpop.eup %1054 }
 0x132   :  { %v188_v28 = vmul.f32 %v1055_v25, %v174_v26 }
 0x134   :  { %193 = vrot.lane.b32.xlu1 %v188_v28, %s1171_s9 }
 0x1a6   :  { %v194_v29 = vpop.permute.xlu1 %193 }
 0x1a7   :  { %1008 = vmatmul.msk.f32.vlgmr.msra.gmra.mxu2 %vm84_vm0, %v194_v29  ;;  %1009 = vmatmul.msk.f32.vlgmr.msra.gmra.mxu3 %vm84_vm0, %v194_v29 }
 0x1a8   :  { %1010 = vmatmul.msk.f32.vlgmr.msrb.gmra.mxu0 %vm84_vm0, %v194_v29  ;;  %571 = vmatpush.msra.mxu2 %v1225_v2 }
 0x1a9   :  { %648 = vmatpush.msra.mxu3 %v1323_v50  ;;  %699 = vmatpush.msrb.mxu0 %v1220_v0 }
 0x1aa   :  { %572 = vmatpush.msra.mxu2 %v1231_v4 }
 0x1ab   :  { %649 = vmatpush.msra.mxu3 %v1328_v51  ;;  %700 = vmatpush.msrb.mxu0 %v1222_v1 }
 0x1ac   :  { %573 = vmatpush.msra.mxu2 %v1234_v5 }
 0x1ad   :  { %650 = vmatpush.msra.mxu3 %v1335_v52  ;;  %701 = vmatpush.msrb.mxu0 %v1228_v3 }
 0x1ae   :  { %574 = vmatpush.msra.mxu2 %v1241_v7 }
 0x1af   :  { %651 = vmatpush.msra.mxu3 %v1343_v53  ;;  %702 = vmatpush.msrb.mxu0 %v1237_v6 }
 0x1b0   :  { %575 = vmatpush.msra.mxu2 %v1252_v10 }
 0x1b1   :  { %652 = vmatpush.msra.mxu3 %v1351_v54  ;;  %703 = vmatpush.msrb.mxu0 %v1247_v9 }
 0x1b2   :  { %576 = vmatpush.msra.mxu2 %v1259_v12 }
 0x1b3   :  { %653 = vmatpush.msra.mxu3 %v1359_v56  ;;  %704 = vmatpush.msrb.mxu0 %v1255_v11 }
 0x1b4   :  { %577 = vmatpush.msra.mxu2 %v1266_v14 }
 0x1b5   :  { %654 = vmatpush.msra.mxu3 %v1367_v58  ;;  %705 = vmatpush.msrb.mxu0 %v1262_v13 }
 0x1b6   :  { %578 = vmatpush.msra.mxu2 %v1276_v17 }
 0x1b7   :  { %655 = vmatpush.msra.mxu3 %v1375_v60  ;;  %706 = vmatpush.msrb.mxu0 %v1269_v15 }
 0x225   :  { %v284_v28 = vpop.f32.mrf.mxu0 }
 0x22a   :  { %v214_v31 = vpop.f32.mrf.mxu2  ;;  %v264_v18 = vpop.f32.mrf.mxu3 }
 0x22b   :  { %v215_v32 = vadd.f32 %v1434_v30, %v214_v31 }
 0x22d   :  { %v218_v34 = vsel %vm217_vm9, %v215_v32, -inf  ;;  %v239_v61 = vmul.f32 %v1443_v49, %v215_v32 }
 0x22e   :  { %219 = vmax.xlane.f32.xlu1 %v218_v34 }
 0x2a1   :  { %v220_v37 = vpop.xlane.xlu1 %219 }
 0x2a2   :  { %vm221_vm10 = vcmp.eq.f32.partialorder %v215_v32, %v220_v37 }
 0x2a3   :  { %v222_v38 = vsel %vm221_vm10, %v1438_v36, 16 }
 0x2a4   :  { %v223_v39 = vsel %vm217_vm9, %v222_v38, 2147483647 }
 0x2a5   :  { %v225_v40 = vshra.s32 %v223_v39, 16  ;;  %v224_v42 = vand.u32 65535, %v223_v39 }
 0x2a7   :  { %v227_v41 = vcvt.s32.f32 %v225_v40  ;;  %v226_v44 = vcvt.s32.f32 %v224_v42 }
 0x2a9   :  { %228 = vmin.xlane.f32.xlu2 %v227_v41 }
 0x31c   :  { %v229_v43 = vpop.xlane.xlu2 %228 }
 0x31d   :  { %vm230_vm11 = vcmp.eq.f32.partialorder %v227_v41, %v229_v43  ;;  %v235_v46 = vcvt.f32.s32 %v229_v43 }
 0x31e   :  { %v231_v45 = vsel %vm230_vm11, %v226_v44, inf }
 0x31f   :  { %232 = vmin.xlane.f32.xlu2 %v231_v45  ;;  %v236_v55 = vshll.u32 %v235_v46, 16 }
 0x392   :  { %v233_v47 = vpop.xlane.xlu2 %232 }
 0x393   :  { %v234_v57 = vcvt.f32.s32 %v233_v47 }
 0x395   :  { %v1445_v59 = vadd.s32 %v236_v55, %v234_v57 }
 0x397   :  { %vm238_vm13 = vcmp.eq.s32.totalorder %v1445_v59, 3  ;;  %v244_v62 = vcvt.s32.f32 %v1445_v59 }
 0x398   :  { %v242_v63 = vsel %vm238_vm13, %v239_v61, %v215_v32 }
 0x399   :  { %243 = vst.msk [vmem:[#allocation5] sm:$0x3] %vm217_vm9, %v242_v63  ;;  %v245_v8 = vmul.f32 %v244_v62, %v1304_v19  ;;  %v246_v25 = vmul.f32 %v244_v62, %v1313_v27 }
 0x39b   :  { %v287_v20 = vadd.f32 %v264_v18, %v245_v8  ;;  %v288_v29 = vadd.f32 %v284_v28, %v246_v25 }
 0x39d   :  { %v289_v21 = vadd.f32 %v287_v20, %v1310_v22  ;;  %v290_v32 = vadd.f32 %v288_v29, %v1316_v33 }
 0x39f   :  { %v1011_v23 = vmul.f32 -1.442695, %v289_v21  ;;  %v1012_v46 = vmul.f32 -1.442695, %v290_v32 }
 0x3a1   :  { %1056 = vpow2.f32 %v1011_v23 }
 0x3a7   :  { %v1057_v24 = vpop.eup %1056 }
 0x3a8   :  { %v294_v26 = vadd.f32 1.0, %v1057_v24 }
 0x3aa   :  { %1058 = vrcp.f32 %v294_v26  ;;  %v306_v37 = vand.u32 2147483648, %v294_v26  ;;  %v304_v39 = vand.u32 2147483647, %v294_v26  ;;  %vm300_vm15 = vweird.f32 %v294_v26 }
 0x3ab   :  { %1060 = vtanh.f32 %v290_v32 }
 0x3ac   :  { %v307_v41 = vor.u32 1.1754944e-38, %v306_v37  ;;  %vm305_vm2 = vcmp.eq.f32.partialorder %v304_v39, 8.507059e+37  ;;  %1062 = vpow2.f32 %v1012_v46 }
 0x3b0   :  { %v1059_v31 = vpop.eup %1058 }
 0x3b1   :  { %v296_v34 = vmul.f32 %v1059_v31, %v294_v26  ;;  %vm301_vm14 = vweird.f32 %v1059_v31  ;;  %v1061_v43 = vpop.eup %1060 }
 0x3b2   :  { %vm302_vm1 = vmor %vm300_vm15, %vm301_vm14  ;;  %v1063_v47 = vpop.eup %1062 }
 0x3b3   :  { %v297_v35 = vsub.f32 1.0, %v296_v34  ;;  %v314_v48 = vadd.f32 1.0, %v1063_v47 }
 0x3b5   :  { %v298_v38 = vmul.f32 %v1059_v31, %v297_v35  ;;  %1064 = vrcp.f32 %v314_v48  ;;  %v326_v21 = vand.u32 2147483648, %v314_v48  ;;  %vm320_vm4 = vweird.f32 %v314_v48 }
 0x3b6   :  { %v324_v23 = vand.u32 2147483647, %v314_v48 }
 0x3b7   :  { %v299_v40 = vadd.f32 %v1059_v31, %v298_v38  ;;  %v327_v25 = vor.u32 1.1754944e-38, %v326_v21 }
 0x3b8   :  { %vm325_vm6 = vcmp.eq.f32.partialorder %v324_v23, 8.507059e+37 }
 0x3b9   :  { %v303_v42 = vsel %vm302_vm1, %v1059_v31, %v299_v40 }
 0x3ba   :  { %v308_v44 = vsel %vm305_vm2, %v307_v41, %v303_v42 }
 0x3bb   :  { %v331_v45 = vmul.f32 %v1061_v43, %v308_v44  ;;  %v1065_v55 = vpop.eup %1064  ;;  %v330_v63 = vmul.f32 %v308_v44, %v1390_v16 }
 0x3bc   :  { %v316_v57 = vmul.f32 %v1065_v55, %v314_v48  ;;  %vm321_vm3 = vweird.f32 %v1065_v55 }
 0x3bd   :  { %333 = vrot.lane.b32.xlu0 %v331_v45, %s1171_s9  ;;  %vm322_vm5 = vmor %vm320_vm4, %vm321_vm3 }
 0x3be   :  { %v317_v61 = vsub.f32 1.0, %v316_v57 }
 0x3c0   :  { %v318_v62 = vmul.f32 %v1065_v55, %v317_v61 }
 0x3c2   :  { %v319_v20 = vadd.f32 %v1065_v55, %v318_v62 }
 0x3c4   :  { %v323_v24 = vsel %vm322_vm5, %v1065_v55, %v319_v20 }
 0x3c5   :  { %v328_v28 = vsel %vm325_vm6, %v327_v25, %v323_v24 }
 0x42f   :  { %v334_v8 = vpop.permute.xlu0 %333 }
 0x430   :  { %v1459_v18 = vadd.f32 %v334_v8, %v330_v63 }
 0x432   :  { %1066 = vtanh.f32 %v1459_v18 }
 0x438   :  { %v1067_v26 = vpop.eup %1066 }
 0x439   :  { %v338_v29 = vmul.f32 %v1067_v26, %v328_v28 }
 0x43b   :  { %340 = vrot.lane.b32.xlu2 %v338_v29, %s1171_s9 }
 0x495   :  { %v341_v16 = vpop.permute.xlu2 %340 }
 0x496   :  { %1013 = vmatmul.msk.f32.vlgmr.msrb.gmra.mxu1 %vm84_vm0, %v341_v16  ;;  %1014 = vmatmul.msk.f32.vlgmr.msrb.gmra.mxu2 %vm84_vm0, %v341_v16 }
 0x497   :  { %1015 = vmatmul.msk.f32.vlgmr.msrb.gmra.mxu3 %vm84_vm0, %v341_v16  ;;  %719 = vmatpush.msrb.mxu1 %v1225_v2 }
 0x498   :  { %796 = vmatpush.msrb.mxu2 %v1323_v50  ;;  %847 = vmatpush.msrb.mxu3 %v1220_v0 }
 0x499   :  { %720 = vmatpush.msrb.mxu1 %v1231_v4 }
 0x49a   :  { %797 = vmatpush.msrb.mxu2 %v1328_v51  ;;  %848 = vmatpush.msrb.mxu3 %v1222_v1 }
 0x49b   :  { %721 = vmatpush.msrb.mxu1 %v1234_v5 }
 0x49c   :  { %798 = vmatpush.msrb.mxu2 %v1335_v52  ;;  %849 = vmatpush.msrb.mxu3 %v1228_v3 }
 0x49d   :  { %722 = vmatpush.msrb.mxu1 %v1241_v7 }
 0x49e   :  { %799 = vmatpush.msrb.mxu2 %v1343_v53  ;;  %850 = vmatpush.msrb.mxu3 %v1237_v6 }
 0x49f   :  { %723 = vmatpush.msrb.mxu1 %v1252_v10 }
 0x4a0   :  { %800 = vmatpush.msrb.mxu2 %v1351_v54  ;;  %851 = vmatpush.msrb.mxu3 %v1247_v9 }
 0x4a1   :  { %724 = vmatpush.msrb.mxu1 %v1259_v12 }
 0x4a2   :  { %801 = vmatpush.msrb.mxu2 %v1359_v56  ;;  %852 = vmatpush.msrb.mxu3 %v1255_v11 }
 0x4a3   :  { %725 = vmatpush.msrb.mxu1 %v1266_v14 }
 0x4a4   :  { %802 = vmatpush.msrb.mxu2 %v1367_v58  ;;  %853 = vmatpush.msrb.mxu3 %v1262_v13 }
 0x4a5   :  { %726 = vmatpush.msrb.mxu1 %v1276_v17 }
 0x4a6   :  { %803 = vmatpush.msrb.mxu2 %v1375_v60  ;;  %854 = vmatpush.msrb.mxu3 %v1269_v15 }
 0x513   :  { %v361_v0 = vpop.f32.mrf.mxu1 }
 0x514   :  { %v362_v1 = vadd.f32 %v1434_v30, %v361_v0 }
 0x516   :  { %v364_v3 = vsel %vm217_vm9, %v362_v1, -inf  ;;  %v386_v42 = vmul.f32 %v1443_v49, %v362_v1 }
 0x517   :  { %365 = vmax.xlane.f32.xlu0 %v364_v3 }
 0x519   :  { %v412_v47 = vpop.f32.mrf.mxu2 }
 0x51a   :  { %v432_v63 = vpop.f32.mrf.mxu3 }
 0x58a   :  { %v366_v6 = vpop.xlane.xlu0 %365 }
 0x58b   :  { %vm367_vm7 = vcmp.eq.f32.partialorder %v362_v1, %v366_v6 }
 0x58c   :  { %v368_v9 = vsel %vm367_vm7, %v1438_v36, 16 }
 0x58d   :  { %v369_v11 = vsel %vm217_vm9, %v368_v9, 2147483647 }
 0x58e   :  { %v371_v31 = vshra.s32 %v369_v11, 16  ;;  %v370_v32 = vand.u32 65535, %v369_v11 }
 0x590   :  { %v373_v13 = vcvt.s32.f32 %v371_v31  ;;  %v372_v35 = vcvt.s32.f32 %v370_v32 }
 0x592   :  { %374 = vmin.xlane.f32.xlu2 %v373_v13 }
 0x605   :  { %v375_v34 = vpop.xlane.xlu2 %374 }
 0x606   :  { %vm376_vm8 = vcmp.eq.f32.partialorder %v373_v13, %v375_v34  ;;  %v381_v37 = vcvt.f32.s32 %v375_v34 }
 0x607   :  { %v377_v15 = vsel %vm376_vm8, %v372_v35, inf }
 0x608   :  { %378 = vmin.xlane.f32.xlu1 %v377_v15  ;;  %v382_v39 = vshll.u32 %v381_v37, 16 }
 0x67b   :  { %v379_v38 = vpop.xlane.xlu1 %378 }
 0x67c   :  { %v380_v40 = vcvt.f32.s32 %v379_v38 }
 0x67e   :  { %v383_v41 = vadd.s32 %v382_v39, %v380_v40 }
 0x680   :  { %vm384_vm10 = vcmp.eq.s32.totalorder %v383_v41, 3  ;;  %v392_v43 = vcvt.s32.f32 %v383_v41 }
 0x681   :  { %vm1497_vm11 = vmor %vm238_vm13, %vm384_vm10 }
 0x682   :  { %v389_v45 = vsel %vm1497_vm11, %v386_v42, %v362_v1  ;;  %v393_v46 = vmul.f32 %v392_v43, %v1304_v19  ;;  %v394_v59 = vmul.f32 %v392_v43, %v1313_v27 }
 0x683   :  { %391 = vst.msk [vmem:[#allocation5 + $0x2] sm:$0x3] %vm217_vm9, %v389_v45 }
 0x684   :  { %v435_v48 = vadd.f32 %v412_v47, %v393_v46  ;;  %v436_v8 = vadd.f32 %v432_v63, %v394_v59 }
 0x686   :  { %v437_v55 = vadd.f32 %v435_v48, %v1310_v22  ;;  %v438_v21 = vadd.f32 %v436_v8, %v1316_v33 }
 0x688   :  { %v1016_v57 = vmul.f32 -1.442695, %v437_v55  ;;  %v1017_v9 = vmul.f32 -1.442695, %v438_v21 }
 0x68a   :  { %1068 = vpow2.f32 %v1016_v57 }
 0x690   :  { %v1069_v61 = vpop.eup %1068 }
 0x691   :  { %v442_v62 = vadd.f32 1.0, %v1069_v61 }
 0x693   :  { %1070 = vrcp.f32 %v442_v62  ;;  %v454_v25 = vand.u32 2147483648, %v442_v62  ;;  %v452_v28 = vand.u32 2147483647, %v442_v62  ;;  %vm448_vm13 = vweird.f32 %v442_v62 }
 0x694   :  { %1072 = vtanh.f32 %v438_v21 }
 0x695   :  { %v455_v16 = vor.u32 1.1754944e-38, %v454_v25  ;;  %vm453_vm15 = vcmp.eq.f32.partialorder %v452_v28, 8.507059e+37  ;;  %1074 = vpow2.f32 %v1017_v9 }
 0x699   :  { %v1071_v20 = vpop.eup %1070 }
 0x69a   :  { %v444_v23 = vmul.f32 %v1071_v20, %v442_v62  ;;  %vm449_vm12 = vweird.f32 %v1071_v20  ;;  %v1073_v1 = vpop.eup %1072 }
 0x69b   :  { %vm450_vm14 = vmor %vm448_vm13, %vm449_vm12  ;;  %v1075_v11 = vpop.eup %1074 }
 0x69c   :  { %v445_v24 = vsub.f32 1.0, %v444_v23  ;;  %v462_v31 = vadd.f32 1.0, %v1075_v11 }
 0x69e   :  { %v446_v26 = vmul.f32 %v1071_v20, %v445_v24  ;;  %1076 = vrcp.f32 %v462_v31  ;;  %v474_v40 = vand.u32 2147483648, %v462_v31  ;;  %vm468_vm2 = vweird.f32 %v462_v31 }
 0x69f   :  { %v472_v41 = vand.u32 2147483647, %v462_v31 }
 0x6a0   :  { %v447_v29 = vadd.f32 %v1071_v20, %v446_v26  ;;  %v475_v43 = vor.u32 1.1754944e-38, %v474_v40 }
 0x6a1   :  { %vm473_vm4 = vcmp.eq.f32.partialorder %v472_v41, 8.507059e+37 }
 0x6a2   :  { %v451_v0 = vsel %vm450_vm14, %v1071_v20, %v447_v29 }
 0x6a3   :  { %v456_v3 = vsel %vm453_vm15, %v455_v16, %v451_v0 }
 0x6a4   :  { %v479_v6 = vmul.f32 %v1073_v1, %v456_v3  ;;  %v1077_v13 = vpop.eup %1076  ;;  %v478_v15 = vmul.f32 %v456_v3, %v1459_v18 }
 0x6a5   :  { %v464_v32 = vmul.f32 %v1077_v13, %v462_v31  ;;  %vm469_vm1 = vweird.f32 %v1077_v13 }
 0x6a6   :  { %481 = vrot.lane.b32.xlu1 %v479_v6, %s1171_s9  ;;  %vm470_vm3 = vmor %vm468_vm2, %vm469_vm1 }
 0x6a7   :  { %v465_v34 = vsub.f32 1.0, %v464_v32 }
 0x6a9   :  { %v466_v35 = vmul.f32 %v1077_v13, %v465_v34 }
 0x6ab   :  { %v467_v39 = vadd.f32 %v1077_v13, %v466_v35 }
 0x6ad   :  { %v471_v42 = vsel %vm470_vm3, %v1077_v13, %v467_v39 }
 0x6ae   :  { %v476_v46 = vsel %vm473_vm4, %v475_v43, %v471_v42 }
 0x718   :  { %v482_v37 = vpop.permute.xlu1 %481 }
 0x719   :  { %v1510_v38 = vadd.f32 %v482_v37, %v478_v15 }
 0x71b   :  { %1078 = vtanh.f32 %v1510_v38 }
 0x721   :  { %v1079_v45 = vpop.eup %1078 }
 0x722   :  { %v486_v47 = vmul.f32 %v1079_v45, %v476_v46 }
 0x724   :  { %488 = vrot.lane.b32.xlu0 %v486_v47, %s1171_s9 }
 0x796   :  { %v489_v18 = vpop.permute.xlu0 %488 }
 0x797   :  { %1018 = vmatmul.msk.f32.vlgmr.msra.gmra.mxu0 %vm84_vm0, %v489_v18  ;;  %1019 = vmatmul.msk.f32.vlgmr.msra.gmra.mxu1 %vm84_vm0, %v489_v18 }
 0x798   :  { %1020 = vmatmul.msk.f32.vlgmr.msra.gmra.mxu2 %vm84_vm0, %v489_v18  ;;  %867 = vmatpush.msra.mxu0 %v1225_v2 }
 0x799   :  { %944 = vmatpush.msra.mxu1 %v1323_v50 }
 0x79a   :  { %868 = vmatpush.msra.mxu0 %v1231_v4 }
 0x79b   :  { %945 = vmatpush.msra.mxu1 %v1328_v51 }
 0x79c   :  { %869 = vmatpush.msra.mxu0 %v1234_v5 }
 0x79d   :  { %946 = vmatpush.msra.mxu1 %v1335_v52 }
 0x79e   :  { %870 = vmatpush.msra.mxu0 %v1241_v7 }
 0x79f   :  { %947 = vmatpush.msra.mxu1 %v1343_v53 }
 0x7a0   :  { %871 = vmatpush.msra.mxu0 %v1252_v10 }
 0x7a1   :  { %948 = vmatpush.msra.mxu1 %v1351_v54 }
 0x7a2   :  { %872 = vmatpush.msra.mxu0 %v1259_v12 }
 0x7a3   :  { %949 = vmatpush.msra.mxu1 %v1359_v56 }
 0x7a4   :  { %873 = vmatpush.msra.mxu0 %v1266_v14 }
 0x7a5   :  { %950 = vmatpush.msra.mxu1 %v1367_v58 }
 0x7a6   :  { %874 = vmatpush.msra.mxu0 %v1276_v17 }
 0x7a7   :  { %951 = vmatpush.msra.mxu1 %v1375_v60 }
 0x814   :  { %v509_v2 = vpop.f32.mrf.mxu0  ;;  %v560_v63 = vpop.f32.mrf.mxu1 }
 0x815   :  { %v510_v4 = vadd.f32 %v1434_v30, %v509_v2 }
 0x817   :  { %v512_v5 = vsel %vm217_vm9, %v510_v4, -inf  ;;  %v534_v55 = vmul.f32 %v1443_v49, %v510_v4 }
 0x818   :  { %513 = vmax.xlane.f32.xlu2 %v512_v5 }
 0x81b   :  { %v580_v25 = vpop.f32.mrf.mxu2 }
 0x88b   :  { %v514_v7 = vpop.xlane.xlu2 %513 }
 0x88c   :  { %vm515_vm5 = vcmp.eq.f32.partialorder %v510_v4, %v514_v7 }
 0x88d   :  { %v516_v10 = vsel %vm515_vm5, %v1438_v36, 16 }
 0x88e   :  { %v517_v12 = vsel %vm217_vm9, %v516_v10, 2147483647 }
 0x88f   :  { %v519_v50 = vshra.s32 %v517_v12, 16  ;;  %v518_v51 = vand.u32 65535, %v517_v12 }
 0x891   :  { %v521_v14 = vcvt.s32.f32 %v519_v50  ;;  %v520_v17 = vcvt.s32.f32 %v518_v51 }
 0x893   :  { %522 = vmin.xlane.f32.xlu1 %v521_v14 }
 0x906   :  { %v523_v52 = vpop.xlane.xlu1 %522 }
 0x907   :  { %vm524_vm6 = vcmp.eq.f32.partialorder %v521_v14, %v523_v52  ;;  %v529_v54 = vcvt.f32.s32 %v523_v52 }
 0x908   :  { %v525_v53 = vsel %vm524_vm6, %v520_v17, inf }
 0x909   :  { %526 = vmin.xlane.f32.xlu0 %v525_v53  ;;  %v530_v58 = vshll.u32 %v529_v54, 16 }
 0x97c   :  { %v527_v56 = vpop.xlane.xlu0 %526 }
 0x97d   :  { %v528_v60 = vcvt.f32.s32 %v527_v56 }
 0x97f   :  { %v531_v48 = vadd.s32 %v530_v58, %v528_v60 }
 0x981   :  { %vm532_vm7 = vcmp.eq.s32.totalorder %v531_v48, 3  ;;  %v540_v57 = vcvt.s32.f32 %v531_v48 }
 0x982   :  { %vm1540_vm8 = vmor %vm1497_vm11, %vm532_vm7 }
 0x983   :  { %v537_v59 = vsel %vm1540_vm8, %v534_v55, %v510_v4  ;;  %v541_v62 = vmul.f32 %v540_v57, %v1304_v19  ;;  %v542_v44 = vmul.f32 %v540_v57, %v1313_v27 }
 0x984   :  { %539 = vst.msk [vmem:[#allocation5 + $0x4] sm:$0x3] %vm217_vm9, %v537_v59 }
 0x985   :  { %v583_v8 = vadd.f32 %v560_v63, %v541_v62  ;;  %v584_v26 = vadd.f32 %v580_v25, %v542_v44 }
 0x987   :  { %v585_v20 = vadd.f32 %v583_v8, %v1310_v22  ;;  %v586_v29 = vadd.f32 %v584_v26, %v1316_v33 }
 0x989   :  { %v1021_v21 = vmul.f32 -1.442695, %v585_v20  ;;  %v1022_v35 = vmul.f32 -1.442695, %v586_v29 }
 0x98b   :  { %1080 = vpow2.f32 %v1021_v21 }
 0x991   :  { %v1081_v23 = vpop.eup %1080 }
 0x992   :  { %v590_v24 = vadd.f32 1.0, %v1081_v23 }
 0x994   :  { %1082 = vrcp.f32 %v590_v24  ;;  %v602_v1 = vand.u32 2147483648, %v590_v24  ;;  %v600_v6 = vand.u32 2147483647, %v590_v24  ;;  %vm596_vm11 = vweird.f32 %v590_v24 }
 0x995   :  { %1084 = vtanh.f32 %v586_v29 }
 0x996   :  { %v603_v11 = vor.u32 1.1754944e-38, %v602_v1  ;;  %vm601_vm13 = vcmp.eq.f32.partialorder %v600_v6, 8.507059e+37  ;;  %1086 = vpow2.f32 %v1022_v35 }
 0x99a   :  { %v1083_v28 = vpop.eup %1082 }
 0x99b   :  { %v592_v16 = vmul.f32 %v1083_v28, %v590_v24  ;;  %vm597_vm10 = vweird.f32 %v1083_v28  ;;  %v1085_v13 = vpop.eup %1084 }
 0x99c   :  { %vm598_vm12 = vmor %vm596_vm11, %vm597_vm10  ;;  %v1087_v15 = vpop.eup %1086 }
 0x99d   :  { %v593_v0 = vsub.f32 1.0, %v592_v16  ;;  %v610_v37 = vadd.f32 1.0, %v1087_v15 }
 0x99f   :  { %v594_v3 = vmul.f32 %v1083_v28, %v593_v0  ;;  %1088 = vrcp.f32 %v610_v37  ;;  %v622_v18 = vand.u32 2147483648, %v610_v37  ;;  %vm616_vm15 = vweird.f32 %v610_v37 }
 0x9a0   :  { %v620_v2 = vand.u32 2147483647, %v610_v37 }
 0x9a1   :  { %v595_v9 = vadd.f32 %v1083_v28, %v594_v3  ;;  %v623_v5 = vor.u32 1.1754944e-38, %v622_v18 }
 0x9a2   :  { %vm621_vm2 = vcmp.eq.f32.partialorder %v620_v2, 8.507059e+37 }
 0x9a3   :  { %v599_v31 = vsel %vm598_vm12, %v1083_v28, %v595_v9 }
 0x9a4   :  { %v604_v32 = vsel %vm601_vm13, %v603_v11, %v599_v31 }
 0x9a5   :  { %v627_v34 = vmul.f32 %v1085_v13, %v604_v32  ;;  %v1089_v39 = vpop.eup %1088  ;;  %v626_v43 = vmul.f32 %v604_v32, %v1510_v38 }
 0x9a6   :  { %v612_v40 = vmul.f32 %v1089_v39, %v610_v37  ;;  %vm617_vm14 = vweird.f32 %v1089_v39 }
 0x9a7   :  { %629 = vrot.lane.b32.xlu2 %v627_v34, %s1171_s9  ;;  %vm618_vm1 = vmor %vm616_vm15, %vm617_vm14 }
 0x9a8   :  { %v613_v41 = vsub.f32 1.0, %v612_v40 }
 0x9aa   :  { %v614_v42 = vmul.f32 %v1089_v39, %v613_v41 }
 0x9ac   :  { %v615_v47 = vadd.f32 %v1089_v39, %v614_v42 }
 0x9ae   :  { %v619_v4 = vsel %vm618_vm1, %v1089_v39, %v615_v47 }
 0x9af   :  { %v624_v10 = vsel %vm621_vm2, %v623_v5, %v619_v4 }
 0xa01   :  { %v630_v45 = vpop.permute.xlu2 %629 }
 0xa02   :  { %v1553_v46 = vadd.f32 %v630_v45, %v626_v43 }
 0xa04   :  { %1090 = vtanh.f32 %v1553_v46 }
 0xa0a   :  { %v1091_v7 = vpop.eup %1090 }
 0xa0b   :  { %v634_v12 = vmul.f32 %v1091_v7, %v624_v10 }
 0xa0d   :  { %636 = vrot.lane.b32.xlu2 %v634_v12, %s1171_s9 }
 0xa67   :  { %v637_v38 = vpop.permute.xlu2 %636 }
 0xa68   :  { %1023 = vmatmul.msk.f32.vlgmr.msra.gmra.mxu3 %vm84_vm0, %v637_v38  ;;  %1024 = vmatmul.msk.f32.vlgmr.msrb.gmra.mxu0 %vm84_vm0, %v637_v38 }
 0xa69   :  { %1025 = vmatmul.msk.f32.vlgmr.msrb.gmra.mxu1 %vm84_vm0, %v637_v38 }
 0xae5   :  { %v708_v25 = vpop.f32.mrf.mxu0 }
 0xae6   :  { %v728_v1 = vpop.f32.mrf.mxu1 }
 0xaeb   :  { %v657_v50 = vpop.f32.mrf.mxu3 }
 0xaec   :  { %v658_v14 = vadd.f32 %v1434_v30, %v657_v50 }
 0xaee   :  { %v660_v51 = vsel %vm217_vm9, %v658_v14, -inf  ;;  %v682_v20 = vmul.f32 %v1443_v49, %v658_v14 }
 0xaef   :  { %661 = vmax.xlane.f32.xlu2 %v660_v51 }
 0xb62   :  { %v662_v52 = vpop.xlane.xlu2 %661 }
 0xb63   :  { %vm663_vm3 = vcmp.eq.f32.partialorder %v658_v14, %v662_v52 }
 0xb64   :  { %v664_v17 = vsel %vm663_vm3, %v1438_v36, 16 }
 0xb65   :  { %v665_v53 = vsel %vm217_vm9, %v664_v17, 2147483647 }
 0xb66   :  { %v667_v54 = vshra.s32 %v665_v53, 16  ;;  %v666_v58 = vand.u32 65535, %v665_v53 }
 0xb68   :  { %v669_v56 = vcvt.s32.f32 %v667_v54  ;;  %v668_v48 = vcvt.s32.f32 %v666_v58 }
 0xb6a   :  { %670 = vmin.xlane.f32.xlu1 %v669_v56 }
 0xbdd   :  { %v671_v60 = vpop.xlane.xlu1 %670 }
 0xbde   :  { %vm672_vm4 = vcmp.eq.f32.partialorder %v669_v56, %v671_v60  ;;  %v677_v57 = vcvt.f32.s32 %v671_v60 }
 0xbdf   :  { %v673_v55 = vsel %vm672_vm4, %v668_v48, inf }
 0xbe0   :  { %674 = vmin.xlane.f32.xlu0 %v673_v55  ;;  %v678_v62 = vshll.u32 %v677_v57, 16 }
 0xc53   :  { %v675_v59 = vpop.xlane.xlu0 %674 }
 0xc54   :  { %v676_v63 = vcvt.f32.s32 %v675_v59 }
 0xc56   :  { %v679_v8 = vadd.s32 %v678_v62, %v676_v63 }
 0xc58   :  { %vm680_vm5 = vcmp.eq.s32.totalorder %v679_v8, 3  ;;  %v688_v21 = vcvt.s32.f32 %v679_v8 }
 0xc59   :  { %vm1567_vm6 = vmor %vm1540_vm8, %vm680_vm5 }
 0xc5a   :  { %v689_v44 = vmul.f32 %v688_v21, %v1304_v19  ;;  %v685_v24 = vsel %vm1567_vm6, %v682_v20, %v658_v14  ;;  %v690_v61 = vmul.f32 %v688_v21, %v1313_v27 }
 0xc5b   :  { %687 = vst.msk [vmem:[#allocation5 + $0x6] sm:$0x3] %vm217_vm9, %v685_v24 }
 0xc5c   :  { %v731_v26 = vadd.f32 %v708_v25, %v689_v44  ;;  %v732_v3 = vadd.f32 %v728_v1, %v690_v61 }
 0xc5e   :  { %v733_v28 = vadd.f32 %v731_v26, %v1310_v22  ;;  %v734_v9 = vadd.f32 %v732_v3, %v1316_v33 }
 0xc60   :  { %v1026_v29 = vmul.f32 -1.442695, %v733_v28  ;;  %v1027_v42 = vmul.f32 -1.442695, %v734_v9 }
 0xc62   :  { %1092 = vpow2.f32 %v1026_v29 }
 0xc68   :  { %v1093_v16 = vpop.eup %1092 }
 0xc69   :  { %v738_v0 = vadd.f32 1.0, %v1093_v16 }
 0xc6b   :  { %1094 = vrcp.f32 %v738_v0  ;;  %v750_v13 = vand.u32 2147483648, %v738_v0  ;;  %v748_v34 = vand.u32 2147483647, %v738_v0  ;;  %vm744_vm8 = vweird.f32 %v738_v0 }
 0xc6c   :  { %1096 = vtanh.f32 %v734_v9 }
 0xc6d   :  { %v751_v15 = vor.u32 1.1754944e-38, %v750_v13  ;;  %vm749_vm11 = vcmp.eq.f32.partialorder %v748_v34, 8.507059e+37  ;;  %1098 = vpow2.f32 %v1027_v42 }
 0xc71   :  { %v1095_v6 = vpop.eup %1094 }
 0xc72   :  { %v740_v11 = vmul.f32 %v1095_v6, %v738_v0  ;;  %vm745_vm7 = vweird.f32 %v1095_v6  ;;  %v1097_v39 = vpop.eup %1096  ;;  %v1173_v0 = vmov 0  }
 0xc73   :  { %vm746_vm10 = vmor %vm744_vm8, %vm745_vm7  ;;  %v1099_v43 = vpop.eup %1098 }
 0xc74   :  { %v741_v31 = vsub.f32 1.0, %v740_v11  ;;  %v758_v45 = vadd.f32 1.0, %v1099_v43 }
 0xc76   :  { %v742_v32 = vmul.f32 %v1095_v6, %v741_v31  ;;  %1100 = vrcp.f32 %v758_v45  ;;  %v770_v38 = vand.u32 2147483648, %v758_v45  ;;  %vm764_vm13 = vweird.f32 %v758_v45 }
 0xc77   :  { %v768_v50 = vand.u32 2147483647, %v758_v45 }
 0xc78   :  { %v743_v35 = vadd.f32 %v1095_v6, %v742_v32  ;;  %v771_v51 = vor.u32 1.1754944e-38, %v770_v38 }
 0xc79   :  { %vm769_vm15 = vcmp.eq.f32.partialorder %v768_v50, 8.507059e+37 }
 0xc7a   :  { %v747_v37 = vsel %vm746_vm10, %v1095_v6, %v743_v35 }
 0xc7b   :  { %v752_v40 = vsel %vm749_vm11, %v751_v15, %v747_v37 }
 0xc7c   :  { %v775_v41 = vmul.f32 %v1097_v39, %v752_v40  ;;  %v1101_v47 = vpop.eup %1100  ;;  %v774_v5 = vmul.f32 %v752_v40, %v1553_v46 }
 0xc7d   :  { %v760_v18 = vmul.f32 %v1101_v47, %v758_v45  ;;  %vm765_vm12 = vweird.f32 %v1101_v47 }
 0xc7e   :  { %777 = vrot.lane.b32.xlu1 %v775_v41, %s1171_s9  ;;  %vm766_vm14 = vmor %vm764_vm13, %vm765_vm12 }
 0xc7f   :  { %v761_v2 = vsub.f32 1.0, %v760_v18 }
 0xc81   :  { %v762_v4 = vmul.f32 %v1101_v47, %v761_v2 }
 0xc83   :  { %v763_v12 = vadd.f32 %v1101_v47, %v762_v4 }
 0xc85   :  { %v767_v14 = vsel %vm766_vm14, %v1101_v47, %v763_v12 }
 0xc86   :  { %v772_v17 = vsel %vm769_vm15, %v771_v51, %v767_v14 }
 0xcf0   :  { %v778_v7 = vpop.permute.xlu1 %777 }
 0xcf1   :  { %v1580_v10 = vadd.f32 %v778_v7, %v774_v5 }
 0xcf3   :  { %1102 = vtanh.f32 %v1580_v10 }
 0xcf9   :  { %v1103_v52 = vpop.eup %1102 }
 0xcfa   :  { %v782_v53 = vmul.f32 %v1103_v52, %v772_v17 }
 0xcfc   :  { %784 = vrot.lane.b32.xlu0 %v782_v53, %s1171_s9 }
 0xd6e   :  { %v785_v46 = vpop.permute.xlu0 %784 }
 0xd6f   :  { %1028 = vmatmul.msk.f32.vlgmr.msrb.gmra.mxu2 %vm84_vm0, %v785_v46  ;;  %1029 = vmatmul.msk.f32.vlgmr.msrb.gmra.mxu3 %vm84_vm0, %v785_v46 }
 0xd70   :  { %1030 = vmatmul.msk.f32.vlgmr.msra.gmra.mxu0 %vm84_vm0, %v785_v46 }
 0xdf2   :  { %v805_v54 = vpop.f32.mrf.mxu2  ;;  %v856_v3 = vpop.f32.mrf.mxu3 }
 0xdf3   :  { %v806_v56 = vadd.f32 %v1434_v30, %v805_v54 }
 0xdf5   :  { %v808_v58 = vsel %vm217_vm9, %v806_v56, -inf  ;;  %v830_v16 = vmul.f32 %v1443_v49, %v806_v56 }
 0xdf6   :  { %809 = vmax.xlane.f32.xlu0 %v808_v58 }
 0xe69   :  { %v810_v60 = vpop.xlane.xlu0 %809 }
 0xe6a   :  { %vm811_vm1 = vcmp.eq.f32.partialorder %v806_v56, %v810_v60 }
 0xe6b   :  { %v812_v48 = vsel %vm811_vm1, %v1438_v36, 16 }
 0xe6c   :  { %v813_v55 = vsel %vm217_vm9, %v812_v48, 2147483647 }
 0xe6d   :  { %v815_v57 = vshra.s32 %v813_v55, 16  ;;  %v814_v62 = vand.u32 65535, %v813_v55 }
 0xe6f   :  { %v817_v59 = vcvt.s32.f32 %v815_v57  ;;  %v816_v8 = vcvt.s32.f32 %v814_v62 }
 0xe71   :  { %818 = vmin.xlane.f32.xlu1 %v817_v59 }
 0xee4   :  { %v819_v63 = vpop.xlane.xlu1 %818 }
 0xee5   :  { %vm820_vm2 = vcmp.eq.f32.partialorder %v817_v59, %v819_v63  ;;  %v825_v21 = vcvt.f32.s32 %v819_v63 }
 0xee6   :  { %v821_v20 = vsel %vm820_vm2, %v816_v8, inf }
 0xee7   :  { %822 = vmin.xlane.f32.xlu2 %v821_v20  ;;  %v826_v24 = vshll.u32 %v825_v21, 16 }
 0xf5a   :  { %v823_v44 = vpop.xlane.xlu2 %822 }
 0xf5b   :  { %v824_v25 = vcvt.f32.s32 %v823_v44 }
 0xf5d   :  { %v827_v26 = vadd.s32 %v826_v24, %v824_v25 }
 0xf5f   :  { %vm828_vm3 = vcmp.eq.s32.totalorder %v827_v26, 3  ;;  %v836_v28 = vcvt.s32.f32 %v827_v26 }
 0xf60   :  { %vm1593_vm4 = vmor %vm1567_vm6, %vm828_vm3 }
 0xf61   :  { %v837_v61 = vmul.f32 %v836_v28, %v1304_v19  ;;  %v831_v1 = vsel %vm1593_vm4, 1, %v1173_v0  ;;  %v838_v13 = vmul.f32 %v836_v28, %v1313_v27  ;;  %v876_v19 = vpop.f32.mrf.mxu0 }
 0xf62   :  { %vm832_vm5 = vcmp.eq.s32.totalorder %v831_v1, 1 }
 0xf63   :  { %v879_v6 = vadd.f32 %v856_v3, %v837_v61  ;;  %v833_v9 = vsel %vm832_vm5, %v830_v16, %v806_v56  ;;  %v880_v34 = vadd.f32 %v876_v19, %v838_v13 }
 0xf64   :  { %835 = vst.msk [vmem:[#allocation5 + $0x8] sm:$0x3] %vm217_vm9, %v833_v9 }
 0xf65   :  { %v881_v23 = vadd.f32 %v879_v6, %v1310_v22  ;;  %v882_v15 = vadd.f32 %v880_v34, %v1316_v33 }
 0xf67   :  { %v1031_v11 = vmul.f32 -1.442695, %v881_v23  ;;  %v1032_v2 = vmul.f32 -1.442695, %v882_v15 }
 0xf69   :  { %1104 = vpow2.f32 %v1031_v11 }
 0xf6f   :  { %v1105_v31 = vpop.eup %1104 }
 0xf70   :  { %v886_v32 = vadd.f32 1.0, %v1105_v31 }
 0xf72   :  { %1106 = vrcp.f32 %v886_v32  ;;  %v898_v40 = vand.u32 2147483648, %v886_v32  ;;  %v896_v42 = vand.u32 2147483647, %v886_v32  ;;  %vm892_vm7 = vweird.f32 %v886_v32 }
 0xf73   :  { %1108 = vtanh.f32 %v882_v15 }
 0xf74   :  { %v899_v43 = vor.u32 1.1754944e-38, %v898_v40  ;;  %vm897_vm10 = vcmp.eq.f32.partialorder %v896_v42, 8.507059e+37  ;;  %1110 = vpow2.f32 %v1032_v2 }
 0xf78   :  { %v1107_v35 = vpop.eup %1106 }
 0xf79   :  { %v888_v37 = vmul.f32 %v1107_v35, %v886_v32  ;;  %vm893_vm6 = vweird.f32 %v1107_v35  ;;  %v1109_v27 = vpop.eup %1108 }
 0xf7a   :  { %vm894_vm8 = vmor %vm892_vm7, %vm893_vm6  ;;  %v1111_v33 = vpop.eup %1110 }
 0xf7b   :  { %v889_v39 = vsub.f32 1.0, %v888_v37  ;;  %v906_v4 = vadd.f32 1.0, %v1111_v33 }
 0xf7d   :  { %v890_v41 = vmul.f32 %v1107_v35, %v889_v39  ;;  %1112 = vrcp.f32 %v906_v4  ;;  %v918_v17 = vand.u32 2147483648, %v906_v4  ;;  %vm912_vm12 = vweird.f32 %v906_v4 }
 0xf7e   :  { %v916_v53 = vand.u32 2147483647, %v906_v4 }
 0xf7f   :  { %v891_v22 = vadd.f32 %v1107_v35, %v890_v41  ;;  %v919_v54 = vor.u32 1.1754944e-38, %v918_v17 }
 0xf80   :  { %vm917_vm14 = vcmp.eq.f32.partialorder %v916_v53, 8.507059e+37 }
 0xf81   :  { %v895_v45 = vsel %vm894_vm8, %v1107_v35, %v891_v22 }
 0xf82   :  { %v900_v47 = vsel %vm897_vm10, %v899_v43, %v895_v45 }
 0xf83   :  { %v923_v18 = vmul.f32 %v1109_v27, %v900_v47  ;;  %v1113_v5 = vpop.eup %1112  ;;  %v922_v50 = vmul.f32 %v900_v47, %v1580_v10 }
 0xf84   :  { %v908_v7 = vmul.f32 %v1113_v5, %v906_v4  ;;  %vm913_vm11 = vweird.f32 %v1113_v5 }
 0xf85   :  { %925 = vrot.lane.b32.xlu2 %v923_v18, %s1171_s9  ;;  %vm914_vm13 = vmor %vm912_vm12, %vm913_vm11 }
 0xf86   :  { %v909_v12 = vsub.f32 1.0, %v908_v7 }
 0xf88   :  { %v910_v38 = vmul.f32 %v1113_v5, %v909_v12 }
 0xf8a   :  { %v911_v52 = vadd.f32 %v1113_v5, %v910_v38 }
 0xf8c   :  { %v915_v46 = vsel %vm914_vm13, %v1113_v5, %v911_v52 }
 0xf8d   :  { %v920_v58 = vsel %vm917_vm14, %v919_v54, %v915_v46 }
 0xfdf   :  { %v926_v14 = vpop.permute.xlu2 %925 }
 0xfe0   :  { %v928_v51 = vadd.f32 %v926_v14, %v922_v50 }
 0xfe2   :  { %1114 = vtanh.f32 %v928_v51 }
 0xfe8   :  { %v1115_v56 = vpop.eup %1114 }
 0xfe9   :  { %v930_v60 = vmul.f32 %v1115_v56, %v920_v58 }
 0xfeb   :  { %932 = vrot.lane.b32.xlu2 %v930_v60, %s1171_s9  ;;  %s1175_s9 = smov 32  }
0x1045   :  { %v933_v48 = vpop.permute.xlu2 %932 }
0x1046   :  { %1033 = vmatmul.msk.f32.vlgmr.msra.gmra.mxu1 %vm84_vm0, %v933_v48 }
0x10c3   :  { %v953_v10 = vpop.f32.mrf.mxu1 }
0x10c4   :  { %v954_v55 = vadd.f32 %v1434_v30, %v953_v10 }
0x10c6   :  { %v956_v57 = vsel %vm217_vm9, %v954_v55, -inf }
0x10c7   :  { %957 = vmax.xlane.f32.xlu0 %v956_v57 }
0x113a   :  { %v958_v59 = vpop.xlane.xlu0 %957 }
0x113b   :  { %vm959_vm15 = vcmp.eq.f32.partialorder %v954_v55, %v958_v59 }
0x113c   :  { %v960_v62 = vsel %vm959_vm15, %v1438_v36, 16  ;;  %v978_v36 = vmul.f32 %v1443_v49, %v954_v55 }
0x113d   :  { %v961_v63 = vsel %vm217_vm9, %v960_v62, 2147483647 }
0x113e   :  { %v963_v8 = vshra.s32 %v961_v63, 16  ;;  %v962_v21 = vand.u32 65535, %v961_v63 }
0x1140   :  { %v965_v20 = vcvt.s32.f32 %v963_v8  ;;  %v964_v24 = vcvt.s32.f32 %v962_v21 }
0x1142   :  { %966 = vmin.xlane.f32.xlu1 %v965_v20 }
0x11b5   :  { %v967_v44 = vpop.xlane.xlu1 %966 }
0x11b6   :  { %vm968_vm1 = vcmp.eq.f32.partialorder %v965_v20, %v967_v44  ;;  %v973_v26 = vcvt.f32.s32 %v967_v44 }
0x11b7   :  { %v969_v25 = vsel %vm968_vm1, %v964_v24, inf }
0x11b8   :  { %970 = vmin.xlane.f32.xlu2 %v969_v25  ;;  %v974_v28 = vshll.u32 %v973_v26, 16 }
0x122b   :  { %v971_v30 = vpop.xlane.xlu2 %970 }
0x122c   :  { %v972_v16 = vcvt.f32.s32 %v971_v30 }
0x122e   :  { %v975_v61 = vadd.s32 %v974_v28, %v972_v16 }
0x1230   :  { %vm976_vm0 = vcmp.eq.s32.totalorder %v975_v61, 3 }
0x1231   :  { %vm977_vm2 = vmor %vm1593_vm4, %vm976_vm0 }
0x1232   :  { %v979_v1 = vsel %vm977_vm2, 1, %v1173_v0 }
0x1233   :  { %vm980_vm3 = vcmp.eq.s32.totalorder %v979_v1, 1 }
0x1234   :  { %v981_v3 = vsel %vm980_vm3, %v978_v36, %v954_v55 }
0x1235   :  { %983 = vst.msk [vmem:[#allocation5 + $0xa] sm:$0x3] %vm217_vm9, %v981_v3 }
0x1236   :  { %996 = dma.vmem_to_hbm [thread:$0]  %s989_s29, 192, %s991_s8, [#allocation4], %s1175_s9, %s1175_s9, %s1176_s1  }
0x1237   :  { %1166 = dma.done.wait [#allocation4], 192  }
0x1238   :  { %1167 = vsyncadd [#allocation4], 4294967104 }
0x1239   :  { %1001 = vsyncpa [#allocation3], 1 }
0x123a   :  { %1002 = vsyncpa [#allocation4], 1 }

</bundles_post_ra>
